<compile_context>
chip_gen: v6e
topology: v6e:2x2x1
jax: 0.10.0
libtpu: 0.0.40
codegen_flags: <defaults>
</compile_context>

<pallas_src>
import functools

import jax
import jax.numpy as jnp
import numpy as np
from jax.experimental import pallas as pl
from jax.experimental.pallas import tpu as pltpu

LN_EPS = 1e-5  # nn.LayerNorm / CLIP layer_norm_eps default


# ----------------------------------------------------------------------------
# Fused single-step kernel: LN1 + fused QKV + MHSA(+out_proj, +residual,
# CLS-only) + last-group full softmax + LN2 + MLP(quick_gelu) + residual.
# ----------------------------------------------------------------------------
def _fused_layer_kernel(x_ref, xcls_ref, g1_ref, b1_ref, wqkv_ref, bqkv_ref,
                        wo_ref, bo_ref, g2_ref, b2_ref,
                        w1_ref, b1m_ref, w2_ref, b2m_ref,
                        out_ref, aw_ref, *, num_heads, head_dim, batch, tokens):
    H, HD, B, N = num_heads, head_dim, batch, tokens
    D = H * HD
    FB = 4 * B

    g1 = g1_ref[...]
    b1 = b1_ref[...]

    def layer_norm(v, g, b):
        mu = jnp.mean(v, axis=-1, keepdims=True)
        c = v - mu
        var = jnp.mean(c * c, axis=-1, keepdims=True)
        return c * jax.lax.rsqrt(var + LN_EPS) * g + b

    wqkv = wqkv_ref[...]          # [D, 3D]   (q columns pre-scaled host-side)
    bqkv = bqkv_ref[...]          # [1, 3D]

    # ---- LN1 + fused (scaled q | k | v): ONE [4BN, D] x [D, 3D] matmul ----
    y = layer_norm(x_ref[...], g1, b1)                                  # [4BN, D]
    qkv = jnp.dot(y, wqkv, preferred_element_type=jnp.float32) + bqkv   # [4BN, 3D]
    k_all = qkv[:, D:2 * D]                                             # [4BN, D]
    v_all = qkv[:, 2 * D:]                                              # [4BN, D]

    # CLS queries for all 4*B (group, batch) items (LN is per-token, so this
    # equals the CLS rows of the full projection).
    ycls = layer_norm(xcls_ref[...], g1, b1)                            # [4B, D]
    qcls = (jnp.dot(ycls, wqkv[:, :D], preferred_element_type=jnp.float32)
            + bqkv[:, :D])                                              # [4B, D]

    # Block-diagonal mask: CLS row fb may only attend to keys of block fb
    # (key rows [fb*N, (fb+1)*N) of the flattened slab).
    col = jax.lax.broadcasted_iota(jnp.int32, (FB, FB * N), 1)
    row = jax.lax.broadcasted_iota(jnp.int32, (FB, FB * N), 0)
    lower = row * N
    cls_mask = (col >= lower) & (col < lower + N)                       # [4B, 4BN]

    # ---- CLS attention, batched over all 4*B pairs, per head ----
    ctx_heads = []
    for h in range(H):
        lo = h * HD
        k_h = k_all[:, lo:lo + HD]                                      # [4BN, HD]
        v_h = v_all[:, lo:lo + HD]                                      # [4BN, HD]
        s = jax.lax.dot_general(qcls[:, lo:lo + HD], k_h,
                                (((1,), (1,)), ((), ())),
                                preferred_element_type=jnp.float32)     # [4B, 4BN]
        s = jnp.where(cls_mask, s, -1e30)
        s = s - jnp.max(s, axis=-1, keepdims=True)
        e = jnp.exp(s)
        p = e / jnp.sum(e, axis=-1, keepdims=True)                      # exact
        ctx_heads.append(jnp.dot(p, v_h, preferred_element_type=jnp.float32))

    ctx_cls = jnp.concatenate(ctx_heads, axis=-1)                       # [4B, D]
    attn_cls = (jnp.dot(ctx_cls, wo_ref[...],
                        preferred_element_type=jnp.float32)
                + bo_ref[...])                                          # [4B, D]

    # ---- Full NxN softmax of the LAST group only (module returns i=3's aw),
    #      assembled into one value and written with a single store.
    aw_batches = []
    for b in range(B):
        r0 = (3 * B + b) * N
        head_ps = []
        for h in range(H):
            lo = h * HD
            q_bh = qkv[r0:r0 + N, lo:lo + HD]                           # scaled q
            k_bh = k_all[r0:r0 + N, lo:lo + HD]
            s = jax.lax.dot_general(q_bh, k_bh, (((1,), (1,)), ((), ())),
                                    preferred_element_type=jnp.float32)  # [N, N]
            s = s - jnp.max(s, axis=-1, keepdims=True)
            e = jnp.exp(s)
            head_ps.append(e / jnp.sum(e, axis=-1, keepdims=True))
        aw_batches.append(jnp.stack(head_ps, axis=0))                   # [H, N, N]
    aw_ref[...] = jnp.stack(aw_batches, axis=0)                         # [B, H, N, N]

    # ---- residual on CLS rows only (is_last_layer keeps token 0) ----
    hidden = xcls_ref[...] + attn_cls                                   # [4B, D]

    # ---- LN2 + MLP (quick_gelu) + residual: one [4B, D] x [D, DFF] matmul ----
    y2 = layer_norm(hidden, g2_ref[...], b2_ref[...])
    ff = jnp.dot(y2, w1_ref[...], preferred_element_type=jnp.float32) + b1m_ref[...]
    ff = ff * (1.0 / (1.0 + jnp.exp(-1.702 * ff)))                      # quick_gelu
    out_ref[...] = (hidden
                    + jnp.dot(ff, w2_ref[...], preferred_element_type=jnp.float32)
                    + b2m_ref[...])


# ----------------------------------------------------------------------------
# Full forward (is_first_layer=True, is_last_layer=True)
# ----------------------------------------------------------------------------
def optimized_sim_encoder_layer_forward(list_hidden_states, cache,
                                        is_first_four, params, *, num_heads):
    """Mirrors OptimizedSimEncoderLayer.forward for the implemented config.

    Args:
      list_hidden_states: [4*B, N, D]  (four frames stacked along batch)
      cache:              [5, B, C, N, D] (only shapes consumed in this config)
      is_first_four:      bool (unused in this config)
      params:             parameter dict
    Returns:
      (list_hidden_states [4, B, 1, D], attn_weights [B, H, N, N], None, None)
    """
    del is_first_four
    FB, N, D = list_hidden_states.shape
    _, B, _, _, _ = cache.shape
    assert FB == 4 * B
    H = num_heads
    HD = D // H
    scale = HD ** -0.5
    DFF = params["w1"].shape[1]

    # One lane-dense slab of all tokens, plus the CLS rows (for q_cls/residual).
    x2d = list_hidden_states.reshape(FB * N, D)
    xcls = list_hidden_states[:, 0, :]                                  # [4B, D]

    # Fuse q/k/v weights into one [D, 3D] operand; fold the attention scale
    # into the q columns/bias on the host (free, correctness-preserving).
    wqkv = jnp.concatenate([params["wq"] * scale, params["wk"], params["wv"]],
                           axis=1)
    bqkv = jnp.concatenate([params["bq"] * scale, params["bk"], params["bv"]],
                           axis=1)

    def full_spec(shape):
        return pl.BlockSpec(shape, lambda i, nd=len(shape): (0,) * nd)

    in_arrays = (x2d, xcls, params["ln1_g"], params["ln1_b"], wqkv, bqkv,
                 params["wo"], params["bo"], params["ln2_g"], params["ln2_b"],
                 params["w1"], params["b1"], params["w2"], params["b2"])

    out, aw = pl.pallas_call(
        functools.partial(_fused_layer_kernel, num_heads=H, head_dim=HD,
                          batch=B, tokens=N),
        out_shape=(jax.ShapeDtypeStruct((FB, D), jnp.float32),
                   jax.ShapeDtypeStruct((B, H, N, N), jnp.float32)),
        grid=(1,),
        in_specs=[full_spec(a.shape) for a in in_arrays],
        out_specs=(full_spec((FB, D)), full_spec((B, H, N, N))),
        compiler_params=pltpu.CompilerParams(
            dimension_semantics=("arbitrary",)),
    )(*in_arrays)

    # qkvs=None (output_qkvs=False), list_maps=None (is_last_layer).
    return out.reshape(4, B, 1, D), aw, None, None


# ----------------------------------------------------------------------------
# Pure-JAX reference (numerical verification)
# ----------------------------------------------------------------------------
def reference_forward(x4b, cache, params, *, num_heads):
    FB, N, D = x4b.shape
    _, B, _, _, _ = cache.shape
    H = num_heads
    HD = D // H
    scale = HD ** -0.5

    def ln(x, g, b):
        mu = x.mean(-1, keepdims=True)
        var = ((x - mu) ** 2).mean(-1, keepdims=True)
        return (x - mu) / jnp.sqrt(var + LN_EPS) * g + b

    y = ln(x4b, params["ln1_g"], params["ln1_b"])
    q = y @ params["wq"] + params["bq"]
    k = y @ params["wk"] + params["bk"]
    v = y @ params["wv"] + params["bv"]

    qh = (q * scale).reshape(FB, N, H, HD).transpose(0, 2, 1, 3)
    kh = k.reshape(FB, N, H, HD).transpose(0, 2, 1, 3)
    vh = v.reshape(FB, N, H, HD).transpose(0, 2, 1, 3)
    s = jnp.einsum("bhqd,bhkd->bhqk", qh, kh)
    p = jax.nn.softmax(s, axis=-1)
    ctx = jnp.einsum("bhqk,bhkd->bhqd", p, vh)
    ctx = ctx.transpose(0, 2, 1, 3).reshape(FB, N, D)
    attn_out = ctx @ params["wo"] + params["bo"]
    hidden = x4b + attn_out

    list_hidden = hidden.reshape(4, B, N, D)
    aw = p.reshape(4, B, H, N, N)[3]

    cls = list_hidden[:, :, :1]
    y2 = ln(cls, params["ln2_g"], params["ln2_b"])
    h = y2 @ params["w1"] + params["b1"]
    h = h * jax.nn.sigmoid(1.702 * h)
    out = cls + (h @ params["w2"] + params["b2"])
    return out, aw


# ----------------------------------------------------------------------------
# Main
# ----------------------------------------------------------------------------
if __name__ == "__main__":
    # Small config consistent with the module:
    #   image_size=32, patch_size=8 -> token_num_per_side=4, token_count=17
    B = 2
    D = 32            # config.hidden_size
    H = 4             # num_heads
    DFF = 64          # mlp intermediate size
    N = 4 * 4 + 1     # token_count = (image_size // patch_size)**2 + 1 = 17

    key = jax.random.PRNGKey(0)
    ks = jax.random.split(key, 24)

    def nrm(k, shape, s=0.02):
        return (s * jax.random.normal(k, shape)).astype(jnp.float32)

    params = {
        "ln1_g": (1.0 + nrm(ks[0], (1, D), 0.1)),
        "ln1_b": nrm(ks[1], (1, D), 0.1),
        "wq": nrm(ks[2], (D, D)), "bq": nrm(ks[3], (1, D)),
        "wk": nrm(ks[4], (D, D)), "bk": nrm(ks[5], (1, D)),
        "wv": nrm(ks[6], (D, D)), "bv": nrm(ks[7], (1, D)),
        "wo": nrm(ks[8], (D, D)), "bo": nrm(ks[9], (1, D)),
        "ln2_g": (1.0 + nrm(ks[10], (1, D), 0.1)),
        "ln2_b": nrm(ks[11], (1, D), 0.1),
        "w1": nrm(ks[12], (D, DFF)), "b1": nrm(ks[13], (1, DFF)),
        "w2": nrm(ks[14], (DFF, D)), "b2": nrm(ks[15], (1, D)),
        # nn.Parameter(reuse_thresholds): shape [token_count - 1]; only used
        # on the non-last-layer path (stage_states), kept for fidelity.
        "reuse_thresholds": nrm(ks[16], (N - 1,), 0.5),
    }

    # Inputs.
    list_hidden_states = jax.random.normal(ks[20], (4 * B, N, D),
                                           dtype=jnp.float32)
    # cache[:4] = hqkv caches, cache[4] = reference-state cache (3 slots each);
    # only its shape is consumed in this (first & last layer) configuration.
    cache = jax.random.normal(ks[21], (5, B, 3, N, D), dtype=jnp.float32)
    is_first_four = True

    out, attn_w, qkvs, list_maps = optimized_sim_encoder_layer_forward(
        list_hidden_states, cache, is_first_four, params, num_heads=H)
    jax.block_until_ready(out)
    jax.block_until_ready(attn_w)

    ref_out, ref_aw = reference_forward(list_hidden_states, cache, params,
                                        num_heads=H)
    np.testing.assert_allclose(np.asarray(out), np.asarray(ref_out),
                               rtol=1e-2, atol=1e-2)
    np.testing.assert_allclose(np.asarray(attn_w), np.asarray(ref_aw),
                               rtol=1e-2, atol=1e-2)
    assert out.shape == (4, B, 1, D)
    assert attn_w.shape == (B, H, N, N)
    assert qkvs is None and list_maps is None

    print("KERNEL_OK")
</pallas_src>

<mosaic_0001>
module attributes {stable_mosaic.version = 11 : i64} {
  func.func @_fused_layer_kernel(%arg0: i32, %arg1: memref<136x32xf32, #tpu.memory_space<vmem>>, %arg2: memref<8x32xf32, #tpu.memory_space<vmem>>, %arg3: memref<1x32xf32, #tpu.memory_space<vmem>>, %arg4: memref<1x32xf32, #tpu.memory_space<vmem>>, %arg5: memref<32x96xf32, #tpu.memory_space<vmem>>, %arg6: memref<1x96xf32, #tpu.memory_space<vmem>>, %arg7: memref<32x32xf32, #tpu.memory_space<vmem>>, %arg8: memref<1x32xf32, #tpu.memory_space<vmem>>, %arg9: memref<1x32xf32, #tpu.memory_space<vmem>>, %arg10: memref<1x32xf32, #tpu.memory_space<vmem>>, %arg11: memref<32x64xf32, #tpu.memory_space<vmem>>, %arg12: memref<1x64xf32, #tpu.memory_space<vmem>>, %arg13: memref<64x32xf32, #tpu.memory_space<vmem>>, %arg14: memref<1x32xf32, #tpu.memory_space<vmem>>, %arg15: memref<8x32xf32, #tpu.memory_space<vmem>>, %arg16: memref<2x4x17x17xf32, #tpu.memory_space<vmem>>) attributes {dimension_semantics = [#tpu.dimension_semantics<arbitrary>], iteration_bounds = array<i64: 1>, scalar_prefetch = 0 : i64, scratch_operands = 0 : i64, tpu.core_type = #tpu.core_type<tc>, window_params = [{pipeline_mode = #tpu.pipeline_mode<synchronous>, transform_indices = @transform_0, window_bounds = array<i64: 136, 32>}, {pipeline_mode = #tpu.pipeline_mode<synchronous>, transform_indices = @transform_1, window_bounds = array<i64: 8, 32>}, {pipeline_mode = #tpu.pipeline_mode<synchronous>, transform_indices = @transform_2, window_bounds = array<i64: 1, 32>}, {pipeline_mode = #tpu.pipeline_mode<synchronous>, transform_indices = @transform_3, window_bounds = array<i64: 1, 32>}, {pipeline_mode = #tpu.pipeline_mode<synchronous>, transform_indices = @transform_4, window_bounds = array<i64: 32, 96>}, {pipeline_mode = #tpu.pipeline_mode<synchronous>, transform_indices = @transform_5, window_bounds = array<i64: 1, 96>}, {pipeline_mode = #tpu.pipeline_mode<synchronous>, transform_indices = @transform_6, window_bounds = array<i64: 32, 32>}, {pipeline_mode = #tpu.pipeline_mode<synchronous>, transform_indices = @transform_7, window_bounds = array<i64: 1, 32>}, {pipeline_mode = #tpu.pipeline_mode<synchronous>, transform_indices = @transform_8, window_bounds = array<i64: 1, 32>}, {pipeline_mode = #tpu.pipeline_mode<synchronous>, transform_indices = @transform_9, window_bounds = array<i64: 1, 32>}, {pipeline_mode = #tpu.pipeline_mode<synchronous>, transform_indices = @transform_10, window_bounds = array<i64: 32, 64>}, {pipeline_mode = #tpu.pipeline_mode<synchronous>, transform_indices = @transform_11, window_bounds = array<i64: 1, 64>}, {pipeline_mode = #tpu.pipeline_mode<synchronous>, transform_indices = @transform_12, window_bounds = array<i64: 64, 32>}, {pipeline_mode = #tpu.pipeline_mode<synchronous>, transform_indices = @transform_13, window_bounds = array<i64: 1, 32>}, {pipeline_mode = #tpu.pipeline_mode<synchronous>, transform_indices = @transform_14, window_bounds = array<i64: 8, 32>}, {pipeline_mode = #tpu.pipeline_mode<synchronous>, transform_indices = @transform_15, window_bounds = array<i64: 2, 4, 17, 17>}]} {
    %c0 = arith.constant 0 : index
    %c0_0 = arith.constant 0 : index
    %0 = vector.load %arg3[%c0, %c0_0] : memref<1x32xf32, #tpu.memory_space<vmem>>, vector<1x32xf32>
    %c0_1 = arith.constant 0 : index
    %c0_2 = arith.constant 0 : index
    %1 = vector.load %arg4[%c0_1, %c0_2] : memref<1x32xf32, #tpu.memory_space<vmem>>, vector<1x32xf32>
    %c0_3 = arith.constant 0 : index
    %c0_4 = arith.constant 0 : index
    %2 = vector.load %arg5[%c0_3, %c0_4] : memref<32x96xf32, #tpu.memory_space<vmem>>, vector<32x96xf32>
    %c0_5 = arith.constant 0 : index
    %c0_6 = arith.constant 0 : index
    %3 = vector.load %arg6[%c0_5, %c0_6] : memref<1x96xf32, #tpu.memory_space<vmem>>, vector<1x96xf32>
    %c0_7 = arith.constant 0 : index
    %c0_8 = arith.constant 0 : index
    %4 = vector.load %arg1[%c0_7, %c0_8] : memref<136x32xf32, #tpu.memory_space<vmem>>, vector<136x32xf32>
    %cst = arith.constant dense<0.000000e+00> : vector<136xf32>
    %5 = vector.multi_reduction <add>, %4, %cst [1] : vector<136x32xf32> to vector<136xf32>
    %6 = vector.shape_cast %5 : vector<136xf32> to vector<136x1xf32>
    %cst_9 = arith.constant 3.200000e+01 : f32
    %7 = vector.broadcast %cst_9 : f32 to vector<136x1xf32>
    %8 = arith.divf %6, %7 : vector<136x1xf32>
    %9 = vector.broadcast %8 : vector<136x1xf32> to vector<136x32xf32>
    %10 = arith.subf %4, %9 : vector<136x32xf32>
    %11 = arith.mulf %10, %10 : vector<136x32xf32>
    %cst_10 = arith.constant dense<0.000000e+00> : vector<136xf32>
    %12 = vector.multi_reduction <add>, %11, %cst_10 [1] : vector<136x32xf32> to vector<136xf32>
    %13 = vector.shape_cast %12 : vector<136xf32> to vector<136x1xf32>
    %cst_11 = arith.constant 3.200000e+01 : f32
    %14 = vector.broadcast %cst_11 : f32 to vector<136x1xf32>
    %15 = arith.divf %13, %14 : vector<136x1xf32>
    %cst_12 = arith.constant 9.99999974E-6 : f32
    %16 = vector.broadcast %cst_12 : f32 to vector<136x1xf32>
    %17 = arith.addf %15, %16 : vector<136x1xf32>
    %18 = math.rsqrt %17 : vector<136x1xf32>
    %19 = vector.broadcast %18 : vector<136x1xf32> to vector<136x32xf32>
    %20 = arith.mulf %10, %19 : vector<136x32xf32>
    %21 = vector.broadcast %0 : vector<1x32xf32> to vector<136x32xf32>
    %22 = arith.mulf %20, %21 : vector<136x32xf32>
    %23 = vector.broadcast %1 : vector<1x32xf32> to vector<136x32xf32>
    %24 = arith.addf %22, %23 : vector<136x32xf32>
    %cst_13 = arith.constant dense<0.000000e+00> : vector<136x96xf32>
    %25 = tpu.matmul %24, %2, %cst_13 {dimension_numbers = #tpu.dot_dimension_numbers<[1], [0], [0], [1], [0, 0, 1, 1], [], []>} : vector<136x32xf32>, vector<32x96xf32>, vector<136x96xf32> -> vector<136x96xf32>
    %26 = vector.broadcast %3 : vector<1x96xf32> to vector<136x96xf32>
    %27 = arith.addf %25, %26 : vector<136x96xf32>
    %28 = vector.extract_strided_slice %27 {offsets = [0, 32], sizes = [136, 32], strides = [1, 1]} : vector<136x96xf32> to vector<136x32xf32>
    %29 = vector.extract_strided_slice %27 {offsets = [0, 64], sizes = [136, 32], strides = [1, 1]} : vector<136x96xf32> to vector<136x32xf32>
    %c0_14 = arith.constant 0 : index
    %c0_15 = arith.constant 0 : index
    %30 = vector.load %arg2[%c0_14, %c0_15] : memref<8x32xf32, #tpu.memory_space<vmem>>, vector<8x32xf32>
    %cst_16 = arith.constant dense<0.000000e+00> : vector<8xf32>
    %31 = vector.multi_reduction <add>, %30, %cst_16 [1] : vector<8x32xf32> to vector<8xf32>
    %32 = vector.shape_cast %31 : vector<8xf32> to vector<8x1xf32>
    %cst_17 = arith.constant 3.200000e+01 : f32
    %33 = vector.broadcast %cst_17 : f32 to vector<8x1xf32>
    %34 = arith.divf %32, %33 : vector<8x1xf32>
    %35 = vector.broadcast %34 : vector<8x1xf32> to vector<8x32xf32>
    %36 = arith.subf %30, %35 : vector<8x32xf32>
    %37 = arith.mulf %36, %36 : vector<8x32xf32>
    %cst_18 = arith.constant dense<0.000000e+00> : vector<8xf32>
    %38 = vector.multi_reduction <add>, %37, %cst_18 [1] : vector<8x32xf32> to vector<8xf32>
    %39 = vector.shape_cast %38 : vector<8xf32> to vector<8x1xf32>
    %cst_19 = arith.constant 3.200000e+01 : f32
    %40 = vector.broadcast %cst_19 : f32 to vector<8x1xf32>
    %41 = arith.divf %39, %40 : vector<8x1xf32>
    %cst_20 = arith.constant 9.99999974E-6 : f32
    %42 = vector.broadcast %cst_20 : f32 to vector<8x1xf32>
    %43 = arith.addf %41, %42 : vector<8x1xf32>
    %44 = math.rsqrt %43 : vector<8x1xf32>
    %45 = vector.broadcast %44 : vector<8x1xf32> to vector<8x32xf32>
    %46 = arith.mulf %36, %45 : vector<8x32xf32>
    %47 = vector.broadcast %0 : vector<1x32xf32> to vector<8x32xf32>
    %48 = arith.mulf %46, %47 : vector<8x32xf32>
    %49 = vector.broadcast %1 : vector<1x32xf32> to vector<8x32xf32>
    %50 = arith.addf %48, %49 : vector<8x32xf32>
    %51 = vector.extract_strided_slice %2 {offsets = [0, 0], sizes = [32, 32], strides = [1, 1]} : vector<32x96xf32> to vector<32x32xf32>
    %cst_21 = arith.constant dense<0.000000e+00> : vector<8x32xf32>
    %52 = tpu.matmul %50, %51, %cst_21 {dimension_numbers = #tpu.dot_dimension_numbers<[1], [0], [0], [1], [0, 0, 1, 1], [], []>} : vector<8x32xf32>, vector<32x32xf32>, vector<8x32xf32> -> vector<8x32xf32>
    %53 = vector.extract_strided_slice %3 {offsets = [0, 0], sizes = [1, 32], strides = [1, 1]} : vector<1x96xf32> to vector<1x32xf32>
    %54 = vector.broadcast %53 : vector<1x32xf32> to vector<8x32xf32>
    %55 = arith.addf %52, %54 : vector<8x32xf32>
    %56 = tpu.iota {dimensions = array<i32: 1>} : vector<8x136xi32>
    %57 = tpu.iota {dimensions = array<i32: 0>} : vector<8x136xi32>
    %c17_i32 = arith.constant 17 : i32
    %58 = vector.broadcast %c17_i32 : i32 to vector<8x136xi32>
    %59 = arith.muli %57, %58 : vector<8x136xi32>
    %60 = arith.cmpi sge, %56, %59 : vector<8x136xi32>
    %c17_i32_22 = arith.constant 17 : i32
    %61 = vector.broadcast %c17_i32_22 : i32 to vector<8x136xi32>
    %62 = arith.addi %59, %61 : vector<8x136xi32>
    %63 = arith.cmpi slt, %56, %62 : vector<8x136xi32>
    %64 = arith.andi %60, %63 : vector<8x136xi1>
    %65 = vector.extract_strided_slice %28 {offsets = [0, 0], sizes = [136, 8], strides = [1, 1]} : vector<136x32xf32> to vector<136x8xf32>
    %66 = vector.extract_strided_slice %29 {offsets = [0, 0], sizes = [136, 8], strides = [1, 1]} : vector<136x32xf32> to vector<136x8xf32>
    %67 = vector.extract_strided_slice %55 {offsets = [0, 0], sizes = [8, 8], strides = [1, 1]} : vector<8x32xf32> to vector<8x8xf32>
    %cst_23 = arith.constant dense<0.000000e+00> : vector<8x136xf32>
    %68 = tpu.matmul %67, %65, %cst_23 {dimension_numbers = #tpu.dot_dimension_numbers<[1], [1], [0], [0], [0, 0, 1, 0], [], []>} : vector<8x8xf32>, vector<136x8xf32>, vector<8x136xf32> -> vector<8x136xf32>
    %cst_24 = arith.constant -1.000000e+30 : f32
    %69 = vector.broadcast %cst_24 : f32 to vector<8x136xf32>
    %70 = arith.select %64, %68, %69 : vector<8x136xi1>, vector<8x136xf32>
    %cst_25 = arith.constant dense<0xFF800000> : vector<8xf32>
    %71 = vector.multi_reduction <maximumf>, %70, %cst_25 [1] : vector<8x136xf32> to vector<8xf32>
    %72 = vector.shape_cast %71 : vector<8xf32> to vector<8x1xf32>
    %73 = vector.broadcast %72 : vector<8x1xf32> to vector<8x136xf32>
    %74 = arith.subf %70, %73 : vector<8x136xf32>
    %75 = math.exp %74 : vector<8x136xf32>
    %cst_26 = arith.constant dense<0.000000e+00> : vector<8xf32>
    %76 = vector.multi_reduction <add>, %75, %cst_26 [1] : vector<8x136xf32> to vector<8xf32>
    %77 = vector.shape_cast %76 : vector<8xf32> to vector<8x1xf32>
    %78 = vector.broadcast %77 : vector<8x1xf32> to vector<8x136xf32>
    %79 = arith.divf %75, %78 : vector<8x136xf32>
    %cst_27 = arith.constant dense<0.000000e+00> : vector<8x8xf32>
    %80 = tpu.matmul %79, %66, %cst_27 {dimension_numbers = #tpu.dot_dimension_numbers<[1], [0], [0], [1], [0, 0, 1, 1], [], []>} : vector<8x136xf32>, vector<136x8xf32>, vector<8x8xf32> -> vector<8x8xf32>
    %81 = vector.extract_strided_slice %28 {offsets = [0, 8], sizes = [136, 8], strides = [1, 1]} : vector<136x32xf32> to vector<136x8xf32>
    %82 = vector.extract_strided_slice %29 {offsets = [0, 8], sizes = [136, 8], strides = [1, 1]} : vector<136x32xf32> to vector<136x8xf32>
    %83 = vector.extract_strided_slice %55 {offsets = [0, 8], sizes = [8, 8], strides = [1, 1]} : vector<8x32xf32> to vector<8x8xf32>
    %cst_28 = arith.constant dense<0.000000e+00> : vector<8x136xf32>
    %84 = tpu.matmul %83, %81, %cst_28 {dimension_numbers = #tpu.dot_dimension_numbers<[1], [1], [0], [0], [0, 0, 1, 0], [], []>} : vector<8x8xf32>, vector<136x8xf32>, vector<8x136xf32> -> vector<8x136xf32>
    %cst_29 = arith.constant -1.000000e+30 : f32
    %85 = vector.broadcast %cst_29 : f32 to vector<8x136xf32>
    %86 = arith.select %64, %84, %85 : vector<8x136xi1>, vector<8x136xf32>
    %cst_30 = arith.constant dense<0xFF800000> : vector<8xf32>
    %87 = vector.multi_reduction <maximumf>, %86, %cst_30 [1] : vector<8x136xf32> to vector<8xf32>
    %88 = vector.shape_cast %87 : vector<8xf32> to vector<8x1xf32>
    %89 = vector.broadcast %88 : vector<8x1xf32> to vector<8x136xf32>
    %90 = arith.subf %86, %89 : vector<8x136xf32>
    %91 = math.exp %90 : vector<8x136xf32>
    %cst_31 = arith.constant dense<0.000000e+00> : vector<8xf32>
    %92 = vector.multi_reduction <add>, %91, %cst_31 [1] : vector<8x136xf32> to vector<8xf32>
    %93 = vector.shape_cast %92 : vector<8xf32> to vector<8x1xf32>
    %94 = vector.broadcast %93 : vector<8x1xf32> to vector<8x136xf32>
    %95 = arith.divf %91, %94 : vector<8x136xf32>
    %cst_32 = arith.constant dense<0.000000e+00> : vector<8x8xf32>
    %96 = tpu.matmul %95, %82, %cst_32 {dimension_numbers = #tpu.dot_dimension_numbers<[1], [0], [0], [1], [0, 0, 1, 1], [], []>} : vector<8x136xf32>, vector<136x8xf32>, vector<8x8xf32> -> vector<8x8xf32>
    %97 = vector.extract_strided_slice %28 {offsets = [0, 16], sizes = [136, 8], strides = [1, 1]} : vector<136x32xf32> to vector<136x8xf32>
    %98 = vector.extract_strided_slice %29 {offsets = [0, 16], sizes = [136, 8], strides = [1, 1]} : vector<136x32xf32> to vector<136x8xf32>
    %99 = vector.extract_strided_slice %55 {offsets = [0, 16], sizes = [8, 8], strides = [1, 1]} : vector<8x32xf32> to vector<8x8xf32>
    %cst_33 = arith.constant dense<0.000000e+00> : vector<8x136xf32>
    %100 = tpu.matmul %99, %97, %cst_33 {dimension_numbers = #tpu.dot_dimension_numbers<[1], [1], [0], [0], [0, 0, 1, 0], [], []>} : vector<8x8xf32>, vector<136x8xf32>, vector<8x136xf32> -> vector<8x136xf32>
    %cst_34 = arith.constant -1.000000e+30 : f32
    %101 = vector.broadcast %cst_34 : f32 to vector<8x136xf32>
    %102 = arith.select %64, %100, %101 : vector<8x136xi1>, vector<8x136xf32>
    %cst_35 = arith.constant dense<0xFF800000> : vector<8xf32>
    %103 = vector.multi_reduction <maximumf>, %102, %cst_35 [1] : vector<8x136xf32> to vector<8xf32>
    %104 = vector.shape_cast %103 : vector<8xf32> to vector<8x1xf32>
    %105 = vector.broadcast %104 : vector<8x1xf32> to vector<8x136xf32>
    %106 = arith.subf %102, %105 : vector<8x136xf32>
    %107 = math.exp %106 : vector<8x136xf32>
    %cst_36 = arith.constant dense<0.000000e+00> : vector<8xf32>
    %108 = vector.multi_reduction <add>, %107, %cst_36 [1] : vector<8x136xf32> to vector<8xf32>
    %109 = vector.shape_cast %108 : vector<8xf32> to vector<8x1xf32>
    %110 = vector.broadcast %109 : vector<8x1xf32> to vector<8x136xf32>
    %111 = arith.divf %107, %110 : vector<8x136xf32>
    %cst_37 = arith.constant dense<0.000000e+00> : vector<8x8xf32>
    %112 = tpu.matmul %111, %98, %cst_37 {dimension_numbers = #tpu.dot_dimension_numbers<[1], [0], [0], [1], [0, 0, 1, 1], [], []>} : vector<8x136xf32>, vector<136x8xf32>, vector<8x8xf32> -> vector<8x8xf32>
    %113 = vector.extract_strided_slice %28 {offsets = [0, 24], sizes = [136, 8], strides = [1, 1]} : vector<136x32xf32> to vector<136x8xf32>
    %114 = vector.extract_strided_slice %29 {offsets = [0, 24], sizes = [136, 8], strides = [1, 1]} : vector<136x32xf32> to vector<136x8xf32>
    %115 = vector.extract_strided_slice %55 {offsets = [0, 24], sizes = [8, 8], strides = [1, 1]} : vector<8x32xf32> to vector<8x8xf32>
    %cst_38 = arith.constant dense<0.000000e+00> : vector<8x136xf32>
    %116 = tpu.matmul %115, %113, %cst_38 {dimension_numbers = #tpu.dot_dimension_numbers<[1], [1], [0], [0], [0, 0, 1, 0], [], []>} : vector<8x8xf32>, vector<136x8xf32>, vector<8x136xf32> -> vector<8x136xf32>
    %cst_39 = arith.constant -1.000000e+30 : f32
    %117 = vector.broadcast %cst_39 : f32 to vector<8x136xf32>
    %118 = arith.select %64, %116, %117 : vector<8x136xi1>, vector<8x136xf32>
    %cst_40 = arith.constant dense<0xFF800000> : vector<8xf32>
    %119 = vector.multi_reduction <maximumf>, %118, %cst_40 [1] : vector<8x136xf32> to vector<8xf32>
    %120 = vector.shape_cast %119 : vector<8xf32> to vector<8x1xf32>
    %121 = vector.broadcast %120 : vector<8x1xf32> to vector<8x136xf32>
    %122 = arith.subf %118, %121 : vector<8x136xf32>
    %123 = math.exp %122 : vector<8x136xf32>
    %cst_41 = arith.constant dense<0.000000e+00> : vector<8xf32>
    %124 = vector.multi_reduction <add>, %123, %cst_41 [1] : vector<8x136xf32> to vector<8xf32>
    %125 = vector.shape_cast %124 : vector<8xf32> to vector<8x1xf32>
    %126 = vector.broadcast %125 : vector<8x1xf32> to vector<8x136xf32>
    %127 = arith.divf %123, %126 : vector<8x136xf32>
    %cst_42 = arith.constant dense<0.000000e+00> : vector<8x8xf32>
    %128 = tpu.matmul %127, %114, %cst_42 {dimension_numbers = #tpu.dot_dimension_numbers<[1], [0], [0], [1], [0, 0, 1, 1], [], []>} : vector<8x136xf32>, vector<136x8xf32>, vector<8x8xf32> -> vector<8x8xf32>
    %129 = tpu.concatenate %80, %96, %112, %128 in 1 : vector<8x8xf32>, vector<8x8xf32>, vector<8x8xf32>, vector<8x8xf32> -> vector<8x32xf32>
    %c0_43 = arith.constant 0 : index
    %c0_44 = arith.constant 0 : index
    %130 = vector.load %arg7[%c0_43, %c0_44] : memref<32x32xf32, #tpu.memory_space<vmem>>, vector<32x32xf32>
    %cst_45 = arith.constant dense<0.000000e+00> : vector<8x32xf32>
    %131 = tpu.matmul %129, %130, %cst_45 {dimension_numbers = #tpu.dot_dimension_numbers<[1], [0], [0], [1], [0, 0, 1, 1], [], []>} : vector<8x32xf32>, vector<32x32xf32>, vector<8x32xf32> -> vector<8x32xf32>
    %c0_46 = arith.constant 0 : index
    %c0_47 = arith.constant 0 : index
    %132 = vector.load %arg8[%c0_46, %c0_47] : memref<1x32xf32, #tpu.memory_space<vmem>>, vector<1x32xf32>
    %133 = vector.broadcast %132 : vector<1x32xf32> to vector<8x32xf32>
    %134 = arith.addf %131, %133 : vector<8x32xf32>
    %135 = vector.extract_strided_slice %27 {offsets = [102, 0], sizes = [17, 8], strides = [1, 1]} : vector<136x96xf32> to vector<17x8xf32>
    %136 = vector.extract_strided_slice %28 {offsets = [102, 0], sizes = [17, 8], strides = [1, 1]} : vector<136x32xf32> to vector<17x8xf32>
    %cst_48 = arith.constant dense<0.000000e+00> : vector<17x17xf32>
    %137 = tpu.matmul %135, %136, %cst_48 {dimension_numbers = #tpu.dot_dimension_numbers<[1], [1], [0], [0], [0, 0, 1, 0], [], []>} : vector<17x8xf32>, vector<17x8xf32>, vector<17x17xf32> -> vector<17x17xf32>
    %cst_49 = arith.constant dense<0xFF800000> : vector<17xf32>
    %138 = vector.multi_reduction <maximumf>, %137, %cst_49 [1] : vector<17x17xf32> to vector<17xf32>
    %139 = vector.shape_cast %138 : vector<17xf32> to vector<17x1xf32>
    %140 = vector.broadcast %139 : vector<17x1xf32> to vector<17x17xf32>
    %141 = arith.subf %137, %140 : vector<17x17xf32>
    %142 = math.exp %141 : vector<17x17xf32>
    %cst_50 = arith.constant dense<0.000000e+00> : vector<17xf32>
    %143 = vector.multi_reduction <add>, %142, %cst_50 [1] : vector<17x17xf32> to vector<17xf32>
    %144 = vector.shape_cast %143 : vector<17xf32> to vector<17x1xf32>
    %145 = vector.broadcast %144 : vector<17x1xf32> to vector<17x17xf32>
    %146 = arith.divf %142, %145 : vector<17x17xf32>
    %147 = vector.extract_strided_slice %27 {offsets = [102, 8], sizes = [17, 8], strides = [1, 1]} : vector<136x96xf32> to vector<17x8xf32>
    %148 = vector.extract_strided_slice %28 {offsets = [102, 8], sizes = [17, 8], strides = [1, 1]} : vector<136x32xf32> to vector<17x8xf32>
    %cst_51 = arith.constant dense<0.000000e+00> : vector<17x17xf32>
    %149 = tpu.matmul %147, %148, %cst_51 {dimension_numbers = #tpu.dot_dimension_numbers<[1], [1], [0], [0], [0, 0, 1, 0], [], []>} : vector<17x8xf32>, vector<17x8xf32>, vector<17x17xf32> -> vector<17x17xf32>
    %cst_52 = arith.constant dense<0xFF800000> : vector<17xf32>
    %150 = vector.multi_reduction <maximumf>, %149, %cst_52 [1] : vector<17x17xf32> to vector<17xf32>
    %151 = vector.shape_cast %150 : vector<17xf32> to vector<17x1xf32>
    %152 = vector.broadcast %151 : vector<17x1xf32> to vector<17x17xf32>
    %153 = arith.subf %149, %152 : vector<17x17xf32>
    %154 = math.exp %153 : vector<17x17xf32>
    %cst_53 = arith.constant dense<0.000000e+00> : vector<17xf32>
    %155 = vector.multi_reduction <add>, %154, %cst_53 [1] : vector<17x17xf32> to vector<17xf32>
    %156 = vector.shape_cast %155 : vector<17xf32> to vector<17x1xf32>
    %157 = vector.broadcast %156 : vector<17x1xf32> to vector<17x17xf32>
    %158 = arith.divf %154, %157 : vector<17x17xf32>
    %159 = vector.extract_strided_slice %27 {offsets = [102, 16], sizes = [17, 8], strides = [1, 1]} : vector<136x96xf32> to vector<17x8xf32>
    %160 = vector.extract_strided_slice %28 {offsets = [102, 16], sizes = [17, 8], strides = [1, 1]} : vector<136x32xf32> to vector<17x8xf32>
    %cst_54 = arith.constant dense<0.000000e+00> : vector<17x17xf32>
    %161 = tpu.matmul %159, %160, %cst_54 {dimension_numbers = #tpu.dot_dimension_numbers<[1], [1], [0], [0], [0, 0, 1, 0], [], []>} : vector<17x8xf32>, vector<17x8xf32>, vector<17x17xf32> -> vector<17x17xf32>
    %cst_55 = arith.constant dense<0xFF800000> : vector<17xf32>
    %162 = vector.multi_reduction <maximumf>, %161, %cst_55 [1] : vector<17x17xf32> to vector<17xf32>
    %163 = vector.shape_cast %162 : vector<17xf32> to vector<17x1xf32>
    %164 = vector.broadcast %163 : vector<17x1xf32> to vector<17x17xf32>
    %165 = arith.subf %161, %164 : vector<17x17xf32>
    %166 = math.exp %165 : vector<17x17xf32>
    %cst_56 = arith.constant dense<0.000000e+00> : vector<17xf32>
    %167 = vector.multi_reduction <add>, %166, %cst_56 [1] : vector<17x17xf32> to vector<17xf32>
    %168 = vector.shape_cast %167 : vector<17xf32> to vector<17x1xf32>
    %169 = vector.broadcast %168 : vector<17x1xf32> to vector<17x17xf32>
    %170 = arith.divf %166, %169 : vector<17x17xf32>
    %171 = vector.extract_strided_slice %27 {offsets = [102, 24], sizes = [17, 8], strides = [1, 1]} : vector<136x96xf32> to vector<17x8xf32>
    %172 = vector.extract_strided_slice %28 {offsets = [102, 24], sizes = [17, 8], strides = [1, 1]} : vector<136x32xf32> to vector<17x8xf32>
    %cst_57 = arith.constant dense<0.000000e+00> : vector<17x17xf32>
    %173 = tpu.matmul %171, %172, %cst_57 {dimension_numbers = #tpu.dot_dimension_numbers<[1], [1], [0], [0], [0, 0, 1, 0], [], []>} : vector<17x8xf32>, vector<17x8xf32>, vector<17x17xf32> -> vector<17x17xf32>
    %cst_58 = arith.constant dense<0xFF800000> : vector<17xf32>
    %174 = vector.multi_reduction <maximumf>, %173, %cst_58 [1] : vector<17x17xf32> to vector<17xf32>
    %175 = vector.shape_cast %174 : vector<17xf32> to vector<17x1xf32>
    %176 = vector.broadcast %175 : vector<17x1xf32> to vector<17x17xf32>
    %177 = arith.subf %173, %176 : vector<17x17xf32>
    %178 = math.exp %177 : vector<17x17xf32>
    %cst_59 = arith.constant dense<0.000000e+00> : vector<17xf32>
    %179 = vector.multi_reduction <add>, %178, %cst_59 [1] : vector<17x17xf32> to vector<17xf32>
    %180 = vector.shape_cast %179 : vector<17xf32> to vector<17x1xf32>
    %181 = vector.broadcast %180 : vector<17x1xf32> to vector<17x17xf32>
    %182 = arith.divf %178, %181 : vector<17x17xf32>
    %183 = vector.shape_cast %146 : vector<17x17xf32> to vector<1x17x17xf32>
    %184 = vector.shape_cast %158 : vector<17x17xf32> to vector<1x17x17xf32>
    %185 = vector.shape_cast %170 : vector<17x17xf32> to vector<1x17x17xf32>
    %186 = vector.shape_cast %182 : vector<17x17xf32> to vector<1x17x17xf32>
    %187 = tpu.concatenate %183, %184, %185, %186 in 0 : vector<1x17x17xf32>, vector<1x17x17xf32>, vector<1x17x17xf32>, vector<1x17x17xf32> -> vector<4x17x17xf32>
    %188 = vector.extract_strided_slice %27 {offsets = [119, 0], sizes = [17, 8], strides = [1, 1]} : vector<136x96xf32> to vector<17x8xf32>
    %189 = vector.extract_strided_slice %28 {offsets = [119, 0], sizes = [17, 8], strides = [1, 1]} : vector<136x32xf32> to vector<17x8xf32>
    %cst_60 = arith.constant dense<0.000000e+00> : vector<17x17xf32>
    %190 = tpu.matmul %188, %189, %cst_60 {dimension_numbers = #tpu.dot_dimension_numbers<[1], [1], [0], [0], [0, 0, 1, 0], [], []>} : vector<17x8xf32>, vector<17x8xf32>, vector<17x17xf32> -> vector<17x17xf32>
    %cst_61 = arith.constant dense<0xFF800000> : vector<17xf32>
    %191 = vector.multi_reduction <maximumf>, %190, %cst_61 [1] : vector<17x17xf32> to vector<17xf32>
    %192 = vector.shape_cast %191 : vector<17xf32> to vector<17x1xf32>
    %193 = vector.broadcast %192 : vector<17x1xf32> to vector<17x17xf32>
    %194 = arith.subf %190, %193 : vector<17x17xf32>
    %195 = math.exp %194 : vector<17x17xf32>
    %cst_62 = arith.constant dense<0.000000e+00> : vector<17xf32>
    %196 = vector.multi_reduction <add>, %195, %cst_62 [1] : vector<17x17xf32> to vector<17xf32>
    %197 = vector.shape_cast %196 : vector<17xf32> to vector<17x1xf32>
    %198 = vector.broadcast %197 : vector<17x1xf32> to vector<17x17xf32>
    %199 = arith.divf %195, %198 : vector<17x17xf32>
    %200 = vector.extract_strided_slice %27 {offsets = [119, 8], sizes = [17, 8], strides = [1, 1]} : vector<136x96xf32> to vector<17x8xf32>
    %201 = vector.extract_strided_slice %28 {offsets = [119, 8], sizes = [17, 8], strides = [1, 1]} : vector<136x32xf32> to vector<17x8xf32>
    %cst_63 = arith.constant dense<0.000000e+00> : vector<17x17xf32>
    %202 = tpu.matmul %200, %201, %cst_63 {dimension_numbers = #tpu.dot_dimension_numbers<[1], [1], [0], [0], [0, 0, 1, 0], [], []>} : vector<17x8xf32>, vector<17x8xf32>, vector<17x17xf32> -> vector<17x17xf32>
    %cst_64 = arith.constant dense<0xFF800000> : vector<17xf32>
    %203 = vector.multi_reduction <maximumf>, %202, %cst_64 [1] : vector<17x17xf32> to vector<17xf32>
    %204 = vector.shape_cast %203 : vector<17xf32> to vector<17x1xf32>
    %205 = vector.broadcast %204 : vector<17x1xf32> to vector<17x17xf32>
    %206 = arith.subf %202, %205 : vector<17x17xf32>
    %207 = math.exp %206 : vector<17x17xf32>
    %cst_65 = arith.constant dense<0.000000e+00> : vector<17xf32>
    %208 = vector.multi_reduction <add>, %207, %cst_65 [1] : vector<17x17xf32> to vector<17xf32>
    %209 = vector.shape_cast %208 : vector<17xf32> to vector<17x1xf32>
    %210 = vector.broadcast %209 : vector<17x1xf32> to vector<17x17xf32>
    %211 = arith.divf %207, %210 : vector<17x17xf32>
    %212 = vector.extract_strided_slice %27 {offsets = [119, 16], sizes = [17, 8], strides = [1, 1]} : vector<136x96xf32> to vector<17x8xf32>
    %213 = vector.extract_strided_slice %28 {offsets = [119, 16], sizes = [17, 8], strides = [1, 1]} : vector<136x32xf32> to vector<17x8xf32>
    %cst_66 = arith.constant dense<0.000000e+00> : vector<17x17xf32>
    %214 = tpu.matmul %212, %213, %cst_66 {dimension_numbers = #tpu.dot_dimension_numbers<[1], [1], [0], [0], [0, 0, 1, 0], [], []>} : vector<17x8xf32>, vector<17x8xf32>, vector<17x17xf32> -> vector<17x17xf32>
    %cst_67 = arith.constant dense<0xFF800000> : vector<17xf32>
    %215 = vector.multi_reduction <maximumf>, %214, %cst_67 [1] : vector<17x17xf32> to vector<17xf32>
    %216 = vector.shape_cast %215 : vector<17xf32> to vector<17x1xf32>
    %217 = vector.broadcast %216 : vector<17x1xf32> to vector<17x17xf32>
    %218 = arith.subf %214, %217 : vector<17x17xf32>
    %219 = math.exp %218 : vector<17x17xf32>
    %cst_68 = arith.constant dense<0.000000e+00> : vector<17xf32>
    %220 = vector.multi_reduction <add>, %219, %cst_68 [1] : vector<17x17xf32> to vector<17xf32>
    %221 = vector.shape_cast %220 : vector<17xf32> to vector<17x1xf32>
    %222 = vector.broadcast %221 : vector<17x1xf32> to vector<17x17xf32>
    %223 = arith.divf %219, %222 : vector<17x17xf32>
    %224 = vector.extract_strided_slice %27 {offsets = [119, 24], sizes = [17, 8], strides = [1, 1]} : vector<136x96xf32> to vector<17x8xf32>
    %225 = vector.extract_strided_slice %28 {offsets = [119, 24], sizes = [17, 8], strides = [1, 1]} : vector<136x32xf32> to vector<17x8xf32>
    %cst_69 = arith.constant dense<0.000000e+00> : vector<17x17xf32>
    %226 = tpu.matmul %224, %225, %cst_69 {dimension_numbers = #tpu.dot_dimension_numbers<[1], [1], [0], [0], [0, 0, 1, 0], [], []>} : vector<17x8xf32>, vector<17x8xf32>, vector<17x17xf32> -> vector<17x17xf32>
    %cst_70 = arith.constant dense<0xFF800000> : vector<17xf32>
    %227 = vector.multi_reduction <maximumf>, %226, %cst_70 [1] : vector<17x17xf32> to vector<17xf32>
    %228 = vector.shape_cast %227 : vector<17xf32> to vector<17x1xf32>
    %229 = vector.broadcast %228 : vector<17x1xf32> to vector<17x17xf32>
    %230 = arith.subf %226, %229 : vector<17x17xf32>
    %231 = math.exp %230 : vector<17x17xf32>
    %cst_71 = arith.constant dense<0.000000e+00> : vector<17xf32>
    %232 = vector.multi_reduction <add>, %231, %cst_71 [1] : vector<17x17xf32> to vector<17xf32>
    %233 = vector.shape_cast %232 : vector<17xf32> to vector<17x1xf32>
    %234 = vector.broadcast %233 : vector<17x1xf32> to vector<17x17xf32>
    %235 = arith.divf %231, %234 : vector<17x17xf32>
    %236 = vector.shape_cast %199 : vector<17x17xf32> to vector<1x17x17xf32>
    %237 = vector.shape_cast %211 : vector<17x17xf32> to vector<1x17x17xf32>
    %238 = vector.shape_cast %223 : vector<17x17xf32> to vector<1x17x17xf32>
    %239 = vector.shape_cast %235 : vector<17x17xf32> to vector<1x17x17xf32>
    %240 = tpu.concatenate %236, %237, %238, %239 in 0 : vector<1x17x17xf32>, vector<1x17x17xf32>, vector<1x17x17xf32>, vector<1x17x17xf32> -> vector<4x17x17xf32>
    %241 = vector.shape_cast %187 : vector<4x17x17xf32> to vector<1x4x17x17xf32>
    %242 = vector.shape_cast %240 : vector<4x17x17xf32> to vector<1x4x17x17xf32>
    %243 = tpu.concatenate %241, %242 in 0 : vector<1x4x17x17xf32>, vector<1x4x17x17xf32> -> vector<2x4x17x17xf32>
    %c0_72 = arith.constant 0 : index
    %c0_73 = arith.constant 0 : index
    %c0_74 = arith.constant 0 : index
    %c0_75 = arith.constant 0 : index
    %244 = vector.load %arg16[%c0_72, %c0_73, %c0_74, %c0_75] : memref<2x4x17x17xf32, #tpu.memory_space<vmem>>, vector<2x4x17x17xf32>
    tpu.vector_store %arg16[%c0_72, %c0_73, %c0_74, %c0_75], %243 {strides = array<i32>} : memref<2x4x17x17xf32, #tpu.memory_space<vmem>>, vector<2x4x17x17xf32>,
    %c0_76 = arith.constant 0 : index
    %c0_77 = arith.constant 0 : index
    %245 = vector.load %arg2[%c0_76, %c0_77] : memref<8x32xf32, #tpu.memory_space<vmem>>, vector<8x32xf32>
    %246 = arith.addf %245, %134 : vector<8x32xf32>
    %c0_78 = arith.constant 0 : index
    %c0_79 = arith.constant 0 : index
    %247 = vector.load %arg9[%c0_78, %c0_79] : memref<1x32xf32, #tpu.memory_space<vmem>>, vector<1x32xf32>
    %c0_80 = arith.constant 0 : index
    %c0_81 = arith.constant 0 : index
    %248 = vector.load %arg10[%c0_80, %c0_81] : memref<1x32xf32, #tpu.memory_space<vmem>>, vector<1x32xf32>
    %cst_82 = arith.constant dense<0.000000e+00> : vector<8xf32>
    %249 = vector.multi_reduction <add>, %246, %cst_82 [1] : vector<8x32xf32> to vector<8xf32>
    %250 = vector.shape_cast %249 : vector<8xf32> to vector<8x1xf32>
    %cst_83 = arith.constant 3.200000e+01 : f32
    %251 = vector.broadcast %cst_83 : f32 to vector<8x1xf32>
    %252 = arith.divf %250, %251 : vector<8x1xf32>
    %253 = vector.broadcast %252 : vector<8x1xf32> to vector<8x32xf32>
    %254 = arith.subf %246, %253 : vector<8x32xf32>
    %255 = arith.mulf %254, %254 : vector<8x32xf32>
    %cst_84 = arith.constant dense<0.000000e+00> : vector<8xf32>
    %256 = vector.multi_reduction <add>, %255, %cst_84 [1] : vector<8x32xf32> to vector<8xf32>
    %257 = vector.shape_cast %256 : vector<8xf32> to vector<8x1xf32>
    %cst_85 = arith.constant 3.200000e+01 : f32
    %258 = vector.broadcast %cst_85 : f32 to vector<8x1xf32>
    %259 = arith.divf %257, %258 : vector<8x1xf32>
    %cst_86 = arith.constant 9.99999974E-6 : f32
    %260 = vector.broadcast %cst_86 : f32 to vector<8x1xf32>
    %261 = arith.addf %259, %260 : vector<8x1xf32>
    %262 = math.rsqrt %261 : vector<8x1xf32>
    %263 = vector.broadcast %262 : vector<8x1xf32> to vector<8x32xf32>
    %264 = arith.mulf %254, %263 : vector<8x32xf32>
    %265 = vector.broadcast %247 : vector<1x32xf32> to vector<8x32xf32>
    %266 = arith.mulf %264, %265 : vector<8x32xf32>
    %267 = vector.broadcast %248 : vector<1x32xf32> to vector<8x32xf32>
    %268 = arith.addf %266, %267 : vector<8x32xf32>
    %c0_87 = arith.constant 0 : index
    %c0_88 = arith.constant 0 : index
    %269 = vector.load %arg11[%c0_87, %c0_88] : memref<32x64xf32, #tpu.memory_space<vmem>>, vector<32x64xf32>
    %cst_89 = arith.constant dense<0.000000e+00> : vector<8x64xf32>
    %270 = tpu.matmul %268, %269, %cst_89 {dimension_numbers = #tpu.dot_dimension_numbers<[1], [0], [0], [1], [0, 0, 1, 1], [], []>} : vector<8x32xf32>, vector<32x64xf32>, vector<8x64xf32> -> vector<8x64xf32>
    %c0_90 = arith.constant 0 : index
    %c0_91 = arith.constant 0 : index
    %271 = vector.load %arg12[%c0_90, %c0_91] : memref<1x64xf32, #tpu.memory_space<vmem>>, vector<1x64xf32>
    %272 = vector.broadcast %271 : vector<1x64xf32> to vector<8x64xf32>
    %273 = arith.addf %270, %272 : vector<8x64xf32>
    %cst_92 = arith.constant -1.702000e+00 : f32
    %274 = vector.broadcast %cst_92 : f32 to vector<8x64xf32>
    %275 = arith.mulf %274, %273 : vector<8x64xf32>
    %276 = math.exp %275 : vector<8x64xf32>
    %cst_93 = arith.constant 1.000000e+00 : f32
    %277 = vector.broadcast %cst_93 : f32 to vector<8x64xf32>
    %278 = arith.addf %277, %276 : vector<8x64xf32>
    %cst_94 = arith.constant 1.000000e+00 : f32
    %279 = vector.broadcast %cst_94 : f32 to vector<8x64xf32>
    %280 = arith.divf %279, %278 : vector<8x64xf32>
    %281 = arith.mulf %273, %280 : vector<8x64xf32>
    %c0_95 = arith.constant 0 : index
    %c0_96 = arith.constant 0 : index
    %282 = vector.load %arg13[%c0_95, %c0_96] : memref<64x32xf32, #tpu.memory_space<vmem>>, vector<64x32xf32>
    %cst_97 = arith.constant dense<0.000000e+00> : vector<8x32xf32>
    %283 = tpu.matmul %281, %282, %cst_97 {dimension_numbers = #tpu.dot_dimension_numbers<[1], [0], [0], [1], [0, 0, 1, 1], [], []>} : vector<8x64xf32>, vector<64x32xf32>, vector<8x32xf32> -> vector<8x32xf32>
    %284 = arith.addf %246, %283 : vector<8x32xf32>
    %c0_98 = arith.constant 0 : index
    %c0_99 = arith.constant 0 : index
    %285 = vector.load %arg14[%c0_98, %c0_99] : memref<1x32xf32, #tpu.memory_space<vmem>>, vector<1x32xf32>
    %286 = vector.broadcast %285 : vector<1x32xf32> to vector<8x32xf32>
    %287 = arith.addf %284, %286 : vector<8x32xf32>
    %c0_100 = arith.constant 0 : index
    %c0_101 = arith.constant 0 : index
    %288 = vector.load %arg15[%c0_100, %c0_101] : memref<8x32xf32, #tpu.memory_space<vmem>>, vector<8x32xf32>
    tpu.vector_store %arg15[%c0_100, %c0_101], %287 {strides = array<i32>} : memref<8x32xf32, #tpu.memory_space<vmem>>, vector<8x32xf32>,
    return
  }
  func.func @transform_0(%arg0: i32) -> (i32, i32) {
    %c0_i32 = arith.constant 0 : i32
    %c0_i32_0 = arith.constant 0 : i32
    %c0_i32_1 = arith.constant 0 : i32
    return %c0_i32, %c0_i32_0 : i32, i32
  }
  func.func @transform_1(%arg0: i32) -> (i32, i32) {
    %c0_i32 = arith.constant 0 : i32
    %c0_i32_0 = arith.constant 0 : i32
    %c0_i32_1 = arith.constant 0 : i32
    return %c0_i32, %c0_i32_0 : i32, i32
  }
  func.func @transform_2(%arg0: i32) -> (i32, i32) {
    %c0_i32 = arith.constant 0 : i32
    %c0_i32_0 = arith.constant 0 : i32
    %c0_i32_1 = arith.constant 0 : i32
    return %c0_i32, %c0_i32_0 : i32, i32
  }
  func.func @transform_3(%arg0: i32) -> (i32, i32) {
    %c0_i32 = arith.constant 0 : i32
    %c0_i32_0 = arith.constant 0 : i32
    %c0_i32_1 = arith.constant 0 : i32
    return %c0_i32, %c0_i32_0 : i32, i32
  }
  func.func @transform_4(%arg0: i32) -> (i32, i32) {
    %c0_i32 = arith.constant 0 : i32
    %c0_i32_0 = arith.constant 0 : i32
    %c0_i32_1 = arith.constant 0 : i32
    return %c0_i32, %c0_i32_0 : i32, i32
  }
  func.func @transform_5(%arg0: i32) -> (i32, i32) {
    %c0_i32 = arith.constant 0 : i32
    %c0_i32_0 = arith.constant 0 : i32
    %c0_i32_1 = arith.constant 0 : i32
    return %c0_i32, %c0_i32_0 : i32, i32
  }
  func.func @transform_6(%arg0: i32) -> (i32, i32) {
    %c0_i32 = arith.constant 0 : i32
    %c0_i32_0 = arith.constant 0 : i32
    %c0_i32_1 = arith.constant 0 : i32
    return %c0_i32, %c0_i32_0 : i32, i32
  }
  func.func @transform_7(%arg0: i32) -> (i32, i32) {
    %c0_i32 = arith.constant 0 : i32
    %c0_i32_0 = arith.constant 0 : i32
    %c0_i32_1 = arith.constant 0 : i32
    return %c0_i32, %c0_i32_0 : i32, i32
  }
  func.func @transform_8(%arg0: i32) -> (i32, i32) {
    %c0_i32 = arith.constant 0 : i32
    %c0_i32_0 = arith.constant 0 : i32
    %c0_i32_1 = arith.constant 0 : i32
    return %c0_i32, %c0_i32_0 : i32, i32
  }
  func.func @transform_9(%arg0: i32) -> (i32, i32) {
    %c0_i32 = arith.constant 0 : i32
    %c0_i32_0 = arith.constant 0 : i32
    %c0_i32_1 = arith.constant 0 : i32
    return %c0_i32, %c0_i32_0 : i32, i32
  }
  func.func @transform_10(%arg0: i32) -> (i32, i32) {
    %c0_i32 = arith.constant 0 : i32
    %c0_i32_0 = arith.constant 0 : i32
    %c0_i32_1 = arith.constant 0 : i32
    return %c0_i32, %c0_i32_0 : i32, i32
  }
  func.func @transform_11(%arg0: i32) -> (i32, i32) {
    %c0_i32 = arith.constant 0 : i32
    %c0_i32_0 = arith.constant 0 : i32
    %c0_i32_1 = arith.constant 0 : i32
    return %c0_i32, %c0_i32_0 : i32, i32
  }
  func.func @transform_12(%arg0: i32) -> (i32, i32) {
    %c0_i32 = arith.constant 0 : i32
    %c0_i32_0 = arith.constant 0 : i32
    %c0_i32_1 = arith.constant 0 : i32
    return %c0_i32, %c0_i32_0 : i32, i32
  }
  func.func @transform_13(%arg0: i32) -> (i32, i32) {
    %c0_i32 = arith.constant 0 : i32
    %c0_i32_0 = arith.constant 0 : i32
    %c0_i32_1 = arith.constant 0 : i32
    return %c0_i32, %c0_i32_0 : i32, i32
  }
  func.func @transform_14(%arg0: i32) -> (i32, i32) {
    %c0_i32 = arith.constant 0 : i32
    %c0_i32_0 = arith.constant 0 : i32
    %c0_i32_1 = arith.constant 0 : i32
    return %c0_i32, %c0_i32_0 : i32, i32
  }
  func.func @transform_15(%arg0: i32) -> (i32, i32, i32, i32) {
    %c0_i32 = arith.constant 0 : i32
    %c0_i32_0 = arith.constant 0 : i32
    %c0_i32_1 = arith.constant 0 : i32
    %c0_i32_2 = arith.constant 0 : i32
    %c0_i32_3 = arith.constant 0 : i32
    return %c0_i32, %c0_i32_0, %c0_i32_1, %c0_i32_2 : i32, i32, i32, i32
  }
}

</mosaic_0001>

<bundles_post_ra>
// kernel: tpu_custom_call.1
= control target key start
LH: loop header
LB: loop body
LE: loop exit
PB: predicated region body
PF: predicated region fallthrough
CT: control target
= control target key end

     0   :  { %vm74_vm0 = vcmask 261120   ;;  %s5689_s0 = inlined_call_operand.vmem [shape: f32[136,32], index: 0, kind: input, shape index: {}]   ;;  %s5690_s1 = inlined_call_operand.vmem [shape: f32[8,32], index: 1, kind: input, shape index: {}]   ;;  %s5691_s2 = inlined_call_operand.vmem [shape: f32[1,32], index: 2, kind: input, shape index: {}]   ;;  %s5692_s3 = inlined_call_operand.vmem [shape: f32[1,32], index: 3, kind: input, shape index: {}]   ;;  %s5693_s4 = inlined_call_operand.vmem [shape: f32[32,96], index: 4, kind: input, shape index: {}]   ;;  %s5694_s5 = inlined_call_operand.vmem [shape: f32[1,96], index: 5, kind: input, shape index: {}]   ;;  %s5695_s6 = inlined_call_operand.vmem [shape: f32[32,32], index: 6, kind: input, shape index: {}]   ;;  %s5696_s7 = inlined_call_operand.vmem [shape: f32[1,32], index: 7, kind: input, shape index: {}]   ;;  %s5697_s8 = inlined_call_operand.vmem [shape: f32[1,32], index: 8, kind: input, shape index: {}]   ;;  %s5698_s9 = inlined_call_operand.vmem [shape: f32[1,32], index: 9, kind: input, shape index: {}]   ;;  %s5699_s10 = inlined_call_operand.vmem [shape: f32[32,64], index: 10, kind: input, shape index: {}]   ;;  %s5700_s11 = inlined_call_operand.vmem [shape: f32[1,64], index: 11, kind: input, shape index: {}]   ;;  %s5701_s12 = inlined_call_operand.vmem [shape: f32[64,32], index: 12, kind: input, shape index: {}]   ;;  %s5702_s13 = inlined_call_operand.vmem [shape: f32[1,32], index: 13, kind: input, shape index: {}]   ;;  %s5703_s14 = inlined_call_operand.hbm [shape: f32[8,32], index: 14, kind: output, shape index: {0}]   ;;  %s5704_s15 = inlined_call_operand.vmem [shape: f32[2,4,17,17], index: 15, kind: output, shape index: {1}]  }
   0x1   :  { %v57_v0 = vld [vmem:[%s5689_s0] sm:$0xff]  ;;  %v59_v1 = vld [vmem:[%s5689_s0 + $0x10] sm:$0xff]  ;;  %v58_v2 = vld [vmem:[%s5689_s0 + $0x8] sm:$0xff] }
   0x2   :  { %v75_v3 = vsel %vm74_vm0, %v57_v0, 0.0  ;;  %v81_v4 = vsel %vm74_vm0, %v59_v1, 0.0  ;;  %v60_v5 = vld [vmem:[%s5689_s0 + $0x18] sm:$0xff]  ;;  %v78_v6 = vsel %vm74_vm0, %v58_v2, 0.0  ;;  %v61_v8 = vld [vmem:[%s5689_s0 + $0x20] sm:$0xff]  ;;  %v62_v9 = vld [vmem:[%s5689_s0 + $0x28] sm:$0xff] }
   0x3   :  { %76 = vadd.xlane.f32.xlu0 %v75_v3  ;;  %82 = vadd.xlane.f32.xlu1 %v81_v4  ;;  %v84_v7 = vsel %vm74_vm0, %v60_v5, 0.0 }
   0x4   :  { %21 = vsyncpa [#allocation3], 0  ;;  %v87_v10 = vsel %vm74_vm0, %v61_v8, 0.0  ;;  %v90_v11 = vsel %vm74_vm0, %v62_v9, 0.0  ;;  %v4070_v12 = vld [vmem:[%s5689_s0 + $0x30] sm:$0xff]  ;;  %v4075_v13 = vld [vmem:[%s5689_s0 + $0x38] sm:$0xff] }
   0x5   :  { %v93_v14 = vsel %vm74_vm0, %v4070_v12, 0.0  ;;  %v96_v15 = vsel %vm74_vm0, %v4075_v13, 0.0  ;;  %v4084_v16 = vld [vmem:[%s5689_s0 + $0x40] sm:$0xff]  ;;  %v4089_v17 = vld [vmem:[%s5689_s0 + $0x48] sm:$0xff]  ;;  %v4098_v20 = vld [vmem:[%s5689_s0 + $0x50] sm:$0xff]  ;;  %vm3947_vm1 = vmmov 0  }
   0x6   :  { %v99_v18 = vsel %vm74_vm0, %v4084_v16, 0.0  ;;  %v102_v19 = vsel %vm74_vm0, %v4089_v17, 0.0  ;;  %v4103_v21 = vld [vmem:[%s5689_s0 + $0x58] sm:$0xff]  ;;  %v105_v22 = vsel %vm74_vm0, %v4098_v20, 0.0  ;;  %v4112_v24 = vld [vmem:[%s5689_s0 + $0x68] sm:$0xff]  ;;  %v4117_v25 = vld [vmem:[%s5689_s0 + $0x60] sm:$0xff] }
   0x7   :  { %79 = vadd.xlane.f32.xlu0 %v78_v6  ;;  %85 = vadd.xlane.f32.xlu1 %v84_v7  ;;  %v108_v23 = vsel %vm74_vm0, %v4103_v21, 0.0  ;;  %v114_v26 = vsel %vm74_vm0, %v4112_v24, 0.0  ;;  %v111_v27 = vsel %vm74_vm0, %v4117_v25, 0.0  ;;  %v4126_v28 = vld [vmem:[%s5689_s0 + $0x78] sm:$0xff]  ;;  %v4131_v29 = vld [vmem:[%s5689_s0 + $0x70] sm:$0xff]  ;;  %s3948_s19 = smov 96  }
   0x8   :  { %v120_v30 = vsel %vm74_vm0, %v4126_v28, 0.0  ;;  %v117_v31 = vsel %vm74_vm0, %v4131_v29, 0.0  ;;  %vm703_vm2 = vcmask 64512   ;;  %s3950_s20 = smov 88   ;;  %s3951_s21 = smov 120   ;;  %vm1914_vm9 = vcmask 1041408  }
   0x9   :  { %s3953_s22 = smov 80   ;;  %s3954_s23 = smov 112   ;;  %vm2464_vm10 = vcmask 1040384   ;;  %vm1826_vm11 = vcmask 130048   ;;  %vm1828_vm12 = vcmask 195584   ;;  %vm2018_vm13 = vcmask 138240  }
   0xa   :  { %s3955_s24 = smov 48   ;;  %s3956_s25 = smov 72   ;;  %vm2025_vm14 = vcmask 131072   ;;  %vm3166_vm15 = vcmask 523264  }
   0xb   :  { %88 = vadd.xlane.f32.xlu0 %v87_v10  ;;  %91 = vadd.xlane.f32.xlu1 %v90_v11  ;;  %s3957_s26 = smov 104   ;;  %s3958_s27 = smov 40  }
   0xc   :  { %s3959_s28 = smov 16   ;;  %s3960_s29 = smov 8  }
   0xf   :  { %94 = vadd.xlane.f32.xlu0 %v93_v14  ;;  %97 = vadd.xlane.f32.xlu1 %v96_v15 }
  0x13   :  { %100 = vadd.xlane.f32.xlu0 %v99_v18  ;;  %103 = vadd.xlane.f32.xlu1 %v102_v19 }
  0x17   :  { %106 = vadd.xlane.f32.xlu0 %v105_v22  ;;  %109 = vadd.xlane.f32.xlu1 %v108_v23 }
  0x1b   :  { %115 = vadd.xlane.f32.xlu1 %v114_v26  ;;  %112 = vadd.xlane.f32.xlu0 %v111_v27 }
  0x1f   :  { %121 = vadd.xlane.f32.xlu1 %v120_v30  ;;  %118 = vadd.xlane.f32.xlu0 %v117_v31 }
  0x8c   :  { %v77_v32 = vpop.xlane.xlu0 %76  ;;  %v83_v33 = vpop.xlane.xlu1 %82 }
  0x8d   :  { %v127_v34 = vmul.f32 0.03125, %v77_v32  ;;  %v129_v35 = vmul.f32 0.03125, %v83_v33 }
  0x8f   :  { %v4137_v36 = vsub.f32 %v57_v0, %v127_v34  ;;  %v4139_v37 = vsub.f32 %v59_v1, %v129_v35 }
  0x90   :  { %v80_v38 = vpop.xlane.xlu0 %79  ;;  %v86_v39 = vpop.xlane.xlu1 %85 }
  0x91   :  { %v128_v40 = vmul.f32 0.03125, %v80_v38  ;;  %v130_v41 = vmul.f32 0.03125, %v86_v39  ;;  %v161_v42 = vmul.f32 %v4137_v36, %v4137_v36  ;;  %v163_v43 = vmul.f32 %v4139_v37, %v4139_v37 }
  0x93   :  { %v4145_v44 = vsub.f32 %v58_v2, %v128_v40  ;;  %v4147_v45 = vsub.f32 %v60_v5, %v130_v41  ;;  %v178_v46 = vsel %vm74_vm0, %v161_v42, 0.0  ;;  %v184_v49 = vsel %vm74_vm0, %v163_v43, 0.0 }
  0x94   :  { %179 = vadd.xlane.f32.xlu0 %v178_v46  ;;  %v89_v47 = vpop.xlane.xlu0 %88  ;;  %v92_v48 = vpop.xlane.xlu1 %91 }
  0x95   :  { %v131_v50 = vmul.f32 0.03125, %v89_v47  ;;  %v132_v51 = vmul.f32 0.03125, %v92_v48  ;;  %v162_v52 = vmul.f32 %v4145_v44, %v4145_v44  ;;  %v164_v53 = vmul.f32 %v4147_v45, %v4147_v45 }
  0x97   :  { %v4155_v54 = vsub.f32 %v61_v8, %v131_v50  ;;  %v4157_v55 = vsub.f32 %v62_v9, %v132_v51  ;;  %v181_v56 = vsel %vm74_vm0, %v162_v52, 0.0  ;;  %v187_v59 = vsel %vm74_vm0, %v164_v53, 0.0 }
  0x98   :  { %185 = vadd.xlane.f32.xlu0 %v184_v49  ;;  %182 = vadd.xlane.f32.xlu1 %v181_v56  ;;  %v95_v57 = vpop.xlane.xlu0 %94  ;;  %v98_v58 = vpop.xlane.xlu1 %97  ;;  %v3946_v56 = vmov 0.0  }
  0x99   :  { %v133_v60 = vmul.f32 0.03125, %v95_v57  ;;  %v134_v61 = vmul.f32 0.03125, %v98_v58  ;;  %v165_v62 = vmul.f32 %v4155_v54, %v4155_v54  ;;  %v166_v63 = vmul.f32 %v4157_v55, %v4157_v55  ;;  %3514 = vmatprep.subr.mxu0 %v3946_v56  ;;  %3573 = vmatprep.subr.mxu1 %v3946_v56  ;;  %v54_v58 = vld [vmem:[%s5693_s4 + $0x10] sm:$0xff] }
  0x9a   :  { %3522 = vmatprep.mubr.msk.f32.mxu0 %vm3947_vm1, %v3946_v56  ;;  %3581 = vmatprep.mubr.msk.f32.mxu1 %vm3947_vm1, %v3946_v56 }
  0x9b   :  { %v4166_v0 = vsub.f32 %v4070_v12, %v133_v60  ;;  %v4169_v1 = vsub.f32 %v4075_v13, %v134_v61  ;;  %v190_v2 = vsel %vm74_vm0, %v165_v62, 0.0  ;;  %v193_v5 = vsel %vm74_vm0, %v166_v63, 0.0  ;;  %v53_v60 = vld [vmem:[%s5693_s4 + $0x8] sm:$0xff]  ;;  %v52_v62 = vld [vmem:[%s5693_s4] sm:$0xff] }
  0x9c   :  { %188 = vadd.xlane.f32.xlu1 %v187_v59  ;;  %191 = vadd.xlane.f32.xlu0 %v190_v2  ;;  %v101_v3 = vpop.xlane.xlu0 %100  ;;  %v104_v4 = vpop.xlane.xlu1 %103  ;;  %v4245_v59 = vld [vmem:[%s5690_s1] sm:$0xff] }
  0x9d   :  { %v135_v6 = vmul.f32 0.03125, %v101_v3  ;;  %v136_v7 = vmul.f32 0.03125, %v104_v4  ;;  %v167_v8 = vmul.f32 %v4166_v0, %v4166_v0  ;;  %v168_v9 = vmul.f32 %v4169_v1, %v4169_v1 }
  0x9e   :  { %v551_v61 = vsel %vm74_vm0, %v4245_v59, 0.0 }
  0x9f   :  { %v4178_v10 = vsub.f32 %v4084_v16, %v135_v6  ;;  %v4181_v11 = vsub.f32 %v4089_v17, %v136_v7  ;;  %v196_v12 = vsel %vm74_vm0, %v167_v8, 0.0  ;;  %v199_v15 = vsel %vm74_vm0, %v168_v9, 0.0 }
  0xa0   :  { %194 = vadd.xlane.f32.xlu1 %v193_v5  ;;  %197 = vadd.xlane.f32.xlu0 %v196_v12  ;;  %v107_v13 = vpop.xlane.xlu0 %106  ;;  %v110_v14 = vpop.xlane.xlu1 %109 }
  0xa1   :  { %v137_v18 = vmul.f32 0.03125, %v107_v13  ;;  %v138_v19 = vmul.f32 0.03125, %v110_v14  ;;  %v169_v22 = vmul.f32 %v4178_v10, %v4178_v10  ;;  %v170_v16 = vmul.f32 %v4181_v11, %v4181_v11 }
  0xa3   :  { %v4190_v23 = vsub.f32 %v4098_v20, %v137_v18  ;;  %v4193_v17 = vsub.f32 %v4103_v21, %v138_v19  ;;  %v202_v26 = vsel %vm74_vm0, %v169_v22, 0.0  ;;  %v205_v30 = vsel %vm74_vm0, %v170_v16, 0.0  ;;  %v4204_v21 = vld [vmem:[%s5689_s0 + $0x80] sm:$0xff]  ;;  %s3952_s0 = smov 56  }
  0xa4   :  { %200 = vadd.xlane.f32.xlu1 %v199_v15  ;;  %203 = vadd.xlane.f32.xlu0 %v202_v26  ;;  %v116_v27 = vpop.xlane.xlu1 %115  ;;  %v113_v31 = vpop.xlane.xlu0 %112  ;;  %v123_v42 = vsel %vm74_vm0, %v4204_v21, 0.0 }
  0xa5   :  { %v140_v32 = vmul.f32 0.03125, %v116_v27  ;;  %v171_v33 = vmul.f32 %v4190_v23, %v4190_v23  ;;  %v139_v34 = vmul.f32 0.03125, %v113_v31  ;;  %v172_v20 = vmul.f32 %v4193_v17, %v4193_v17 }
  0xa7   :  { %v4207_v35 = vsub.f32 %v4112_v24, %v140_v32  ;;  %v208_v38 = vsel %vm74_vm0, %v171_v33, 0.0  ;;  %v4211_v39 = vsub.f32 %v4117_v25, %v139_v34  ;;  %v211_v41 = vsel %vm74_vm0, %v172_v20, 0.0  ;;  %v4270_v20 = vld [vmem:[%s5691_s2] ss:$0 sm:$0xff] }
  0xa8   :  { %206 = vadd.xlane.f32.xlu1 %v205_v30  ;;  %209 = vadd.xlane.f32.xlu0 %v208_v38  ;;  %v122_v40 = vpop.xlane.xlu1 %121  ;;  %v119_v43 = vpop.xlane.xlu0 %118 }
  0xa9   :  { %v142_v46 = vmul.f32 0.03125, %v122_v40  ;;  %v141_v47 = vmul.f32 0.03125, %v119_v43  ;;  %v174_v24 = vmul.f32 %v4207_v35, %v4207_v35  ;;  %v173_v48 = vmul.f32 %v4211_v39, %v4211_v39  ;;  %v4276_v43 = vld [vmem:[%s5692_s3] ss:$0 sm:$0xff] }
  0xab   :  { %v4221_v25 = vsub.f32 %v4126_v28, %v142_v46  ;;  %v4224_v49 = vsub.f32 %v4131_v29, %v141_v47  ;;  %v217_v50 = vsel %vm74_vm0, %v174_v24, 0.0  ;;  %v214_v51 = vsel %vm74_vm0, %v173_v48, 0.0  ;;  %v55_v28 = vld [vmem:[%s5693_s4 + $0x18] sm:$0xff] }
  0xac   :  { %212 = vadd.xlane.f32.xlu1 %v211_v41  ;;  %124 = vadd.xlane.f32.xlu0 %v123_v42 }
  0xad   :  { %v176_v52 = vmul.f32 %v4221_v25, %v4221_v25  ;;  %v175_v53 = vmul.f32 %v4224_v49, %v4224_v49  ;;  %3515 = vmatpush3.msra.mxu0 %v55_v28  ;;  %3574 = vmatpush3.msra.mxu1 %v55_v28 }
  0xae   :  { %3516 = vmatprep.subr.mxu0 %v3946_v56  ;;  %3575 = vmatprep.subr.mxu1 %v3946_v56 }
  0xaf   :  { %v223_v29 = vsel %vm74_vm0, %v176_v52, 0.0  ;;  %v220_v57 = vsel %vm74_vm0, %v175_v53, 0.0  ;;  %3517 = vmatpush3.msra.mxu0 %v54_v58  ;;  %3576 = vmatpush3.msra.mxu1 %v54_v58 }
  0xb0   :  { %218 = vadd.xlane.f32.xlu0 %v217_v50  ;;  %215 = vadd.xlane.f32.xlu1 %v214_v51 }
  0xb1   :  { %3518 = vmatprep.subr.mxu0 %v3946_v56  ;;  %3577 = vmatprep.subr.mxu1 %v3946_v56 }
  0xb2   :  { %3519 = vmatpush3.msra.mxu0 %v53_v60  ;;  %3578 = vmatpush3.msra.mxu1 %v53_v60 }
  0xb3   :  { %3520 = vmatprep.subr.mxu0 %v3946_v56  ;;  %3579 = vmatprep.subr.mxu1 %v3946_v56 }
  0xb4   :  { %224 = vadd.xlane.f32.xlu0 %v223_v29  ;;  %221 = vadd.xlane.f32.xlu1 %v220_v57 }
  0xb5   :  { %3521 = vmatpush3.msra.mxu0 %v52_v62  ;;  %3580 = vmatpush3.msra.mxu1 %v52_v62 }
  0xb6   :  { %741 = vmatprep.subr.mxu0 %v3946_v56  ;;  %885 = vmatprep.subr.mxu1 %v3946_v56 }
  0xb8   :  { %552 = vadd.xlane.f32.xlu1 %v551_v61 }
 0x11d   :  { %v180_v63 = vpop.xlane.xlu0 %179 }
 0x11e   :  { %v229_v2 = vmul.f32 0.03125, %v180_v63 }
 0x120   :  { %v246_v3 = vadd.f32 1e-05, %v229_v2 }
 0x121   :  { %v183_v4 = vpop.xlane.xlu1 %182  ;;  %v186_v5 = vpop.xlane.xlu0 %185 }
 0x122   :  { %3762 = vrsqrt.f32 %v246_v3  ;;  %v230_v6 = vmul.f32 0.03125, %v183_v4  ;;  %v231_v7 = vmul.f32 0.03125, %v186_v5 }
 0x124   :  { %v247_v8 = vadd.f32 1e-05, %v230_v6  ;;  %v248_v9 = vadd.f32 1e-05, %v231_v7 }
 0x125   :  { %v189_v12 = vpop.xlane.xlu1 %188  ;;  %v192_v13 = vpop.xlane.xlu0 %191 }
 0x126   :  { %3764 = vrsqrt.f32 %v247_v8  ;;  %v232_v14 = vmul.f32 0.03125, %v189_v12  ;;  %v233_v15 = vmul.f32 0.03125, %v192_v13 }
 0x127   :  { %3766 = vrsqrt.f32 %v248_v9 }
 0x128   :  { %v249_v18 = vadd.f32 1e-05, %v232_v14  ;;  %v250_v19 = vadd.f32 1e-05, %v233_v15 }
 0x129   :  { %v195_v22 = vpop.xlane.xlu1 %194  ;;  %v198_v16 = vpop.xlane.xlu0 %197 }
 0x12a   :  { %3768 = vrsqrt.f32 %v249_v18  ;;  %v234_v26 = vmul.f32 0.03125, %v195_v22  ;;  %v235_v30 = vmul.f32 0.03125, %v198_v16 }
 0x12b   :  { %3770 = vrsqrt.f32 %v250_v19 }
 0x12c   :  { %v251_v27 = vadd.f32 1e-05, %v234_v26  ;;  %v252_v38 = vadd.f32 1e-05, %v235_v30 }
 0x12d   :  { %v201_v31 = vpop.xlane.xlu1 %200  ;;  %v204_v32 = vpop.xlane.xlu0 %203 }
 0x12e   :  { %v236_v34 = vmul.f32 0.03125, %v201_v31  ;;  %3772 = vrsqrt.f32 %v251_v27  ;;  %v237_v48 = vmul.f32 0.03125, %v204_v32 }
 0x12f   :  { %v3763_v33 = vpop.eup %3762  ;;  %3774 = vrsqrt.f32 %v252_v38 }
 0x130   :  { %v280_v40 = vmul.f32 %v3763_v33, %v4137_v36  ;;  %v253_v24 = vadd.f32 1e-05, %v236_v34  ;;  %v254_v60 = vadd.f32 1e-05, %v237_v48 }
 0x131   :  { %v207_v41 = vpop.xlane.xlu1 %206  ;;  %v210_v42 = vpop.xlane.xlu0 %209 }
 0x132   :  { %v303_v46 = vmul.f32 %v4270_v20, %v280_v40  ;;  %3776 = vrsqrt.f32 %v253_v24  ;;  %v238_v61 = vmul.f32 0.03125, %v207_v41  ;;  %v239_v6 = vmul.f32 0.03125, %v210_v42 }
 0x133   :  { %v3765_v47 = vpop.eup %3764  ;;  %3778 = vrsqrt.f32 %v254_v60 }
 0x134   :  { %v3767_v50 = vpop.eup %3766  ;;  %v326_v51 = vadd.f32 %v4276_v43, %v303_v46  ;;  %v281_v52 = vmul.f32 %v3765_v47, %v4145_v44  ;;  %v255_v5 = vadd.f32 1e-05, %v238_v61  ;;  %v256_v13 = vadd.f32 1e-05, %v239_v6 }
 0x135   :  { %v213_v53 = vpop.xlane.xlu1 %212  ;;  %v125_v36 = vpop.xlane.xlu0 %124  ;;  %v282_v28 = vmul.f32 %v3767_v50, %v4139_v37 }
 0x136   :  { %v143_v29 = vmul.f32 0.03125, %v125_v36  ;;  %3523 = vmatmul.mubr.msk.f32.vlgmr.msra.gmra.mxu0 %vm74_vm0, %v326_v51  ;;  %v304_v57 = vmul.f32 %v4270_v20, %v281_v52  ;;  %v240_v14 = vmul.f32 0.03125, %v213_v53  ;;  %3780 = vrsqrt.f32 %v255_v5 }
 0x137   :  { %v3769_v58 = vpop.eup %3768  ;;  %3525 = vmatprep.mubr.msk.f32.mxu0 %vm3947_vm1, %v3946_v56  ;;  %v305_v63 = vmul.f32 %v4270_v20, %v282_v28  ;;  %3782 = vrsqrt.f32 %v256_v13 }
 0x138   :  { %v4287_v62 = vsub.f32 %v4204_v21, %v143_v29  ;;  %v327_v44 = vadd.f32 %v4276_v43, %v304_v57  ;;  %v283_v37 = vmul.f32 %v3769_v58, %v4147_v45  ;;  %v3771_v2 = vpop.eup %3770  ;;  %v257_v26 = vadd.f32 1e-05, %v240_v14 }
 0x139   :  { %v216_v3 = vpop.xlane.xlu1 %215  ;;  %v328_v7 = vadd.f32 %v4276_v43, %v305_v63  ;;  %v284_v45 = vmul.f32 %v3771_v2, %v4155_v54  ;;  %v219_v31 = vpop.xlane.xlu0 %218 }
 0x13a   :  { %3526 = vmatmul.mubr.msk.f32.gmra.mxu0 %vm74_vm0, %v327_v44  ;;  %v177_v4 = vmul.f32 %v4287_v62, %v4287_v62  ;;  %v306_v8 = vmul.f32 %v4270_v20, %v283_v37  ;;  %v241_v27 = vmul.f32 0.03125, %v216_v3  ;;  %3784 = vrsqrt.f32 %v257_v26 }
 0x13b   :  { %3528 = vmatprep.mubr.msk.f32.mxu0 %vm3947_vm1, %v3946_v56  ;;  %v3773_v9 = vpop.eup %3772  ;;  %v307_v18 = vmul.f32 %v4270_v20, %v284_v45  ;;  %v242_v41 = vmul.f32 0.03125, %v219_v31 }
 0x13c   :  { %v226_v21 = vsel %vm74_vm0, %v177_v4, 0.0  ;;  %v329_v15 = vadd.f32 %v4276_v43, %v306_v8  ;;  %v285_v19 = vmul.f32 %v3773_v9, %v4157_v55  ;;  %v3775_v22 = vpop.eup %3774  ;;  %v258_v40 = vadd.f32 1e-05, %v241_v27 }
 0x13d   :  { %v222_v12 = vpop.xlane.xlu1 %221  ;;  %227 = vadd.xlane.f32.xlu0 %v226_v21  ;;  %v330_v33 = vadd.f32 %v4276_v43, %v307_v18  ;;  %v286_v34 = vmul.f32 %v3775_v22, %v4166_v0  ;;  %v259_v24 = vadd.f32 1e-05, %v242_v41  ;;  %v225_v50 = vpop.xlane.xlu0 %224 }
 0x13e   :  { %3529 = vmatmul.mubr.msk.f32.gmra.mxu0 %vm74_vm0, %v328_v7  ;;  %v308_v55 = vmul.f32 %v4270_v20, %v285_v19  ;;  %3786 = vrsqrt.f32 %v258_v40  ;;  %v243_v48 = vmul.f32 0.03125, %v222_v12 }
 0x13f   :  { %3531 = vmatprep.mubr.msk.f32.mxu0 %vm3947_vm1, %v3946_v56  ;;  %v3777_v30 = vpop.eup %3776  ;;  %v309_v47 = vmul.f32 %v4270_v20, %v286_v34  ;;  %3788 = vrsqrt.f32 %v259_v24 }
 0x140   :  { %v3779_v42 = vpop.eup %3778  ;;  %v331_v46 = vadd.f32 %v4276_v43, %v308_v55  ;;  %v287_v0 = vmul.f32 %v3777_v30, %v4169_v1  ;;  %v244_v1 = vmul.f32 0.03125, %v225_v50  ;;  %v260_v29 = vadd.f32 1e-05, %v243_v48 }
 0x141   :  { %v553_v16 = vpop.xlane.xlu1 %552  ;;  %v332_v51 = vadd.f32 %v4276_v43, %v309_v47  ;;  %v288_v53 = vmul.f32 %v3779_v42, %v4178_v10 }
 0x142   :  { %v554_v54 = vmul.f32 0.03125, %v553_v16  ;;  %3532 = vmatmul.mubr.msk.f32.gmra.mxu0 %vm74_vm0, %v329_v15  ;;  %v310_v52 = vmul.f32 %v4270_v20, %v287_v0  ;;  %v261_v61 = vadd.f32 1e-05, %v244_v1  ;;  %3790 = vrsqrt.f32 %v260_v29 }
 0x143   :  { %3534 = vmatprep.mubr.msk.f32.mxu0 %vm3947_vm1, %v3946_v56  ;;  %v3781_v36 = vpop.eup %3780  ;;  %v311_v58 = vmul.f32 %v4270_v20, %v288_v53 }
 0x144   :  { %v4311_v32 = vsub.f32 %v4245_v59, %v554_v54  ;;  %v3783_v28 = vpop.eup %3782  ;;  %v333_v57 = vadd.f32 %v4276_v43, %v310_v52  ;;  %v289_v60 = vmul.f32 %v3781_v36, %v4181_v11  ;;  %3792 = vrsqrt.f32 %v261_v61 }
 0x145   :  { %v334_v44 = vadd.f32 %v4276_v43, %v311_v58  ;;  %v290_v37 = vmul.f32 %v3783_v28, %v4190_v23 }
 0x146   :  { %3535 = vmatmul.mubr.msk.f32.gmra.mxu0 %vm74_vm0, %v330_v33  ;;  %v556_v38 = vmul.f32 %v4311_v32, %v4311_v32  ;;  %v312_v63 = vmul.f32 %v4270_v20, %v289_v60 }
 0x147   :  { %3537 = vmatprep.mubr.msk.f32.mxu0 %vm3947_vm1, %v3946_v56  ;;  %v3785_v10 = vpop.eup %3784  ;;  %v313_v3 = vmul.f32 %v4270_v20, %v290_v37 }
 0x148   :  { %v557_v59 = vsel %vm74_vm0, %v556_v38, 0.0  ;;  %v335_v2 = vadd.f32 %v4276_v43, %v312_v63  ;;  %v291_v4 = vmul.f32 %v3785_v10, %v4193_v17 }
 0x149   :  { %558 = vadd.xlane.f32.xlu1 %v557_v59  ;;  %v336_v23 = vadd.f32 %v4276_v43, %v313_v3 }
 0x14a   :  { %3538 = vmatmul.mubr.msk.f32.gmra.mxu0 %vm74_vm0, %v331_v46  ;;  %v314_v6 = vmul.f32 %v4270_v20, %v291_v4 }
 0x14b   :  { %3540 = vmatprep.mubr.msk.f32.mxu0 %vm3947_vm1, %v3946_v56  ;;  %v3787_v11 = vpop.eup %3786 }
 0x14c   :  { %v3789_v5 = vpop.eup %3788  ;;  %v292_v21 = vmul.f32 %v3787_v11, %v4211_v39  ;;  %v337_v7 = vadd.f32 %v4276_v43, %v314_v6 }
 0x14d   :  { %v293_v8 = vmul.f32 %v3789_v5, %v4207_v35 }
 0x14e   :  { %3541 = vmatmul.mubr.msk.f32.gmra.mxu0 %vm74_vm0, %v332_v51  ;;  %v315_v17 = vmul.f32 %v4270_v20, %v292_v21 }
 0x14f   :  { %3543 = vmatprep.mubr.msk.f32.mxu0 %vm3947_vm1, %v3946_v56  ;;  %v3791_v45 = vpop.eup %3790  ;;  %v316_v39 = vmul.f32 %v4270_v20, %v293_v8 }
 0x150   :  { %v338_v9 = vadd.f32 %v4276_v43, %v315_v17  ;;  %v294_v12 = vmul.f32 %v3791_v45, %v4224_v49 }
 0x151   :  { %v3793_v13 = vpop.eup %3792  ;;  %v339_v35 = vadd.f32 %v4276_v43, %v316_v39 }
 0x152   :  { %3544 = vmatmul.mubr.msk.f32.gmra.mxu0 %vm74_vm0, %v333_v57  ;;  %v317_v14 = vmul.f32 %v4270_v20, %v294_v12  ;;  %v295_v15 = vmul.f32 %v3793_v13, %v4221_v25 }
 0x153   :  { %3546 = vmatprep.mubr.msk.f32.mxu0 %vm3947_vm1, %v3946_v56 }
 0x154   :  { %v340_v18 = vadd.f32 %v4276_v43, %v317_v14  ;;  %v318_v49 = vmul.f32 %v4270_v20, %v295_v15 }
 0x156   :  { %3547 = vmatmul.mubr.msk.f32.gmra.mxu0 %vm74_vm0, %v334_v44  ;;  %v341_v19 = vadd.f32 %v4276_v43, %v318_v49 }
 0x157   :  { %3549 = vmatprep.mubr.msk.f32.mxu0 %vm3947_vm1, %v3946_v56 }
 0x15a   :  { %3550 = vmatmul.mubr.msk.f32.gmra.mxu0 %vm74_vm0, %v335_v2  ;;  %v4399_v2 = vld [vmem:[%s5694_s5] ss:$0 sm:$0xff]  ;;  %s3949_s5 = smov 64  }
 0x15b   :  { %3552 = vmatprep.mubr.msk.f32.mxu0 %vm3947_vm1, %v3946_v56 }
 0x15e   :  { %3553 = vmatmul.mubr.msk.f32.gmra.mxu0 %vm74_vm0, %v336_v23 }
 0x15f   :  { %3555 = vmatprep.mubr.msk.f32.mxu0 %vm3947_vm1, %v3946_v56 }
 0x162   :  { %3556 = vmatmul.mubr.msk.f32.gmra.mxu0 %vm74_vm0, %v337_v7 }
 0x163   :  { %3558 = vmatprep.mubr.msk.f32.mxu0 %vm3947_vm1, %v3946_v56 }
 0x166   :  { %3559 = vmatmul.mubr.msk.f32.gmra.mxu0 %vm74_vm0, %v338_v9 }
 0x167   :  { %3561 = vmatprep.mubr.msk.f32.mxu0 %vm3947_vm1, %v3946_v56 }
 0x16a   :  { %3562 = vmatmul.mubr.msk.f32.gmra.mxu0 %vm74_vm0, %v339_v35 }
 0x16b   :  { %3564 = vmatprep.mubr.msk.f32.mxu0 %vm3947_vm1, %v3946_v56 }
 0x16e   :  { %3565 = vmatmul.mubr.msk.f32.gmra.mxu0 %vm74_vm0, %v340_v18 }
 0x16f   :  { %3567 = vmatprep.mubr.msk.f32.mxu0 %vm3947_vm1, %v3946_v56 }
 0x172   :  { %3568 = vmatmul.mubr.msk.f32.gmra.mxu0 %vm74_vm0, %v341_v19 }
 0x173   :  { %3570 = vmatprep.mubr.msk.f32.mxu0 %vm3947_vm1, %v3946_v56 }
 0x1c6   :  { %v228_v25 = vpop.xlane.xlu0 %227 }
 0x1c7   :  { %v245_v22 = vmul.f32 0.03125, %v228_v25 }
 0x1c9   :  { %v262_v16 = vadd.f32 1e-05, %v245_v22 }
 0x1cb   :  { %3794 = vrsqrt.f32 %v262_v16 }
 0x1d2   :  { %v559_v54 = vpop.xlane.xlu1 %558 }
 0x1d3   :  { %v560_v26 = vmul.f32 0.03125, %v559_v54 }
 0x1d5   :  { %v561_v27 = vadd.f32 1e-05, %v560_v26 }
 0x1d7   :  { %3796 = vrsqrt.f32 %v561_v27 }
 0x1d8   :  { %v3795_v30 = vpop.eup %3794 }
 0x1d9   :  { %v296_v31 = vmul.f32 %v3795_v30, %v4287_v62 }
 0x1db   :  { %v319_v33 = vmul.f32 %v4270_v20, %v296_v31 }
 0x1dd   :  { %v342_v55 = vadd.f32 %v4276_v43, %v319_v33 }
 0x1df   :  { %3571 = vmatmul.mubr.msk.f32.gmra.mxu0 %vm74_vm0, %v342_v55 }
 0x1e0   :  { %805 = vmatprep.mubr.f32.mxu0 %v3946_v56 }
 0x1e4   :  { %v3797_v34 = vpop.eup %3796 }
 0x1e5   :  { %v563_v38 = vmul.f32 %v3797_v34, %v4311_v32 }
 0x1e7   :  { %v564_v40 = vmul.f32 %v4270_v20, %v563_v38 }
 0x1e9   :  { %v565_v41 = vadd.f32 %v4276_v43, %v564_v40 }
 0x1eb   :  { %3582 = vmatmul.mubr.msk.f32.vlgmr.msra.gmra.mxu1 %vm74_vm0, %v565_v41 }
 0x1f6   :  { %v4394_v42 = vpop.f32.mrf.mxu0 }
 0x1f7   :  { %v4478_v19 = vadd.f32 %v4399_v2, %v4394_v42 }
 0x1f8   :  { %v3524_v62 = vpop.f32.mrf.mxu0 }
 0x1fa   :  { %v471_v59 = vpop.f32.mrf.mxu0 }
 0x1fb   :  { %v4467_v18 = vadd.f32 %v4399_v2, %v471_v59 }
 0x1fc   :  { %v3527_v46 = vpop.f32.mrf.mxu0 }
 0x1fe   :  { %v476_v47 = vpop.f32.mrf.mxu0 }
 0x1ff   :  { %v4470_v49 = vadd.f32 %v4399_v2, %v476_v47 }
 0x200   :  { %v3530_v0 = vpop.f32.mrf.mxu0 }
 0x202   :  { %v481_v24 = vpop.f32.mrf.mxu0 }
 0x203   :  { %v4457_v14 = vadd.f32 %v4399_v2, %v481_v24 }
 0x204   :  { %v3533_v48 = vpop.f32.mrf.mxu0 }
 0x206   :  { %v486_v50 = vpop.f32.mrf.mxu0 }
 0x207   :  { %v4460_v15 = vadd.f32 %v4399_v2, %v486_v50 }
 0x208   :  { %v3536_v51 = vpop.f32.mrf.mxu0 }
 0x20a   :  { %v491_v52 = vpop.f32.mrf.mxu0 }
 0x20b   :  { %v4447_v13 = vadd.f32 %v4399_v2, %v491_v52 }
 0x20c   :  { %v3539_v53 = vpop.f32.mrf.mxu0 }
 0x20e   :  { %v496_v32 = vpop.f32.mrf.mxu0 }
 0x20f   :  { %v4450_v35 = vadd.f32 %v4399_v2, %v496_v32  ;;  %v639_v32 = vlaneseq }
 0x210   :  { %v3542_v36 = vpop.f32.mrf.mxu0 }
 0x211   :  { %v643_v36 = vshrl.u32 %v639_v32, 7 }
 0x212   :  { %v501_v20 = vpop.f32.mrf.mxu0 }
 0x213   :  { %v4437_v39 = vadd.f32 %v4399_v2, %v501_v20  ;;  %v640_v20 = vand.u32 127, %v639_v32 }
 0x214   :  { %v3545_v1 = vpop.f32.mrf.mxu0 }
 0x215   :  { %v644_v1 = vmul.u32 17, %v643_v36 }
 0x216   :  { %v506_v43 = vpop.f32.mrf.mxu0 }
 0x217   :  { %v4440_v12 = vadd.f32 %v4399_v2, %v506_v43  ;;  %v641_v43 = vadd.s32 128, %v640_v20  ;;  %vm645_vm5 = vcmp.ge.s32.totalorder %v640_v20, %v644_v1 }
 0x218   :  { %v3548_v28 = vpop.f32.mrf.mxu0 }
 0x219   :  { %v647_v28 = vadd.s32 17, %v644_v1  ;;  %vm646_vm3 = vcmp.ge.s32.totalorder %v641_v43, %v644_v1 }
 0x21a   :  { %v511_v29 = vpop.f32.mrf.mxu0 }
 0x21b   :  { %v4427_v45 = vadd.f32 %v4399_v2, %v511_v29  ;;  %vm649_vm4 = vcmp.lt.s32.totalorder %v641_v43, %v647_v28  ;;  %vm648_vm6 = vcmp.lt.s32.totalorder %v640_v20, %v647_v28 }
 0x21c   :  { %v3551_v57 = vpop.f32.mrf.mxu0  ;;  %vm4545_vm7 = vmand %vm646_vm3, %vm649_vm4 }
 0x21d   :  { %vm4549_vm8 = vmand %vm645_vm5, %vm648_vm6 }
 0x21e   :  { %v516_v58 = vpop.f32.mrf.mxu0 }
 0x21f   :  { %v4430_v9 = vadd.f32 %v4399_v2, %v516_v58 }
 0x220   :  { %v3554_v60 = vpop.f32.mrf.mxu0 }
 0x222   :  { %v521_v61 = vpop.f32.mrf.mxu0 }
 0x223   :  { %v4417_v17 = vadd.f32 %v4399_v2, %v521_v61 }
 0x224   :  { %v3557_v10 = vpop.f32.mrf.mxu0 }
 0x226   :  { %v526_v44 = vpop.f32.mrf.mxu0 }
 0x227   :  { %v4420_v8 = vadd.f32 %v4399_v2, %v526_v44 }
 0x228   :  { %v3560_v63 = vpop.f32.mrf.mxu0 }
 0x22a   :  { %v531_v37 = vpop.f32.mrf.mxu0 }
 0x22b   :  { %v4407_v6 = vadd.f32 %v4399_v2, %v531_v37 }
 0x22c   :  { %v3563_v11 = vpop.f32.mrf.mxu0 }
 0x22e   :  { %v536_v3 = vpop.f32.mrf.mxu0 }
 0x22f   :  { %v4402_v4 = vadd.f32 %v4399_v2, %v536_v3 }
 0x230   :  { %v3566_v5 = vpop.f32.mrf.mxu0 }
 0x231   :  { %697 = vrot.lane.b32.xlu1 %v4402_v4, %s3948_s19 }
 0x232   :  { %v541_v23 = vpop.f32.mrf.mxu0 }
 0x233   :  { %v4410_v21 = vadd.f32 %v4399_v2, %v541_v23 }
 0x234   :  { %v3569_v7 = vpop.f32.mrf.mxu0 }
 0x235   :  { %695 = vrot.lane.b32.xlu1 %v4407_v6, %s3948_s19  ;;  %699 = vrot.lane.b32.xlu0 %v4410_v21, %s3948_s19 }
 0x239   :  { %693 = vrot.lane.b32.xlu1 %v4420_v8, %s3948_s19  ;;  %691 = vrot.lane.b32.xlu0 %v4417_v17, %s3948_s19 }
 0x23d   :  { %689 = vrot.lane.b32.xlu1 %v4430_v9, %s3948_s19  ;;  %687 = vrot.lane.b32.xlu0 %v4427_v45, %s3948_s19 }
 0x241   :  { %685 = vrot.lane.b32.xlu1 %v4440_v12, %s3948_s19  ;;  %683 = vrot.lane.b32.xlu0 %v4437_v39, %s3948_s19 }
 0x245   :  { %681 = vrot.lane.b32.xlu1 %v4450_v35, %s3948_s19  ;;  %679 = vrot.lane.b32.xlu0 %v4447_v13, %s3948_s19 }
 0x249   :  { %677 = vrot.lane.b32.xlu1 %v4460_v15, %s3948_s19  ;;  %675 = vrot.lane.b32.xlu0 %v4457_v14, %s3948_s19 }
 0x24d   :  { %673 = vrot.lane.b32.xlu1 %v4470_v49, %s3948_s19  ;;  %671 = vrot.lane.b32.xlu0 %v4467_v18, %s3948_s19 }
 0x251   :  { %669 = vrot.lane.b32.xlu1 %v4478_v19, %s3948_s19 }
 0x29f   :  { %v546_v25 = vpop.f32.mrf.mxu0 }
 0x2a0   :  { %v4483_v22 = vadd.f32 %v4399_v2, %v546_v25 }
 0x2a1   :  { %v3572_v16 = vpop.f32.mrf.mxu0 }
 0x2a2   :  { %701 = vrot.lane.b32.xlu0 %v4483_v22, %s3948_s19 }
 0x2a3   :  { %v698_v54 = vpop.permute.xlu1 %697 }
 0x2a6   :  { %861 = vrot.lane.b32.xlu0 %v4410_v21, %s3949_s5 }
 0x2a7   :  { %v700_v26 = vpop.permute.xlu0 %699  ;;  %v696_v30 = vpop.permute.xlu1 %695 }
 0x2a8   :  { %3289 = vmatpush1.xpose.msk.msra.mxu0 %vm703_vm2, %v700_v26 }
 0x2a9   :  { %743 = vmatprep.subr.mxu0 %v3946_v56 }
 0x2aa   :  { %859 = vrot.lane.b32.xlu0 %v4402_v4, %s3949_s5 }
 0x2ab   :  { %v635_v27 = vpop.f32.mrf.mxu1  ;;  %v694_v33 = vpop.permute.xlu1 %693 }
 0x2ac   :  { %3290 = vmatpush1.xpose.msk.msra.mxu0 %vm703_vm2, %v698_v54  ;;  %v692_v55 = vpop.permute.xlu0 %691  ;;  %v4537_v50 = vadd.f32 %v4399_v2, %v635_v27 }
 0x2ad   :  { %v3583_v31 = vpop.f32.mrf.mxu1  ;;  %745 = vmatprep.subr.mxu0 %v3946_v56 }
 0x2ae   :  { %857 = vrot.lane.b32.xlu0 %v4407_v6, %s3949_s5 }
 0x2af   :  { %v690_v34 = vpop.permute.xlu1 %689 }
 0x2b0   :  { %3291 = vmatpush1.xpose.msk.msra.mxu0 %vm703_vm2, %v696_v30  ;;  %v688_v38 = vpop.permute.xlu0 %687 }
 0x2b1   :  { %747 = vmatprep.subr.mxu0 %v3946_v56 }
 0x2b2   :  { %853 = vrot.lane.b32.xlu0 %v4417_v17, %s3949_s5 }
 0x2b3   :  { %v686_v40 = vpop.permute.xlu1 %685 }
 0x2b4   :  { %3292 = vmatpush1.xpose.msk.msra.mxu0 %vm703_vm2, %v694_v33  ;;  %v684_v41 = vpop.permute.xlu0 %683 }
 0x2b5   :  { %749 = vmatprep.subr.mxu0 %v3946_v56 }
 0x2b6   :  { %843 = vrot.lane.b32.xlu0 %v4450_v35, %s3949_s5 }
 0x2b7   :  { %v682_v42 = vpop.permute.xlu1 %681 }
 0x2b8   :  { %3293 = vmatpush1.xpose.msk.msra.mxu0 %vm703_vm2, %v692_v55  ;;  %v680_v62 = vpop.permute.xlu0 %679 }
 0x2b9   :  { %751 = vmatprep.subr.mxu0 %v3946_v56 }
 0x2ba   :  { %839 = vrot.lane.b32.xlu0 %v4460_v15, %s3949_s5 }
 0x2bb   :  { %v678_v59 = vpop.permute.xlu1 %677 }
 0x2bc   :  { %3294 = vmatpush1.xpose.msk.msra.mxu0 %vm703_vm2, %v690_v34  ;;  %v676_v46 = vpop.permute.xlu0 %675 }
 0x2bd   :  { %753 = vmatprep.subr.mxu0 %v3946_v56 }
 0x2be   :  { %835 = vrot.lane.b32.xlu0 %v4470_v49, %s3949_s5 }
 0x2bf   :  { %v674_v47 = vpop.permute.xlu1 %673 }
 0x2c0   :  { %3295 = vmatpush1.xpose.msk.msra.mxu0 %vm703_vm2, %v688_v38  ;;  %v672_v0 = vpop.permute.xlu0 %671 }
 0x2c1   :  { %755 = vmatprep.subr.mxu0 %v3946_v56 }
 0x2c2   :  { %831 = vrot.lane.b32.xlu0 %v4478_v19, %s3949_s5 }
 0x2c3   :  { %v670_v24 = vpop.permute.xlu1 %669 }
 0x2c4   :  { %3296 = vmatpush1.xpose.msk.msra.mxu0 %vm703_vm2, %v686_v40 }
 0x2c5   :  { %757 = vmatprep.subr.mxu0 %v3946_v56 }
 0x2c8   :  { %3297 = vmatpush1.xpose.msk.msra.mxu0 %vm703_vm2, %v684_v41 }
 0x2c9   :  { %759 = vmatprep.subr.mxu0 %v3946_v56 }
 0x2cc   :  { %3298 = vmatpush1.xpose.msk.msra.mxu0 %vm703_vm2, %v682_v42 }
 0x2cd   :  { %761 = vmatprep.subr.mxu0 %v3946_v56 }
 0x2d0   :  { %3299 = vmatpush1.xpose.msk.msra.mxu0 %vm703_vm2, %v680_v62 }
 0x2d1   :  { %763 = vmatprep.subr.mxu0 %v3946_v56 }
 0x2d4   :  { %3300 = vmatpush1.xpose.msk.msra.mxu0 %vm703_vm2, %v678_v59 }
 0x2d5   :  { %765 = vmatprep.subr.mxu0 %v3946_v56 }
 0x2d8   :  { %3301 = vmatpush1.xpose.msk.msra.mxu0 %vm703_vm2, %v676_v46 }
 0x2d9   :  { %767 = vmatprep.subr.mxu0 %v3946_v56 }
 0x2dc   :  { %3302 = vmatpush1.xpose.msk.msra.mxu0 %vm703_vm2, %v674_v47 }
 0x2dd   :  { %769 = vmatprep.subr.mxu0 %v3946_v56 }
 0x2e0   :  { %3303 = vmatpush1.xpose.msk.msra.mxu0 %vm703_vm2, %v672_v0 }
 0x2e1   :  { %771 = vmatprep.subr.mxu0 %v3946_v56 }
 0x2e4   :  { %3304 = vmatpush1.xpose.msk.msra.mxu0 %vm703_vm2, %v670_v24 }
 0x2e5   :  { %803 = vmatprep.subr.mxu0 %v3946_v56 }
 0x314   :  { %v702_v48 = vpop.permute.xlu0 %701 }
 0x315   :  { %3305 = vmatpush2.xpose.msk.msra.mxu0 %vm703_vm2, %v702_v48 }
 0x316   :  { %1171 = vmatprep.subr.mxu0 %v3946_v56 }
 0x318   :  { %3306 = vmatmul.mubr.msk.f32.vlgmr.msra.gmra.mxu0 %vm703_vm2, %v4537_v50  ;;  %v862_v51 = vpop.permute.xlu0 %861 }
 0x319   :  { %886 = vmatpush1.msra.mxu1 %v862_v51 }
 0x31a   :  { %887 = vmatprep.subr.mxu1 %v3946_v56 }
 0x31c   :  { %v860_v52 = vpop.permute.xlu0 %859 }
 0x31d   :  { %888 = vmatpush1.msra.mxu1 %v860_v52 }
 0x31e   :  { %889 = vmatprep.subr.mxu1 %v3946_v56 }
 0x320   :  { %v858_v53 = vpop.permute.xlu0 %857 }
 0x321   :  { %890 = vmatpush1.msra.mxu1 %v858_v53 }
 0x322   :  { %891 = vmatprep.subr.mxu1 %v3946_v56 }
 0x324   :  { %v854_v7 = vpop.permute.xlu0 %853 }
 0x328   :  { %v844_v54 = vpop.permute.xlu0 %843 }
 0x32c   :  { %v840_v34 = vpop.permute.xlu0 %839 }
 0x330   :  { %v836_v40 = vpop.permute.xlu0 %835 }
 0x334   :  { %v832_v62 = vpop.permute.xlu0 %831 }
 0x3d8   :  { %v807_v29 = vpop.f32.mrf.mxu0 }
 0x3d9   :  { %v812_v10 = vsel %vm4549_vm8, %v807_v29, -1e+30 }
 0x3da   :  { %v809_v60 = vpop.f32.mrf.mxu0 }
 0x3db   :  { %v813_v61 = vsel %vm4545_vm7, %v809_v60, -1e+30 }
 0x3dc   :  { %v814_v44 = vsel %vm703_vm2, %v813_v61, -inf }
 0x3dd   :  { %v815_v63 = vmax.f32 %v812_v10, %v814_v44 }
 0x3df   :  { %816 = vmax.xlane.f32.xlu1 %v815_v63 }
 0x3f0   :  { %855 = vrot.lane.b32.xlu1 %v4420_v8, %s3949_s5 }
 0x3f4   :  { %851 = vrot.lane.b32.xlu1 %v4430_v9, %s3949_s5 }
 0x3f8   :  { %849 = vrot.lane.b32.xlu1 %v4427_v45, %s3949_s5 }
 0x3fc   :  { %847 = vrot.lane.b32.xlu1 %v4440_v12, %s3949_s5 }
 0x400   :  { %845 = vrot.lane.b32.xlu1 %v4437_v39, %s3949_s5 }
 0x404   :  { %841 = vrot.lane.b32.xlu1 %v4447_v13, %s3949_s5 }
 0x408   :  { %837 = vrot.lane.b32.xlu1 %v4457_v14, %s3949_s5 }
 0x40c   :  { %833 = vrot.lane.b32.xlu1 %v4467_v18, %s3949_s5 }
 0x410   :  { %863 = vrot.lane.b32.xlu1 %v4483_v22, %s3949_s5 }
 0x414   :  { %985 = vrot.lane.b32.xlu1 %v4402_v4, %s3950_s20 }
 0x418   :  { %981 = vrot.lane.b32.xlu1 %v4420_v8, %s3950_s20 }
 0x41c   :  { %977 = vrot.lane.b32.xlu1 %v4430_v9, %s3950_s20 }
 0x420   :  { %973 = vrot.lane.b32.xlu1 %v4440_v12, %s3950_s20 }
 0x424   :  { %969 = vrot.lane.b32.xlu1 %v4450_v35, %s3950_s20 }
 0x428   :  { %965 = vrot.lane.b32.xlu1 %v4460_v15, %s3950_s20 }
 0x42c   :  { %961 = vrot.lane.b32.xlu1 %v4470_v49, %s3950_s20 }
 0x430   :  { %957 = vrot.lane.b32.xlu1 %v4478_v19, %s3950_s20 }
 0x434   :  { %955 = vrot.lane.b32.xlu1 %v4537_v50, %s3951_s21 }
 0x438   :  { %1147 = vrot.lane.b32.xlu1 %v4410_v21, %s3952_s0 }
 0x43c   :  { %1145 = vrot.lane.b32.xlu1 %v4402_v4, %s3952_s0 }
 0x440   :  { %1143 = vrot.lane.b32.xlu1 %v4407_v6, %s3952_s0 }
 0x444   :  { %1139 = vrot.lane.b32.xlu1 %v4417_v17, %s3952_s0 }
 0x448   :  { %1129 = vrot.lane.b32.xlu1 %v4450_v35, %s3952_s0 }
 0x44c   :  { %1125 = vrot.lane.b32.xlu1 %v4460_v15, %s3952_s0 }
 0x450   :  { %1121 = vrot.lane.b32.xlu1 %v4470_v49, %s3952_s0 }
 0x454   :  { %1117 = vrot.lane.b32.xlu1 %v4478_v19, %s3952_s0 }
 0x468   :  { %v817_v37 = vpop.xlane.xlu1 %816 }
 0x469   :  { %v818_v11 = vsub.f32 %v812_v10, %v817_v37  ;;  %v819_v2 = vsub.f32 %v813_v61, %v817_v37 }
 0x46b   :  { %v820_v3 = vmul.f32 1.442695, %v818_v11  ;;  %v822_v5 = vmul.f32 1.442695, %v819_v2 }
 0x46c   :  { %v856_v23 = vpop.permute.xlu1 %855 }
 0x46d   :  { %3798 = vpow2.f32 %v820_v3  ;;  %892 = vmatpush1.msra.mxu1 %v856_v23 }
 0x46e   :  { %3800 = vpow2.f32 %v822_v5  ;;  %893 = vmatprep.subr.mxu1 %v3946_v56 }
 0x46f   :  { %894 = vmatpush1.msra.mxu1 %v854_v7 }
 0x470   :  { %895 = vmatprep.subr.mxu1 %v3946_v56  ;;  %v852_v25 = vpop.permute.xlu1 %851 }
 0x471   :  { %896 = vmatpush1.msra.mxu1 %v852_v25 }
 0x472   :  { %897 = vmatprep.subr.mxu1 %v3946_v56 }
 0x474   :  { %v850_v16 = vpop.permute.xlu1 %849 }
 0x475   :  { %898 = vmatpush1.msra.mxu1 %v850_v16 }
 0x476   :  { %899 = vmatprep.subr.mxu1 %v3946_v56 }
 0x478   :  { %v848_v26 = vpop.permute.xlu1 %847 }
 0x479   :  { %900 = vmatpush1.msra.mxu1 %v848_v26 }
 0x47a   :  { %v4614_v27 = vpop.eup %3798  ;;  %901 = vmatprep.subr.mxu1 %v3946_v56 }
 0x47b   :  { %v3801_v30 = vpop.eup %3800 }
 0x47c   :  { %v846_v31 = vpop.permute.xlu1 %845  ;;  %v824_v33 = vsel %vm703_vm2, %v3801_v30, 0.0 }
 0x47d   :  { %902 = vmatpush1.msra.mxu1 %v846_v31  ;;  %v825_v55 = vadd.f32 %v4614_v27, %v824_v33 }
 0x47e   :  { %903 = vmatprep.subr.mxu1 %v3946_v56 }
 0x47f   :  { %826 = vadd.xlane.f32.xlu0 %v825_v55  ;;  %904 = vmatpush1.msra.mxu1 %v844_v54 }
 0x480   :  { %905 = vmatprep.subr.mxu1 %v3946_v56  ;;  %v842_v38 = vpop.permute.xlu1 %841 }
 0x481   :  { %906 = vmatpush1.msra.mxu1 %v842_v38 }
 0x482   :  { %907 = vmatprep.subr.mxu1 %v3946_v56 }
 0x483   :  { %908 = vmatpush1.msra.mxu1 %v840_v34 }
 0x484   :  { %909 = vmatprep.subr.mxu1 %v3946_v56  ;;  %v838_v41 = vpop.permute.xlu1 %837 }
 0x485   :  { %910 = vmatpush1.msra.mxu1 %v838_v41 }
 0x486   :  { %911 = vmatprep.subr.mxu1 %v3946_v56 }
 0x487   :  { %912 = vmatpush1.msra.mxu1 %v836_v40 }
 0x488   :  { %913 = vmatprep.subr.mxu1 %v3946_v56  ;;  %v834_v42 = vpop.permute.xlu1 %833 }
 0x489   :  { %914 = vmatpush1.msra.mxu1 %v834_v42 }
 0x48a   :  { %915 = vmatprep.subr.mxu1 %v3946_v56 }
 0x48b   :  { %916 = vmatpush1.msra.mxu1 %v832_v62 }
 0x48c   :  { %947 = vmatprep.subr.mxu1 %v3946_v56  ;;  %v864_v59 = vpop.permute.xlu1 %863 }
 0x48d   :  { %948 = vmatpush2.msra.mxu1 %v864_v59 }
 0x48e   :  { %1027 = vmatprep.subr.mxu1 %v3946_v56 }
 0x490   :  { %v986_v46 = vpop.permute.xlu1 %985 }
 0x494   :  { %v982_v47 = vpop.permute.xlu1 %981 }
 0x495   :  { %987 = vrot.lane.b32.xlu0 %v4410_v21, %s3950_s20 }
 0x498   :  { %v978_v0 = vpop.permute.xlu1 %977 }
 0x499   :  { %983 = vrot.lane.b32.xlu0 %v4407_v6, %s3950_s20 }
 0x49c   :  { %v974_v24 = vpop.permute.xlu1 %973 }
 0x49d   :  { %979 = vrot.lane.b32.xlu0 %v4417_v17, %s3950_s20 }
 0x4a0   :  { %v970_v48 = vpop.permute.xlu1 %969 }
 0x4a1   :  { %975 = vrot.lane.b32.xlu0 %v4427_v45, %s3950_s20 }
 0x4a4   :  { %v966_v51 = vpop.permute.xlu1 %965 }
 0x4a5   :  { %971 = vrot.lane.b32.xlu0 %v4437_v39, %s3950_s20 }
 0x4a8   :  { %v962_v52 = vpop.permute.xlu1 %961 }
 0x4a9   :  { %967 = vrot.lane.b32.xlu0 %v4447_v13, %s3950_s20 }
 0x4ac   :  { %v958_v53 = vpop.permute.xlu1 %957 }
 0x4ad   :  { %963 = vrot.lane.b32.xlu0 %v4457_v14, %s3950_s20 }
 0x4b0   :  { %v4642_v32 = vpop.permute.xlu1 %955 }
 0x4b1   :  { %959 = vrot.lane.b32.xlu0 %v4467_v18, %s3950_s20 }
 0x4b4   :  { %v1148_v36 = vpop.permute.xlu1 %1147 }
 0x4b5   :  { %989 = vrot.lane.b32.xlu0 %v4483_v22, %s3950_s20  ;;  %1172 = vmatpush1.msra.mxu0 %v1148_v36 }
 0x4b6   :  { %1173 = vmatprep.subr.mxu0 %v3946_v56 }
 0x4b8   :  { %v1146_v20 = vpop.permute.xlu1 %1145 }
 0x4b9   :  { %1174 = vmatpush1.msra.mxu0 %v1146_v20 }
 0x4ba   :  { %1175 = vmatprep.subr.mxu0 %v3946_v56 }
 0x4bc   :  { %v1144_v1 = vpop.permute.xlu1 %1143 }
 0x4bd   :  { %1176 = vmatpush1.msra.mxu0 %v1144_v1 }
 0x4be   :  { %1177 = vmatprep.subr.mxu0 %v3946_v56 }
 0x4c0   :  { %v1140_v41 = vpop.permute.xlu1 %1139 }
 0x4c4   :  { %v1130_v59 = vpop.permute.xlu1 %1129 }
 0x508   :  { %v827_v43 = vpop.xlane.xlu0 %826 }
 0x509   :  { %3802 = vrcp.f32 %v827_v43 }
 0x50c   :  { %v988_v61 = vpop.permute.xlu0 %987 }
 0x510   :  { %v984_v10 = vpop.permute.xlu0 %983 }
 0x514   :  { %v980_v44 = vpop.permute.xlu0 %979 }
 0x516   :  { %v3803_v28 = vpop.eup %3802 }
 0x517   :  { %v830_v29 = vmul.f32 %v3803_v28, %v3801_v30  ;;  %v829_v60 = vmul.f32 %v3803_v28, %v4614_v27 }
 0x518   :  { %v976_v63 = vpop.permute.xlu0 %975 }
 0x519   :  { %3307 = vmatprep.mubr.msk.f32.mxu1 %vm703_vm2, %v830_v29 }
 0x51a   :  { %950 = vmatmul.mubr.f32.vlgmr.msra.gmra.mxu1 %v829_v60 }
 0x51b   :  { %3308 = vmatpush1.xpose.msk.msra.mxu1 %vm703_vm2, %v988_v61  ;;  %1091 = vmatprep.mubr.f32.mxu1 %v3946_v56 }
 0x51c   :  { %1029 = vmatprep.subr.mxu1 %v3946_v56  ;;  %v972_v37 = vpop.permute.xlu0 %971 }
 0x51f   :  { %3309 = vmatpush1.xpose.msk.msra.mxu1 %vm703_vm2, %v986_v46 }
 0x520   :  { %1031 = vmatprep.subr.mxu1 %v3946_v56  ;;  %v968_v11 = vpop.permute.xlu0 %967 }
 0x523   :  { %3310 = vmatpush1.xpose.msk.msra.mxu1 %vm703_vm2, %v984_v10 }
 0x524   :  { %1033 = vmatprep.subr.mxu1 %v3946_v56  ;;  %v964_v2 = vpop.permute.xlu0 %963 }
 0x527   :  { %3311 = vmatpush1.xpose.msk.msra.mxu1 %vm703_vm2, %v982_v47 }
 0x528   :  { %1035 = vmatprep.subr.mxu1 %v3946_v56  ;;  %v960_v3 = vpop.permute.xlu0 %959 }
 0x52b   :  { %3312 = vmatpush1.xpose.msk.msra.mxu1 %vm703_vm2, %v980_v44 }
 0x52c   :  { %1037 = vmatprep.subr.mxu1 %v3946_v56  ;;  %v990_v5 = vpop.permute.xlu0 %989 }
 0x52f   :  { %3313 = vmatpush1.xpose.msk.msra.mxu1 %vm703_vm2, %v978_v0 }
 0x530   :  { %1039 = vmatprep.subr.mxu1 %v3946_v56 }
 0x533   :  { %3314 = vmatpush1.xpose.msk.msra.mxu1 %vm703_vm2, %v976_v63 }
 0x534   :  { %1041 = vmatprep.subr.mxu1 %v3946_v56 }
 0x537   :  { %3315 = vmatpush1.xpose.msk.msra.mxu1 %vm703_vm2, %v974_v24 }
 0x538   :  { %1043 = vmatprep.subr.mxu1 %v3946_v56 }
 0x53b   :  { %3316 = vmatpush1.xpose.msk.msra.mxu1 %vm703_vm2, %v972_v37 }
 0x53c   :  { %1045 = vmatprep.subr.mxu1 %v3946_v56 }
 0x53f   :  { %3317 = vmatpush1.xpose.msk.msra.mxu1 %vm703_vm2, %v970_v48 }
 0x540   :  { %1047 = vmatprep.subr.mxu1 %v3946_v56 }
 0x543   :  { %3318 = vmatpush1.xpose.msk.msra.mxu1 %vm703_vm2, %v968_v11 }
 0x544   :  { %1049 = vmatprep.subr.mxu1 %v3946_v56 }
 0x547   :  { %3319 = vmatpush1.xpose.msk.msra.mxu1 %vm703_vm2, %v966_v51 }
 0x548   :  { %1051 = vmatprep.subr.mxu1 %v3946_v56 }
 0x54b   :  { %3320 = vmatpush1.xpose.msk.msra.mxu1 %vm703_vm2, %v964_v2 }
 0x54c   :  { %1053 = vmatprep.subr.mxu1 %v3946_v56 }
 0x54f   :  { %3321 = vmatpush1.xpose.msk.msra.mxu1 %vm703_vm2, %v962_v52  ;;  %v1126_v52 = vpop.permute.xlu1 %1125 }
 0x550   :  { %1055 = vmatprep.subr.mxu1 %v3946_v56 }
 0x553   :  { %3322 = vmatpush1.xpose.msk.msra.mxu1 %vm703_vm2, %v960_v3 }
 0x554   :  { %1057 = vmatprep.subr.mxu1 %v3946_v56 }
 0x557   :  { %3323 = vmatpush1.xpose.msk.msra.mxu1 %vm703_vm2, %v958_v53 }
 0x558   :  { %1089 = vmatprep.subr.mxu1 %v3946_v56 }
 0x55b   :  { %3324 = vmatpush2.xpose.msk.msra.mxu1 %vm703_vm2, %v990_v5 }
 0x55c   :  { %1457 = vmatprep.subr.mxu1 %v3946_v56 }
 0x55e   :  { %3325 = vmatmul.mubr.msk.f32.vlgmr.msra.gmra.mxu1 %vm703_vm2, %v4642_v32  ;;  %v1122_v32 = vpop.permute.xlu1 %1121 }
 0x562   :  { %v1118_v1 = vpop.permute.xlu1 %1117 }
 0x5da   :  { %v4690_v23 = vpop.f32.mrf.mxu1 }
 0x5dc   :  { %v953_v7 = vpop.f32.mrf.mxu1 }
 0x61e   :  { %v1093_v25 = vpop.f32.mrf.mxu1 }
 0x61f   :  { %v1098_v26 = vsel %vm4549_vm8, %v1093_v25, -1e+30 }
 0x620   :  { %v1095_v16 = vpop.f32.mrf.mxu1 }
 0x621   :  { %v1099_v54 = vsel %vm4545_vm7, %v1095_v16, -1e+30 }
 0x622   :  { %v1100_v27 = vsel %vm703_vm2, %v1099_v54, -inf }
 0x623   :  { %v1101_v30 = vmax.f32 %v1098_v26, %v1100_v27 }
 0x625   :  { %1102 = vmax.xlane.f32.xlu0 %v1101_v30 }
 0x63b   :  { %1141 = vrot.lane.b32.xlu0 %v4420_v8, %s3952_s0 }
 0x63f   :  { %1137 = vrot.lane.b32.xlu0 %v4430_v9, %s3952_s0 }
 0x643   :  { %1135 = vrot.lane.b32.xlu0 %v4427_v45, %s3952_s0 }
 0x647   :  { %1133 = vrot.lane.b32.xlu0 %v4440_v12, %s3952_s0 }
 0x64b   :  { %1131 = vrot.lane.b32.xlu0 %v4437_v39, %s3952_s0 }
 0x64f   :  { %1127 = vrot.lane.b32.xlu0 %v4447_v13, %s3952_s0 }
 0x653   :  { %1123 = vrot.lane.b32.xlu0 %v4457_v14, %s3952_s0 }
 0x657   :  { %1119 = vrot.lane.b32.xlu0 %v4467_v18, %s3952_s0 }
 0x65b   :  { %1149 = vrot.lane.b32.xlu0 %v4483_v22, %s3952_s0  ;;  %s3961_s0 = smov 24  }
 0x65f   :  { %1271 = vrot.lane.b32.xlu0 %v4402_v4, %s3953_s22 }
 0x663   :  { %1267 = vrot.lane.b32.xlu0 %v4420_v8, %s3953_s22 }
 0x667   :  { %1263 = vrot.lane.b32.xlu0 %v4430_v9, %s3953_s22 }
 0x66b   :  { %1259 = vrot.lane.b32.xlu0 %v4440_v12, %s3953_s22 }
 0x66f   :  { %1255 = vrot.lane.b32.xlu0 %v4450_v35, %s3953_s22 }
 0x673   :  { %1251 = vrot.lane.b32.xlu0 %v4460_v15, %s3953_s22 }
 0x677   :  { %1247 = vrot.lane.b32.xlu0 %v4470_v49, %s3953_s22 }
 0x67b   :  { %1243 = vrot.lane.b32.xlu0 %v4478_v19, %s3953_s22 }
 0x67f   :  { %1241 = vrot.lane.b32.xlu0 %v4537_v50, %s3954_s23 }
 0x683   :  { %1433 = vrot.lane.b32.xlu0 %v4410_v21, %s3955_s24 }
 0x687   :  { %1431 = vrot.lane.b32.xlu0 %v4402_v4, %s3955_s24 }
 0x68b   :  { %1429 = vrot.lane.b32.xlu0 %v4407_v6, %s3955_s24 }
 0x68f   :  { %1425 = vrot.lane.b32.xlu0 %v4417_v17, %s3955_s24 }
 0x693   :  { %1415 = vrot.lane.b32.xlu0 %v4450_v35, %s3955_s24 }
 0x697   :  { %1411 = vrot.lane.b32.xlu0 %v4460_v15, %s3955_s24 }
 0x69b   :  { %1407 = vrot.lane.b32.xlu0 %v4470_v49, %s3955_s24 }
 0x69f   :  { %1403 = vrot.lane.b32.xlu0 %v4478_v19, %s3955_s24 }
 0x6ae   :  { %v1103_v31 = vpop.xlane.xlu0 %1102 }
 0x6af   :  { %v1104_v33 = vsub.f32 %v1098_v26, %v1103_v31  ;;  %v1105_v55 = vsub.f32 %v1099_v54, %v1103_v31 }
 0x6b1   :  { %v1106_v34 = vmul.f32 1.442695, %v1104_v33  ;;  %v1108_v38 = vmul.f32 1.442695, %v1105_v55 }
 0x6b2   :  { %v1142_v40 = vpop.permute.xlu0 %1141 }
 0x6b3   :  { %3804 = vpow2.f32 %v1106_v34  ;;  %1178 = vmatpush1.msra.mxu0 %v1142_v40 }
 0x6b4   :  { %3806 = vpow2.f32 %v1108_v38  ;;  %1179 = vmatprep.subr.mxu0 %v3946_v56 }
 0x6b5   :  { %1180 = vmatpush1.msra.mxu0 %v1140_v41 }
 0x6b6   :  { %v1138_v42 = vpop.permute.xlu0 %1137  ;;  %1181 = vmatprep.subr.mxu0 %v3946_v56 }
 0x6b7   :  { %1182 = vmatpush1.msra.mxu0 %v1138_v42 }
 0x6b8   :  { %1183 = vmatprep.subr.mxu0 %v3946_v56 }
 0x6ba   :  { %v1136_v62 = vpop.permute.xlu0 %1135 }
 0x6bb   :  { %1184 = vmatpush1.msra.mxu0 %v1136_v62 }
 0x6bc   :  { %1185 = vmatprep.subr.mxu0 %v3946_v56 }
 0x6be   :  { %v1134_v46 = vpop.permute.xlu0 %1133 }
 0x6bf   :  { %1186 = vmatpush1.msra.mxu0 %v1134_v46 }
 0x6c0   :  { %v4753_v47 = vpop.eup %3804  ;;  %1187 = vmatprep.subr.mxu0 %v3946_v56 }
 0x6c1   :  { %v3807_v0 = vpop.eup %3806 }
 0x6c2   :  { %v1132_v24 = vpop.permute.xlu0 %1131  ;;  %v1110_v48 = vsel %vm703_vm2, %v3807_v0, 0.0 }
 0x6c3   :  { %1188 = vmatpush1.msra.mxu0 %v1132_v24  ;;  %v1111_v51 = vadd.f32 %v4753_v47, %v1110_v48 }
 0x6c4   :  { %1189 = vmatprep.subr.mxu0 %v3946_v56 }
 0x6c5   :  { %1112 = vadd.xlane.f32.xlu1 %v1111_v51  ;;  %1190 = vmatpush1.msra.mxu0 %v1130_v59 }
 0x6c6   :  { %v1128_v53 = vpop.permute.xlu0 %1127  ;;  %1191 = vmatprep.subr.mxu0 %v3946_v56 }
 0x6c7   :  { %1192 = vmatpush1.msra.mxu0 %v1128_v53 }
 0x6c8   :  { %1193 = vmatprep.subr.mxu0 %v3946_v56 }
 0x6c9   :  { %1194 = vmatpush1.msra.mxu0 %v1126_v52 }
 0x6ca   :  { %v1124_v36 = vpop.permute.xlu0 %1123  ;;  %1195 = vmatprep.subr.mxu0 %v3946_v56 }
 0x6cb   :  { %1196 = vmatpush1.msra.mxu0 %v1124_v36 }
 0x6cc   :  { %1197 = vmatprep.subr.mxu0 %v3946_v56 }
 0x6cd   :  { %1198 = vmatpush1.msra.mxu0 %v1122_v32 }
 0x6ce   :  { %v1120_v20 = vpop.permute.xlu0 %1119  ;;  %1199 = vmatprep.subr.mxu0 %v3946_v56 }
 0x6cf   :  { %1200 = vmatpush1.msra.mxu0 %v1120_v20 }
 0x6d0   :  { %1201 = vmatprep.subr.mxu0 %v3946_v56 }
 0x6d1   :  { %1202 = vmatpush1.msra.mxu0 %v1118_v1 }
 0x6d2   :  { %v1150_v43 = vpop.permute.xlu0 %1149  ;;  %1233 = vmatprep.subr.mxu0 %v3946_v56 }
 0x6d3   :  { %1234 = vmatpush2.msra.mxu0 %v1150_v43 }
 0x6d4   :  { %1313 = vmatprep.subr.mxu0 %v3946_v56 }
 0x6d6   :  { %1273 = vrot.lane.b32.xlu1 %v4410_v21, %s3953_s22  ;;  %v1272_v28 = vpop.permute.xlu0 %1271 }
 0x6da   :  { %1269 = vrot.lane.b32.xlu1 %v4407_v6, %s3953_s22  ;;  %v1268_v29 = vpop.permute.xlu0 %1267 }
 0x6de   :  { %1265 = vrot.lane.b32.xlu1 %v4417_v17, %s3953_s22  ;;  %v1264_v60 = vpop.permute.xlu0 %1263 }
 0x6e2   :  { %1261 = vrot.lane.b32.xlu1 %v4427_v45, %s3953_s22  ;;  %v1260_v61 = vpop.permute.xlu0 %1259 }
 0x6e6   :  { %1257 = vrot.lane.b32.xlu1 %v4437_v39, %s3953_s22  ;;  %v1256_v10 = vpop.permute.xlu0 %1255 }
 0x6ea   :  { %1253 = vrot.lane.b32.xlu1 %v4447_v13, %s3953_s22  ;;  %v1252_v44 = vpop.permute.xlu0 %1251 }
 0x6ee   :  { %1249 = vrot.lane.b32.xlu1 %v4457_v14, %s3953_s22  ;;  %v1248_v63 = vpop.permute.xlu0 %1247 }
 0x6f2   :  { %1245 = vrot.lane.b32.xlu1 %v4467_v18, %s3953_s22  ;;  %v1244_v37 = vpop.permute.xlu0 %1243 }
 0x6f6   :  { %1275 = vrot.lane.b32.xlu1 %v4483_v22, %s3953_s22  ;;  %v1242_v11 = vpop.permute.xlu0 %1241 }
 0x6fa   :  { %v1434_v2 = vpop.permute.xlu0 %1433 }
 0x6fb   :  { %1458 = vmatpush1.msra.mxu1 %v1434_v2 }
 0x6fc   :  { %1459 = vmatprep.subr.mxu1 %v3946_v56 }
 0x6fe   :  { %v1432_v3 = vpop.permute.xlu0 %1431 }
 0x6ff   :  { %1460 = vmatpush1.msra.mxu1 %v1432_v3 }
 0x700   :  { %1461 = vmatprep.subr.mxu1 %v3946_v56 }
 0x702   :  { %v1430_v5 = vpop.permute.xlu0 %1429 }
 0x703   :  { %1462 = vmatpush1.msra.mxu1 %v1430_v5 }
 0x704   :  { %1463 = vmatprep.subr.mxu1 %v3946_v56 }
 0x706   :  { %v1426_v36 = vpop.permute.xlu0 %1425 }
 0x74e   :  { %v1113_v7 = vpop.xlane.xlu1 %1112 }
 0x74f   :  { %3808 = vrcp.f32 %v1113_v7 }
 0x752   :  { %v1274_v26 = vpop.permute.xlu1 %1273 }
 0x756   :  { %v1270_v27 = vpop.permute.xlu1 %1269 }
 0x75a   :  { %v1266_v30 = vpop.permute.xlu1 %1265 }
 0x75c   :  { %v3809_v25 = vpop.eup %3808 }
 0x75d   :  { %v1116_v16 = vmul.f32 %v3809_v25, %v3807_v0  ;;  %v1115_v54 = vmul.f32 %v3809_v25, %v4753_v47 }
 0x75e   :  { %v1262_v31 = vpop.permute.xlu1 %1261 }
 0x75f   :  { %3326 = vmatprep.mubr.msk.f32.mxu0 %vm703_vm2, %v1116_v16 }
 0x760   :  { %1236 = vmatmul.mubr.f32.vlgmr.msra.gmra.mxu0 %v1115_v54 }
 0x761   :  { %3327 = vmatpush1.xpose.msk.msra.mxu0 %vm703_vm2, %v1274_v26  ;;  %1377 = vmatprep.mubr.f32.mxu0 %v3946_v56 }
 0x762   :  { %1315 = vmatprep.subr.mxu0 %v3946_v56  ;;  %v1258_v33 = vpop.permute.xlu1 %1257 }
 0x765   :  { %3328 = vmatpush1.xpose.msk.msra.mxu0 %vm703_vm2, %v1272_v28 }
 0x766   :  { %1317 = vmatprep.subr.mxu0 %v3946_v56  ;;  %v1254_v55 = vpop.permute.xlu1 %1253 }
 0x769   :  { %3329 = vmatpush1.xpose.msk.msra.mxu0 %vm703_vm2, %v1270_v27 }
 0x76a   :  { %1319 = vmatprep.subr.mxu0 %v3946_v56  ;;  %v1250_v34 = vpop.permute.xlu1 %1249 }
 0x76d   :  { %3330 = vmatpush1.xpose.msk.msra.mxu0 %vm703_vm2, %v1268_v29 }
 0x76e   :  { %1321 = vmatprep.subr.mxu0 %v3946_v56  ;;  %v1246_v38 = vpop.permute.xlu1 %1245 }
 0x771   :  { %3331 = vmatpush1.xpose.msk.msra.mxu0 %vm703_vm2, %v1266_v30 }
 0x772   :  { %1323 = vmatprep.subr.mxu0 %v3946_v56  ;;  %v1276_v40 = vpop.permute.xlu1 %1275 }
 0x775   :  { %3332 = vmatpush1.xpose.msk.msra.mxu0 %vm703_vm2, %v1264_v60 }
 0x776   :  { %1325 = vmatprep.subr.mxu0 %v3946_v56 }
 0x779   :  { %3333 = vmatpush1.xpose.msk.msra.mxu0 %vm703_vm2, %v1262_v31 }
 0x77a   :  { %1327 = vmatprep.subr.mxu0 %v3946_v56 }
 0x77d   :  { %3334 = vmatpush1.xpose.msk.msra.mxu0 %vm703_vm2, %v1260_v61 }
 0x77e   :  { %1329 = vmatprep.subr.mxu0 %v3946_v56 }
 0x781   :  { %3335 = vmatpush1.xpose.msk.msra.mxu0 %vm703_vm2, %v1258_v33 }
 0x782   :  { %1331 = vmatprep.subr.mxu0 %v3946_v56 }
 0x785   :  { %3336 = vmatpush1.xpose.msk.msra.mxu0 %vm703_vm2, %v1256_v10 }
 0x786   :  { %1333 = vmatprep.subr.mxu0 %v3946_v56 }
 0x789   :  { %3337 = vmatpush1.xpose.msk.msra.mxu0 %vm703_vm2, %v1254_v55 }
 0x78a   :  { %1335 = vmatprep.subr.mxu0 %v3946_v56 }
 0x78d   :  { %3338 = vmatpush1.xpose.msk.msra.mxu0 %vm703_vm2, %v1252_v44 }
 0x78e   :  { %1337 = vmatprep.subr.mxu0 %v3946_v56 }
 0x791   :  { %3339 = vmatpush1.xpose.msk.msra.mxu0 %vm703_vm2, %v1250_v34 }
 0x792   :  { %1339 = vmatprep.subr.mxu0 %v3946_v56 }
 0x795   :  { %3340 = vmatpush1.xpose.msk.msra.mxu0 %vm703_vm2, %v1248_v63 }
 0x796   :  { %1341 = vmatprep.subr.mxu0 %v3946_v56 }
 0x799   :  { %3341 = vmatpush1.xpose.msk.msra.mxu0 %vm703_vm2, %v1246_v38 }
 0x79a   :  { %1343 = vmatprep.subr.mxu0 %v3946_v56 }
 0x79d   :  { %3342 = vmatpush1.xpose.msk.msra.mxu0 %vm703_vm2, %v1244_v37 }
 0x79e   :  { %1375 = vmatprep.subr.mxu0 %v3946_v56 }
 0x7a1   :  { %3343 = vmatpush2.xpose.msk.msra.mxu0 %vm703_vm2, %v1276_v40 }
 0x7a2   :  { %1743 = vmatprep.subr.mxu0 %v3946_v56 }
 0x7a4   :  { %3344 = vmatmul.mubr.msk.f32.vlgmr.msra.gmra.mxu0 %vm703_vm2, %v1242_v11 }
 0x820   :  { %v4826_v41 = vpop.f32.mrf.mxu0 }
 0x822   :  { %v1239_v42 = vpop.f32.mrf.mxu0 }
 0x864   :  { %v1379_v62 = vpop.f32.mrf.mxu0 }
 0x865   :  { %v1384_v47 = vsel %vm4549_vm8, %v1379_v62, -1e+30 }
 0x866   :  { %v1381_v59 = vpop.f32.mrf.mxu0 }
 0x867   :  { %v1385_v46 = vsel %vm4545_vm7, %v1381_v59, -1e+30 }
 0x868   :  { %v1386_v0 = vsel %vm703_vm2, %v1385_v46, -inf }
 0x869   :  { %v1387_v24 = vmax.f32 %v1384_v47, %v1386_v0 }
 0x86b   :  { %1388 = vmax.xlane.f32.xlu1 %v1387_v24 }
 0x87c   :  { %1427 = vrot.lane.b32.xlu1 %v4420_v8, %s3955_s24 }
 0x880   :  { %1423 = vrot.lane.b32.xlu1 %v4430_v9, %s3955_s24 }
 0x884   :  { %1421 = vrot.lane.b32.xlu1 %v4427_v45, %s3955_s24 }
 0x888   :  { %1419 = vrot.lane.b32.xlu1 %v4440_v12, %s3955_s24 }
 0x88c   :  { %1417 = vrot.lane.b32.xlu1 %v4437_v39, %s3955_s24 }
 0x890   :  { %1413 = vrot.lane.b32.xlu1 %v4447_v13, %s3955_s24 }
 0x894   :  { %1409 = vrot.lane.b32.xlu1 %v4457_v14, %s3955_s24 }
 0x898   :  { %1405 = vrot.lane.b32.xlu1 %v4467_v18, %s3955_s24 }
 0x89c   :  { %1435 = vrot.lane.b32.xlu1 %v4483_v22, %s3955_s24 }
 0x8a0   :  { %1557 = vrot.lane.b32.xlu1 %v4402_v4, %s3956_s25 }
 0x8a4   :  { %1553 = vrot.lane.b32.xlu1 %v4420_v8, %s3956_s25 }
 0x8a8   :  { %1549 = vrot.lane.b32.xlu1 %v4430_v9, %s3956_s25 }
 0x8ac   :  { %1545 = vrot.lane.b32.xlu1 %v4440_v12, %s3956_s25 }
 0x8b0   :  { %1541 = vrot.lane.b32.xlu1 %v4450_v35, %s3956_s25 }
 0x8b4   :  { %1537 = vrot.lane.b32.xlu1 %v4460_v15, %s3956_s25 }
 0x8b8   :  { %1533 = vrot.lane.b32.xlu1 %v4470_v49, %s3956_s25 }
 0x8bc   :  { %1529 = vrot.lane.b32.xlu1 %v4478_v19, %s3956_s25 }
 0x8c0   :  { %1527 = vrot.lane.b32.xlu1 %v4537_v50, %s3957_s26 }
 0x8c4   :  { %1719 = vrot.lane.b32.xlu1 %v4410_v21, %s3958_s27 }
 0x8c8   :  { %1717 = vrot.lane.b32.xlu1 %v4402_v4, %s3958_s27 }
 0x8cc   :  { %1713 = vrot.lane.b32.xlu1 %v4420_v8, %s3958_s27 }
 0x8d0   :  { %1705 = vrot.lane.b32.xlu1 %v4440_v12, %s3958_s27 }
 0x8d4   :  { %1701 = vrot.lane.b32.xlu1 %v4450_v35, %s3958_s27 }
 0x8d8   :  { %1697 = vrot.lane.b32.xlu1 %v4460_v15, %s3958_s27  ;;  %v1416_v15 = vpop.permute.xlu0 %1415 }
 0x8dc   :  { %1693 = vrot.lane.b32.xlu1 %v4470_v49, %s3958_s27  ;;  %v1412_v60 = vpop.permute.xlu0 %1411 }
 0x8e0   :  { %v1408_v10 = vpop.permute.xlu0 %1407 }
 0x8e4   :  { %v1404_v37 = vpop.permute.xlu0 %1403 }
 0x8f4   :  { %v1389_v50 = vpop.xlane.xlu1 %1388 }
 0x8f5   :  { %v1390_v48 = vsub.f32 %v1384_v47, %v1389_v50  ;;  %v1391_v51 = vsub.f32 %v1385_v46, %v1389_v50 }
 0x8f7   :  { %v1392_v52 = vmul.f32 1.442695, %v1390_v48  ;;  %v1394_v53 = vmul.f32 1.442695, %v1391_v51 }
 0x8f8   :  { %v1428_v32 = vpop.permute.xlu1 %1427 }
 0x8f9   :  { %3810 = vpow2.f32 %v1392_v52  ;;  %1464 = vmatpush1.msra.mxu1 %v1428_v32 }
 0x8fa   :  { %3812 = vpow2.f32 %v1394_v53  ;;  %1465 = vmatprep.subr.mxu1 %v3946_v56 }
 0x8fb   :  { %1466 = vmatpush1.msra.mxu1 %v1426_v36 }
 0x8fc   :  { %1467 = vmatprep.subr.mxu1 %v3946_v56  ;;  %v1424_v12 = vpop.permute.xlu1 %1423 }
 0x8fd   :  { %1468 = vmatpush1.msra.mxu1 %v1424_v12 }
 0x8fe   :  { %1469 = vmatprep.subr.mxu1 %v3946_v56 }
 0x900   :  { %v1422_v35 = vpop.permute.xlu1 %1421 }
 0x901   :  { %1470 = vmatpush1.msra.mxu1 %v1422_v35 }
 0x902   :  { %1471 = vmatprep.subr.mxu1 %v3946_v56 }
 0x904   :  { %v1420_v49 = vpop.permute.xlu1 %1419 }
 0x905   :  { %1472 = vmatpush1.msra.mxu1 %v1420_v49 }
 0x906   :  { %v3811_v20 = vpop.eup %3810  ;;  %1473 = vmatprep.subr.mxu1 %v3946_v56 }
 0x907   :  { %v3813_v1 = vpop.eup %3812 }
 0x908   :  { %v1418_v43 = vpop.permute.xlu1 %1417  ;;  %v1396_v28 = vsel %vm703_vm2, %v3813_v1, 0.0 }
 0x909   :  { %1474 = vmatpush1.msra.mxu1 %v1418_v43  ;;  %v1397_v29 = vadd.f32 %v3811_v20, %v1396_v28 }
 0x90a   :  { %1475 = vmatprep.subr.mxu1 %v3946_v56 }
 0x90b   :  { %1398 = vadd.xlane.f32.xlu0 %v1397_v29  ;;  %1476 = vmatpush1.msra.mxu1 %v1416_v15 }
 0x90c   :  { %1477 = vmatprep.subr.mxu1 %v3946_v56  ;;  %v1414_v61 = vpop.permute.xlu1 %1413 }
 0x90d   :  { %1478 = vmatpush1.msra.mxu1 %v1414_v61 }
 0x90e   :  { %1479 = vmatprep.subr.mxu1 %v3946_v56 }
 0x90f   :  { %1480 = vmatpush1.msra.mxu1 %v1412_v60 }
 0x910   :  { %1481 = vmatprep.subr.mxu1 %v3946_v56  ;;  %v1410_v44 = vpop.permute.xlu1 %1409 }
 0x911   :  { %1482 = vmatpush1.msra.mxu1 %v1410_v44 }
 0x912   :  { %1483 = vmatprep.subr.mxu1 %v3946_v56 }
 0x913   :  { %1484 = vmatpush1.msra.mxu1 %v1408_v10 }
 0x914   :  { %1485 = vmatprep.subr.mxu1 %v3946_v56  ;;  %v1406_v63 = vpop.permute.xlu1 %1405 }
 0x915   :  { %1486 = vmatpush1.msra.mxu1 %v1406_v63 }
 0x916   :  { %1487 = vmatprep.subr.mxu1 %v3946_v56 }
 0x917   :  { %1488 = vmatpush1.msra.mxu1 %v1404_v37 }
 0x918   :  { %1519 = vmatprep.subr.mxu1 %v3946_v56  ;;  %v1436_v11 = vpop.permute.xlu1 %1435 }
 0x919   :  { %1520 = vmatpush2.msra.mxu1 %v1436_v11 }
 0x91a   :  { %1599 = vmatprep.subr.mxu1 %v3946_v56 }
 0x91c   :  { %v1558_v2 = vpop.permute.xlu1 %1557 }
 0x920   :  { %v1554_v3 = vpop.permute.xlu1 %1553 }
 0x921   :  { %1559 = vrot.lane.b32.xlu0 %v4410_v21, %s3956_s25 }
 0x924   :  { %v1550_v5 = vpop.permute.xlu1 %1549 }
 0x925   :  { %1555 = vrot.lane.b32.xlu0 %v4407_v6, %s3956_s25 }
 0x928   :  { %v1546_v7 = vpop.permute.xlu1 %1545 }
 0x929   :  { %1551 = vrot.lane.b32.xlu0 %v4417_v17, %s3956_s25 }
 0x92c   :  { %v1542_v25 = vpop.permute.xlu1 %1541 }
 0x92d   :  { %1547 = vrot.lane.b32.xlu0 %v4427_v45, %s3956_s25 }
 0x930   :  { %v1538_v16 = vpop.permute.xlu1 %1537 }
 0x931   :  { %1543 = vrot.lane.b32.xlu0 %v4437_v39, %s3956_s25 }
 0x934   :  { %v1534_v54 = vpop.permute.xlu1 %1533 }
 0x935   :  { %1539 = vrot.lane.b32.xlu0 %v4447_v13, %s3956_s25 }
 0x938   :  { %v1530_v26 = vpop.permute.xlu1 %1529 }
 0x939   :  { %1535 = vrot.lane.b32.xlu0 %v4457_v14, %s3956_s25 }
 0x93c   :  { %v1528_v27 = vpop.permute.xlu1 %1527 }
 0x93d   :  { %1531 = vrot.lane.b32.xlu0 %v4467_v18, %s3956_s25 }
 0x940   :  { %v1720_v30 = vpop.permute.xlu1 %1719 }
 0x941   :  { %1561 = vrot.lane.b32.xlu0 %v4483_v22, %s3956_s25  ;;  %1744 = vmatpush1.msra.mxu0 %v1720_v30  ;;  %v5019_v30 = vrot.slane %v4402_v4, 6 }
 0x942   :  { %1745 = vmatprep.subr.mxu0 %v3946_v56 }
 0x944   :  { %v1718_v31 = vpop.permute.xlu1 %1717 }
 0x945   :  { %1746 = vmatpush1.msra.mxu0 %v1718_v31  ;;  %v1916_v31 = vrot.slane %v4407_v6, 6 }
 0x946   :  { %1747 = vmatprep.subr.mxu0 %v3946_v56 }
 0x994   :  { %v1399_v33 = vpop.xlane.xlu0 %1398 }
 0x995   :  { %3814 = vrcp.f32 %v1399_v33  ;;  %v5025_v33 = vsel %vm1914_vm9, %v1916_v31, %v5019_v30 }
 0x998   :  { %v1560_v40 = vpop.permute.xlu0 %1559 }
 0x99c   :  { %v1556_v42 = vpop.permute.xlu0 %1555 }
 0x9a0   :  { %v1552_v62 = vpop.permute.xlu0 %1551 }
 0x9a2   :  { %v3815_v55 = vpop.eup %3814 }
 0x9a3   :  { %v1402_v34 = vmul.f32 %v3815_v55, %v3813_v1  ;;  %v1401_v38 = vmul.f32 %v3815_v55, %v3811_v20  ;;  %v1915_v55 = vrot.slane %v4420_v8, 6  ;;  %v2466_v8 = vrot.slane %v4410_v21, 7 }
 0x9a4   :  { %v1548_v59 = vpop.permute.xlu0 %1547 }
 0x9a5   :  { %3345 = vmatprep.mubr.msk.f32.mxu1 %vm703_vm2, %v1402_v34  ;;  %v5030_v34 = vsel %vm1914_vm9, %v1915_v55, %v1916_v31  ;;  %v3068_v31 = vld [vmem:[%s5699_s10 + $0x8] sm:$0xff]  ;;  %v3067_v55 = vld [vmem:[%s5699_s10] sm:$0xff] }
 0x9a6   :  { %1522 = vmatmul.mubr.f32.vlgmr.msra.gmra.mxu1 %v1401_v38 }
 0x9a7   :  { %3346 = vmatpush1.xpose.msk.msra.mxu1 %vm703_vm2, %v1560_v40  ;;  %1663 = vmatprep.mubr.f32.mxu1 %v3946_v56  ;;  %v2465_v40 = vrot.slane %v4402_v4, 7 }
 0x9a8   :  { %1601 = vmatprep.subr.mxu1 %v3946_v56  ;;  %v1544_v46 = vpop.permute.xlu0 %1543 }
 0x9ab   :  { %3347 = vmatpush1.xpose.msk.msra.mxu1 %vm703_vm2, %v1558_v2 }
 0x9ac   :  { %1603 = vmatprep.subr.mxu1 %v3946_v56  ;;  %v1540_v47 = vpop.permute.xlu0 %1539 }
 0x9af   :  { %3348 = vmatpush1.xpose.msk.msra.mxu1 %vm703_vm2, %v1556_v42  ;;  %v5056_v42 = vsel %vm2464_vm10, %v2465_v40, %v2466_v8 }
 0x9b0   :  { %1605 = vmatprep.subr.mxu1 %v3946_v56  ;;  %v1536_v0 = vpop.permute.xlu0 %1535 }
 0x9b3   :  { %3349 = vmatpush1.xpose.msk.msra.mxu1 %vm703_vm2, %v1554_v3 }
 0x9b4   :  { %1607 = vmatprep.subr.mxu1 %v3946_v56  ;;  %v1532_v24 = vpop.permute.xlu0 %1531 }
 0x9b7   :  { %3350 = vmatpush1.xpose.msk.msra.mxu1 %vm703_vm2, %v1552_v62 }
 0x9b8   :  { %1609 = vmatprep.subr.mxu1 %v3946_v56  ;;  %v1562_v50 = vpop.permute.xlu0 %1561 }
 0x9bb   :  { %3351 = vmatpush1.xpose.msk.msra.mxu1 %vm703_vm2, %v1550_v5 }
 0x9bc   :  { %1611 = vmatprep.subr.mxu1 %v3946_v56 }
 0x9bf   :  { %3352 = vmatpush1.xpose.msk.msra.mxu1 %vm703_vm2, %v1548_v59 }
 0x9c0   :  { %1613 = vmatprep.subr.mxu1 %v3946_v56 }
 0x9c3   :  { %3353 = vmatpush1.xpose.msk.msra.mxu1 %vm703_vm2, %v1546_v7 }
 0x9c4   :  { %1615 = vmatprep.subr.mxu1 %v3946_v56 }
 0x9c7   :  { %3354 = vmatpush1.xpose.msk.msra.mxu1 %vm703_vm2, %v1544_v46 }
 0x9c8   :  { %1617 = vmatprep.subr.mxu1 %v3946_v56 }
 0x9cb   :  { %3355 = vmatpush1.xpose.msk.msra.mxu1 %vm703_vm2, %v1542_v25 }
 0x9cc   :  { %1619 = vmatprep.subr.mxu1 %v3946_v56 }
 0x9cf   :  { %3356 = vmatpush1.xpose.msk.msra.mxu1 %vm703_vm2, %v1540_v47 }
 0x9d0   :  { %1621 = vmatprep.subr.mxu1 %v3946_v56 }
 0x9d3   :  { %3357 = vmatpush1.xpose.msk.msra.mxu1 %vm703_vm2, %v1538_v16  ;;  %v1831_v16 = vld [vmem:[%s5695_s6 + $0x8] sm:$0xff] }
 0x9d4   :  { %1623 = vmatprep.subr.mxu1 %v3946_v56 }
 0x9d7   :  { %3358 = vmatpush1.xpose.msk.msra.mxu1 %vm703_vm2, %v1536_v0 }
 0x9d8   :  { %1625 = vmatprep.subr.mxu1 %v3946_v56 }
 0x9db   :  { %3359 = vmatpush1.xpose.msk.msra.mxu1 %vm703_vm2, %v1534_v54  ;;  %v1830_v54 = vld [vmem:[%s5695_s6] sm:$0xff] }
 0x9dc   :  { %1627 = vmatprep.subr.mxu1 %v3946_v56 }
 0x9df   :  { %3360 = vmatpush1.xpose.msk.msra.mxu1 %vm703_vm2, %v1532_v24 }
 0x9e0   :  { %1629 = vmatprep.subr.mxu1 %v3946_v56 }
 0x9e3   :  { %3361 = vmatpush1.xpose.msk.msra.mxu1 %vm703_vm2, %v1530_v26 }
 0x9e4   :  { %1661 = vmatprep.subr.mxu1 %v3946_v56 }
 0x9e7   :  { %3362 = vmatpush2.xpose.msk.msra.mxu1 %vm703_vm2, %v1562_v50 }
 0x9e8   :  { %3584 = vmatprep.subr.mxu1 %v3946_v56 }
 0x9ea   :  { %3363 = vmatmul.mubr.msk.f32.vlgmr.msra.gmra.mxu1 %vm703_vm2, %v1528_v27 }
 0x9eb   :  { %3592 = vmatprep.mubr.msk.f32.mxu1 %vm3947_vm1, %v3946_v56 }
 0xa66   :  { %v1523_v48 = vpop.f32.mrf.mxu1 }
 0xa68   :  { %v1525_v51 = vpop.f32.mrf.mxu1 }
 0xaaa   :  { %v1665_v52 = vpop.f32.mrf.mxu1 }
 0xaab   :  { %v1670_v36 = vsel %vm4549_vm8, %v1665_v52, -1e+30 }
 0xaac   :  { %v1667_v53 = vpop.f32.mrf.mxu1 }
 0xaad   :  { %v1671_v32 = vsel %vm4545_vm7, %v1667_v53, -1e+30 }
 0xaae   :  { %v1672_v12 = vsel %vm703_vm2, %v1671_v32, -inf }
 0xaaf   :  { %v1673_v35 = vmax.f32 %v1670_v36, %v1672_v12 }
 0xab1   :  { %1674 = vmax.xlane.f32.xlu0 %v1673_v35 }
 0xac7   :  { %1715 = vrot.lane.b32.xlu0 %v4407_v6, %s3958_s27  ;;  %v5043_v6 = vrot.slane %v4483_v22, 7 }
 0xac9   :  { %v5049_v38 = vsel %vm2464_vm10, %v2466_v8, %v5043_v6 }
 0xacb   :  { %1711 = vrot.lane.b32.xlu0 %v4417_v17, %s3958_s27 }
 0xacf   :  { %1709 = vrot.lane.b32.xlu0 %v4430_v9, %s3958_s27 }
 0xad3   :  { %1707 = vrot.lane.b32.xlu0 %v4427_v45, %s3958_s27 }
 0xad7   :  { %1703 = vrot.lane.b32.xlu0 %v4437_v39, %s3958_s27 }
 0xadb   :  { %1699 = vrot.lane.b32.xlu0 %v4447_v13, %s3958_s27  ;;  %v1714_v13 = vpop.permute.xlu1 %1713 }
 0xadf   :  { %1695 = vrot.lane.b32.xlu0 %v4457_v14, %s3958_s27 }
 0xae3   :  { %1691 = vrot.lane.b32.xlu0 %v4467_v18, %s3958_s27  ;;  %v1706_v18 = vpop.permute.xlu1 %1705 }
 0xae7   :  { %1721 = vrot.lane.b32.xlu0 %v4483_v22, %s3958_s27  ;;  %v1702_v1 = vpop.permute.xlu1 %1701 }
 0xaeb   :  { %1818 = vrot.lane.b32.xlu0 %v1523_v48, %s3959_s28  ;;  %v1698_v61 = vpop.permute.xlu1 %1697 }
 0xaef   :  { %v1694_v63 = vpop.permute.xlu1 %1693 }
 0xb3a   :  { %v1675_v17 = vpop.xlane.xlu0 %1674 }
 0xb3b   :  { %v1676_v9 = vsub.f32 %v1670_v36, %v1675_v17  ;;  %v1677_v45 = vsub.f32 %v1671_v32, %v1675_v17 }
 0xb3d   :  { %v1678_v57 = vmul.f32 1.442695, %v1676_v9  ;;  %v1680_v58 = vmul.f32 1.442695, %v1677_v45 }
 0xb3e   :  { %v1716_v39 = vpop.permute.xlu0 %1715 }
 0xb3f   :  { %3816 = vpow2.f32 %v1678_v57  ;;  %1748 = vmatpush1.msra.mxu0 %v1716_v39  ;;  %v3365_v57 = vld [vmem:[%s5696_s7] ss:$0 sm:$0xff] }
 0xb40   :  { %3818 = vpow2.f32 %v1680_v58  ;;  %1749 = vmatprep.subr.mxu0 %v3946_v56  ;;  %v3036_v39 = vld [vmem:[%s5690_s1] sm:$0xff] }
 0xb41   :  { %1750 = vmatpush1.msra.mxu0 %v1714_v13 }
 0xb42   :  { %v1712_v14 = vpop.permute.xlu0 %1711  ;;  %1751 = vmatprep.subr.mxu0 %v3946_v56 }
 0xb43   :  { %1752 = vmatpush1.msra.mxu0 %v1712_v14 }
 0xb44   :  { %1753 = vmatprep.subr.mxu0 %v3946_v56 }
 0xb46   :  { %v1710_v15 = vpop.permute.xlu0 %1709 }
 0xb47   :  { %1754 = vmatpush1.msra.mxu0 %v1710_v15 }
 0xb48   :  { %1755 = vmatprep.subr.mxu0 %v3946_v56 }
 0xb4a   :  { %v1708_v49 = vpop.permute.xlu0 %1707 }
 0xb4b   :  { %1756 = vmatpush1.msra.mxu0 %v1708_v49 }
 0xb4c   :  { %v3817_v20 = vpop.eup %3816  ;;  %1757 = vmatprep.subr.mxu0 %v3946_v56 }
 0xb4d   :  { %v3819_v43 = vpop.eup %3818  ;;  %1758 = vmatpush1.msra.mxu0 %v1706_v18 }
 0xb4e   :  { %v1704_v28 = vpop.permute.xlu0 %1703  ;;  %1759 = vmatprep.subr.mxu0 %v3946_v56  ;;  %v1682_v29 = vsel %vm703_vm2, %v3819_v43, 0.0 }
 0xb4f   :  { %1760 = vmatpush1.msra.mxu0 %v1704_v28  ;;  %v1683_v60 = vadd.f32 %v3817_v20, %v1682_v29 }
 0xb50   :  { %1761 = vmatprep.subr.mxu0 %v3946_v56 }
 0xb51   :  { %1684 = vadd.xlane.f32.xlu1 %v1683_v60  ;;  %1762 = vmatpush1.msra.mxu0 %v1702_v1 }
 0xb52   :  { %v1700_v10 = vpop.permute.xlu0 %1699  ;;  %1763 = vmatprep.subr.mxu0 %v3946_v56 }
 0xb53   :  { %1764 = vmatpush1.msra.mxu0 %v1700_v10 }
 0xb54   :  { %1765 = vmatprep.subr.mxu0 %v3946_v56 }
 0xb55   :  { %1766 = vmatpush1.msra.mxu0 %v1698_v61 }
 0xb56   :  { %v1696_v44 = vpop.permute.xlu0 %1695  ;;  %1767 = vmatprep.subr.mxu0 %v3946_v56 }
 0xb57   :  { %1768 = vmatpush1.msra.mxu0 %v1696_v44 }
 0xb58   :  { %1769 = vmatprep.subr.mxu0 %v3946_v56 }
 0xb59   :  { %1770 = vmatpush1.msra.mxu0 %v1694_v63 }
 0xb5a   :  { %v1692_v37 = vpop.permute.xlu0 %1691  ;;  %1771 = vmatprep.subr.mxu0 %v3946_v56 }
 0xb5b   :  { %1772 = vmatpush1.msra.mxu0 %v1692_v37 }
 0xb5c   :  { %1773 = vmatprep.subr.mxu0 %v3946_v56 }
 0xb5e   :  { %v1722_v3 = vpop.permute.xlu0 %1721 }
 0xb62   :  { %1689 = vrot.lane.b32.xlu1 %v4478_v19, %s3958_s27  ;;  %v1833_v19 = vld [vmem:[%s5695_s6 + $0x18] sm:$0xff]  ;;  %v1819_v22 = vpop.permute.xlu0 %1818 }
 0xb63   :  { %3585 = vmatpush3.msra.mxu1 %v1833_v19 }
 0xb64   :  { %3586 = vmatprep.subr.mxu1 %v3946_v56 }
 0xb66   :  { %1814 = vrot.lane.b32.xlu1 %v4826_v41, %s3960_s29  ;;  %v1832_v41 = vld [vmem:[%s5695_s6 + $0x10] sm:$0xff] }
 0xb67   :  { %3587 = vmatpush3.msra.mxu1 %v1832_v41 }
 0xb68   :  { %3588 = vmatprep.subr.mxu1 %v3946_v56 }
 0xb69   :  { %3589 = vmatpush3.msra.mxu1 %v1831_v16 }
 0xb6a   :  { %3590 = vmatprep.subr.mxu1 %v3946_v56 }
 0xb6b   :  { %3591 = vmatpush3.msra.mxu1 %v1830_v54  ;;  %v3070_v54 = vld [vmem:[%s5699_s10 + $0x18] sm:$0xff] }
 0xb6c   :  { %3595 = vmatprep.subr.mxu1 %v3946_v56 }
 0xbda   :  { %v1685_v11 = vpop.xlane.xlu1 %1684 }
 0xbdb   :  { %3820 = vrcp.f32 %v1685_v11 }
 0xbde   :  { %v1690_v2 = vpop.permute.xlu1 %1689 }
 0xbdf   :  { %1774 = vmatpush1.msra.mxu0 %v1690_v2 }
 0xbe0   :  { %1805 = vmatprep.subr.mxu0 %v3946_v56 }
 0xbe1   :  { %1806 = vmatpush2.msra.mxu0 %v1722_v3 }
 0xbe2   :  { %3610 = vmatprep.subr.mxu0 %v3946_v56  ;;  %v1815_v4 = vpop.permute.xlu1 %1814 }
 0xbe3   :  { %v1825_v21 = vsel %vm703_vm2, %v4690_v23, %v1815_v4 }
 0xbe4   :  { %v1827_v62 = vsel %vm1826_vm11, %v1825_v21, %v1819_v22  ;;  %v3416_v22 = vld [vmem:[%s5698_s9] ss:$0 sm:$0xff] }
 0xbe8   :  { %v3821_v5 = vpop.eup %3820 }
 0xbe9   :  { %v1688_v7 = vmul.f32 %v3821_v5, %v3819_v43  ;;  %v1687_v25 = vmul.f32 %v3821_v5, %v3817_v20 }
 0xbeb   :  { %3364 = vmatprep.mubr.msk.f32.mxu0 %vm703_vm2, %v1688_v7 }
 0xbec   :  { %1808 = vmatmul.mubr.f32.vlgmr.msra.gmra.mxu0 %v1687_v25 }
 0xbed   :  { %3616 = vmatprep.mubr.msk.f32.mxu0 %vm3947_vm1, %v3946_v56 }
 0xcac   :  { %v1809_v26 = vpop.f32.mrf.mxu0 }
 0xcad   :  { %1822 = vrot.lane.b32.xlu1 %v1809_v26, %s3961_s0 }
 0xcae   :  { %v1811_v27 = vpop.f32.mrf.mxu0 }
 0xcb1   :  { %1924 = vrot.lane.b32.xlu1 %v5019_v30, %s3948_s19 }
 0xcb5   :  { %1922 = vrot.lane.b32.xlu1 %v5025_v33, %s3948_s19 }
 0xcb9   :  { %1920 = vrot.lane.b32.xlu1 %v5030_v34, %s3948_s19 }
 0xcbd   :  { %2200 = vrot.lane.b32.xlu1 %v5019_v30, %s3953_s22 }
 0xcc1   :  { %2198 = vrot.lane.b32.xlu1 %v5025_v33, %s3953_s22 }
 0xcc5   :  { %2196 = vrot.lane.b32.xlu1 %v5030_v34, %s3953_s22 }
 0xcc9   :  { %2190 = vrot.lane.b32.xlu1 %v5030_v34, %s3954_s23 }
 0xccd   :  { %2474 = vrot.lane.b32.xlu1 %v5043_v6, %s3948_s19 }
 0xcd1   :  { %2472 = vrot.lane.b32.xlu1 %v5049_v38, %s3948_s19 }
 0xcd5   :  { %2194 = vrot.lane.b32.xlu1 %v5019_v30, %s3954_s23 }
 0xcd9   :  { %2470 = vrot.lane.b32.xlu1 %v5056_v42, %s3948_s19 }
 0xcdd   :  { %2748 = vrot.lane.b32.xlu1 %v5043_v6, %s3953_s22 }
 0xce1   :  { %2746 = vrot.lane.b32.xlu1 %v5049_v38, %s3953_s22 }
 0xce5   :  { %2744 = vrot.lane.b32.xlu1 %v5056_v42, %s3953_s22 }
 0xce9   :  { %2740 = vrot.lane.b32.xlu1 %v5049_v38, %s3954_s23 }
 0xced   :  { %2063 = vrot.lane.b32.xlu1 %v5019_v30, %s3950_s20 }
 0xcf1   :  { %2059 = vrot.lane.b32.xlu1 %v5030_v34, %s3950_s20 }
 0xcf5   :  { %2337 = vrot.lane.b32.xlu1 %v5019_v30, %s3956_s25 }
 0xcf9   :  { %2335 = vrot.lane.b32.xlu1 %v5025_v33, %s3956_s25 }
 0xcfd   :  { %2333 = vrot.lane.b32.xlu1 %v5030_v34, %s3956_s25 }
 0xd01   :  { %2611 = vrot.lane.b32.xlu1 %v5043_v6, %s3950_s20 }
 0xd05   :  { %2609 = vrot.lane.b32.xlu1 %v5049_v38, %s3950_s20 }
 0xd09   :  { %2607 = vrot.lane.b32.xlu1 %v5056_v42, %s3950_s20 }
 0xd0d   :  { %2885 = vrot.lane.b32.xlu1 %v5043_v6, %s3956_s25 }
 0xd11   :  { %2883 = vrot.lane.b32.xlu1 %v5049_v38, %s3956_s25 }
 0xd15   :  { %2881 = vrot.lane.b32.xlu1 %v5056_v42, %s3956_s25 }
 0xd19   :  { %2877 = vrot.lane.b32.xlu1 %v5049_v38, %s3957_s26 }
 0xd1f   :  { %v1823_v59 = vpop.permute.xlu1 %1822 }
 0xd20   :  { %v1829_v46 = vsel %vm1828_vm12, %v1827_v62, %v1823_v59 }
 0xd21   :  { %3593 = vmatmul.mubr.msk.f32.vlgmr.msra.gmra.mxu1 %vm74_vm0, %v1829_v46 }
 0xd22   :  { %3601 = vmatprep.mubr.msk.f32.mxu1 %vm3947_vm1, %v3946_v56 }
 0xd23   :  { %v1925_v47 = vpop.permute.xlu1 %1924 }
 0xd24   :  { %3596 = vmatpush3.xpose.msk.msra.mxu1 %vm703_vm2, %v1925_v47 }
 0xd25   :  { %3597 = vmatprep.subr.mxu1 %v3946_v56 }
 0xd27   :  { %v1923_v0 = vpop.permute.xlu1 %1922 }
 0xd28   :  { %3598 = vmatpush3.xpose.msk.msra.mxu1 %vm703_vm2, %v1923_v0 }
 0xd29   :  { %3599 = vmatprep.subr.mxu1 %v3946_v56 }
 0xd2b   :  { %v1921_v23 = vpop.permute.xlu1 %1920 }
 0xd2c   :  { %3600 = vmatpush3.xpose.msk.msra.mxu1 %vm703_vm2, %v1921_v23 }
 0xd2d   :  { %3625 = vmatprep.subr.mxu1 %v3946_v56 }
 0xd2f   :  { %3602 = vmatmul.mubr.msk.f32.vlgmr.msra.gmra.mxu1 %vm703_vm2, %v5030_v34  ;;  %v2201_v24 = vpop.permute.xlu1 %2200 }
 0xd30   :  { %3626 = vmatpush3.xpose.msk.msra.mxu1 %vm703_vm2, %v2201_v24  ;;  %3604 = vmatprep.mubr.msk.f32.mxu1 %vm3947_vm1, %v3946_v56 }
 0xd31   :  { %3627 = vmatprep.subr.mxu1 %v3946_v56 }
 0xd33   :  { %3605 = vmatmul.mubr.msk.f32.gmra.mxu1 %vm703_vm2, %v5025_v33  ;;  %v2199_v50 = vpop.permute.xlu1 %2198 }
 0xd34   :  { %3628 = vmatpush3.xpose.msk.msra.mxu1 %vm703_vm2, %v2199_v50  ;;  %3607 = vmatprep.mubr.msk.f32.mxu1 %vm3947_vm1, %v3946_v56 }
 0xd35   :  { %3629 = vmatprep.subr.mxu1 %v3946_v56 }
 0xd37   :  { %3608 = vmatmul.mubr.msk.f32.gmra.mxu1 %vm703_vm2, %v5019_v30  ;;  %v2197_v48 = vpop.permute.xlu1 %2196 }
 0xd38   :  { %3630 = vmatpush3.xpose.msk.msra.mxu1 %vm703_vm2, %v2197_v48  ;;  %3631 = vmatprep.mubr.msk.f32.mxu1 %vm3947_vm1, %v3946_v56 }
 0xd39   :  { %3655 = vmatprep.subr.mxu1 %v3946_v56 }
 0xd3b   :  { %v2191_v51 = vpop.permute.xlu1 %2190 }
 0xd3c   :  { %3632 = vmatmul.mubr.msk.f32.vlgmr.msra.gmra.mxu1 %vm703_vm2, %v2191_v51 }
 0xd3d   :  { %3634 = vmatprep.mubr.msk.f32.mxu1 %vm3947_vm1, %v3946_v56 }
 0xd3f   :  { %v2475_v52 = vpop.permute.xlu1 %2474 }
 0xd40   :  { %3656 = vmatpush3.xpose.msk.msra.mxu1 %vm703_vm2, %v2475_v52 }
 0xd41   :  { %3657 = vmatprep.subr.mxu1 %v3946_v56 }
 0xd43   :  { %v2473_v53 = vpop.permute.xlu1 %2472 }
 0xd44   :  { %3658 = vmatpush3.xpose.msk.msra.mxu1 %vm703_vm2, %v2473_v53 }
 0xd45   :  { %3659 = vmatprep.subr.mxu1 %v3946_v56 }
 0xd47   :  { %v2195_v32 = vpop.permute.xlu1 %2194 }
 0xd4b   :  { %v2471_v36 = vpop.permute.xlu1 %2470 }
 0xd4c   :  { %3660 = vmatpush3.xpose.msk.msra.mxu1 %vm703_vm2, %v2471_v36 }
 0xd4d   :  { %3685 = vmatprep.subr.mxu1 %v3946_v56 }
 0xd4f   :  { %v2749_v12 = vpop.permute.xlu1 %2748 }
 0xd53   :  { %v2747_v35 = vpop.permute.xlu1 %2746 }
 0xd57   :  { %v2745_v17 = vpop.permute.xlu1 %2744 }
 0xd5b   :  { %v5130_v9 = vpop.permute.xlu1 %2740 }
 0xd5f   :  { %v2064_v45 = vpop.permute.xlu1 %2063 }
 0xd60   :  { %3611 = vmatpush3.xpose.msk.msra.mxu0 %vm703_vm2, %v2064_v45 }
 0xd61   :  { %3612 = vmatprep.subr.mxu0 %v3946_v56 }
 0xd63   :  { %v2060_v25 = vpop.permute.xlu1 %2059 }
 0xd67   :  { %v2338_v26 = vpop.permute.xlu1 %2337 }
 0xde1   :  { %v1910_v58 = vpop.f32.mrf.mxu1 }
 0xde2   :  { %v1911_v13 = vadd.f32 %v3365_v57, %v1910_v58 }
 0xde3   :  { %v3594_v14 = vpop.f32.mrf.mxu1 }
 0xde4   :  { %v5140_v18 = vadd.f32 %v3036_v39, %v1911_v13 }
 0xde6   :  { %v3040_v15 = vsel %vm74_vm0, %v5140_v18, 0.0 }
 0xde7   :  { %3041 = vadd.xlane.f32.xlu0 %v3040_v15 }
 0xdef   :  { %v5144_v49 = vpop.f32.mrf.mxu1 }
 0xdf0   :  { %v2019_v20 = vsel %vm2018_vm13, %v5144_v49, -inf }
 0xdf1   :  { %2020 = vmax.xlane.f32.xlu1 %v2019_v20  ;;  %v3603_v1 = vpop.f32.mrf.mxu1 }
 0xdf3   :  { %v5148_v43 = vpop.f32.mrf.mxu1 }
 0xdf4   :  { %v2022_v5 = vsel %vm2018_vm13, %v5148_v43, -inf }
 0xdf5   :  { %v3606_v28 = vpop.f32.mrf.mxu1 }
 0xdf7   :  { %v5150_v29 = vpop.f32.mrf.mxu1 }
 0xdf8   :  { %v2026_v7 = vsel %vm2025_vm14, %v5150_v29, -inf }
 0xdf9   :  { %v3609_v60 = vpop.f32.mrf.mxu1 }
 0xdfa   :  { %v3165_v60 = vld [vmem:[%s5701_s12 + $0x38] sm:$0xff] }
 0xdfc   :  { %v5152_v61 = vpop.f32.mrf.mxu1 }
 0xdfd   :  { %2192 = vrot.lane.b32.xlu0 %v5025_v33, %s3954_s23 }
 0xdfe   :  { %v3633_v10 = vpop.f32.mrf.mxu1 }
 0xdff   :  { %v3164_v10 = vld [vmem:[%s5701_s12 + $0x30] sm:$0xff] }
 0xe70   :  { %v3042_v44 = vpop.xlane.xlu0 %3041 }
 0xe71   :  { %v3043_v63 = vmul.f32 0.03125, %v3042_v44  ;;  %v3163_v44 = vld [vmem:[%s5701_s12 + $0x28] sm:$0xff] }
 0xe73   :  { %v5157_v37 = vsub.f32 %v5140_v18, %v3043_v63  ;;  %v3162_v63 = vld [vmem:[%s5701_s12 + $0x20] sm:$0xff] }
 0xe74   :  { %v2193_v11 = vpop.permute.xlu0 %2192 }
 0xe75   :  { %3635 = vmatmul.mubr.msk.f32.gmra.mxu1 %vm703_vm2, %v2193_v11  ;;  %v3045_v2 = vmul.f32 %v5157_v37, %v5157_v37  ;;  %v3160_v11 = vld [vmem:[%s5701_s12 + $0x10] sm:$0xff] }
 0xe76   :  { %3637 = vmatprep.mubr.msk.f32.mxu1 %vm3947_vm1, %v3946_v56 }
 0xe77   :  { %v3046_v3 = vsel %vm74_vm0, %v3045_v2, 0.0  ;;  %v3159_v2 = vld [vmem:[%s5701_s12 + $0x8] sm:$0xff] }
 0xe78   :  { %3047 = vadd.xlane.f32.xlu0 %v3046_v3  ;;  %v3158_v3 = vld [vmem:[%s5701_s12] sm:$0xff] }
 0xe79   :  { %3638 = vmatmul.mubr.msk.f32.gmra.mxu1 %vm703_vm2, %v2195_v32 }
 0xe7a   :  { %3661 = vmatprep.mubr.msk.f32.mxu1 %vm3947_vm1, %v3946_v56 }
 0xe7d   :  { %3662 = vmatmul.mubr.msk.f32.vlgmr.msra.gmra.mxu1 %vm703_vm2, %v5056_v42 }
 0xe7e   :  { %3686 = vmatpush3.xpose.msk.msra.mxu1 %vm703_vm2, %v2749_v12  ;;  %3664 = vmatprep.mubr.msk.f32.mxu1 %vm3947_vm1, %v3946_v56 }
 0xe7f   :  { %3687 = vmatprep.subr.mxu1 %v3946_v56 }
 0xe81   :  { %3665 = vmatmul.mubr.msk.f32.gmra.mxu1 %vm703_vm2, %v5049_v38 }
 0xe82   :  { %3688 = vmatpush3.xpose.msk.msra.mxu1 %vm703_vm2, %v2747_v35  ;;  %3667 = vmatprep.mubr.msk.f32.mxu1 %vm3947_vm1, %v3946_v56 }
 0xe83   :  { %3689 = vmatprep.subr.mxu1 %v3946_v56 }
 0xe85   :  { %3668 = vmatmul.mubr.msk.f32.gmra.mxu1 %vm703_vm2, %v5043_v6 }
 0xe86   :  { %3690 = vmatpush3.xpose.msk.msra.mxu1 %vm703_vm2, %v2745_v17  ;;  %3691 = vmatprep.mubr.msk.f32.mxu1 %vm3947_vm1, %v3946_v56 }
 0xe87   :  { %3715 = vmatprep.subr.mxu1 %v3946_v56 }
 0xe8e   :  { %2738 = vrot.lane.b32.xlu0 %v5056_v42, %s3954_s23 }
 0xe92   :  { %2742 = vrot.lane.b32.xlu0 %v5043_v6, %s3954_s23  ;;  %s3962_s23 = smov [#allocation2]  }
 0xe93   :  { %s3256_s25 = sshll.u32 %s3962_s23, 4  ;;  %s3257_s25 = int_to_ptr.vmem [resolvable:$true] %s3256_s25 }
 0xe94   :  { %p3929_p1 = scmp.lt.s32.totalorder %s3257_s25, %s3257_s25 }
 0xe96   :  { %2061 = vrot.lane.b32.xlu0 %v5025_v33, %s3950_s20 }
 0xe9a   :  { %2053 = vrot.lane.b32.xlu0 %v5030_v34, %s3951_s21 }
 0xe9e   :  { %2055 = vrot.lane.b32.xlu0 %v5025_v33, %s3951_s21 }
 0xea2   :  { %2057 = vrot.lane.b32.xlu0 %v5019_v30, %s3951_s21 }
 0xea6   :  { %2327 = vrot.lane.b32.xlu0 %v5030_v34, %s3957_s26  ;;  %v2336_v34 = vpop.permute.xlu1 %2335 }
 0xeaa   :  { %2329 = vrot.lane.b32.xlu0 %v5025_v33, %s3957_s26  ;;  %v2334_v8 = vpop.permute.xlu1 %2333 }
 0xeae   :  { %2331 = vrot.lane.b32.xlu0 %v5019_v30, %s3957_s26  ;;  %v3069_v30 = vld [vmem:[%s5699_s10 + $0x10] sm:$0xff]  ;;  %v2612_v59 = vpop.permute.xlu1 %2611 }
 0xeb2   :  { %2601 = vrot.lane.b32.xlu0 %v5056_v42, %s3951_s21  ;;  %v2610_v0 = vpop.permute.xlu1 %2609 }
 0xeb6   :  { %2603 = vrot.lane.b32.xlu0 %v5049_v38, %s3951_s21  ;;  %v2608_v50 = vpop.permute.xlu1 %2607 }
 0xeba   :  { %2605 = vrot.lane.b32.xlu0 %v5043_v6, %s3951_s21  ;;  %v2886_v51 = vpop.permute.xlu1 %2885 }
 0xebe   :  { %2875 = vrot.lane.b32.xlu0 %v5056_v42, %s3957_s26  ;;  %v3415_v42 = vld [vmem:[%s5697_s8] ss:$0 sm:$0xff]  ;;  %v2884_v32 = vpop.permute.xlu1 %2883 }
 0xec2   :  { %2879 = vrot.lane.b32.xlu0 %v5043_v6, %s3957_s26  ;;  %v2882_v12 = vpop.permute.xlu1 %2881  ;;  %s3924_s26 = scalar_lea.vmem %s3257_s25, 128 }
 0xec3   :  { %p3925_p0 = scmp.ne.s32.totalorder %s3257_s25, %s3924_s26  ;;  %p3930_p2 = scmp.lt.s32.totalorder %s3924_s26, %s3924_s26 }
 0xec5   :  { %p3931_p3 = por %p3930_p2, %p3929_p1 }
 0xec6   :  { %v2878_v58 = vpop.permute.xlu1 %2877 }
 0xec7   :  { %p3932_p4 = pnand %p3931_p3, %p3925_p0 }
 0xee1   :  { %2023 = vmax.xlane.f32.xlu0 %v2022_v5 }
 0xee5   :  { %2027 = vmax.xlane.f32.xlu0 %v2026_v7 }
 0xf01   :  { %v3048_v19 = vpop.xlane.xlu0 %3047 }
 0xf02   :  { %v3049_v41 = vmul.f32 0.03125, %v3048_v19 }
 0xf04   :  { %v3050_v16 = vadd.f32 1e-05, %v3049_v41 }
 0xf05   :  { %v2739_v27 = vpop.permute.xlu0 %2738 }
 0xf06   :  { %3822 = vrsqrt.f32 %v3050_v16  ;;  %3692 = vmatmul.mubr.msk.f32.vlgmr.msra.gmra.mxu1 %vm703_vm2, %v2739_v27 }
 0xf07   :  { %3694 = vmatprep.mubr.msk.f32.mxu1 %vm3947_vm1, %v3946_v56  ;;  %3716 = vmatpush3.msra.mxu1 %v3070_v54 }
 0xf08   :  { %3717 = vmatprep.subr.mxu1 %v3946_v56 }
 0xf09   :  { %v2743_v33 = vpop.permute.xlu0 %2742  ;;  %3718 = vmatpush3.msra.mxu1 %v3069_v30 }
 0xf0a   :  { %3695 = vmatmul.mubr.msk.f32.gmra.mxu1 %vm703_vm2, %v5130_v9  ;;  %3719 = vmatprep.subr.mxu1 %v3946_v56 }
 0xf0b   :  { %3697 = vmatprep.mubr.msk.f32.mxu1 %vm3947_vm1, %v3946_v56  ;;  %3720 = vmatpush3.msra.mxu1 %v3068_v31 }
 0xf0c   :  { %3721 = vmatprep.subr.mxu1 %v3946_v56 }
 0xf0d   :  { %v2062_v6 = vpop.permute.xlu0 %2061  ;;  %3722 = vmatpush3.msra.mxu1 %v3067_v55 }
 0xf0e   :  { %3613 = vmatpush3.xpose.msk.msra.mxu0 %vm703_vm2, %v2062_v6  ;;  %3698 = vmatmul.mubr.msk.f32.gmra.mxu1 %vm703_vm2, %v2743_v33 }
 0xf0f   :  { %3614 = vmatprep.subr.mxu0 %v3946_v56  ;;  %3723 = vmatprep.mubr.msk.f32.mxu1 %vm3947_vm1, %v3946_v56 }
 0xf11   :  { %v2054_v38 = vpop.permute.xlu0 %2053 }
 0xf12   :  { %3615 = vmatpush3.xpose.msk.msra.mxu0 %vm703_vm2, %v2060_v25 }
 0xf13   :  { %v3823_v40 = vpop.eup %3822  ;;  %3640 = vmatprep.subr.mxu0 %v3946_v56 }
 0xf14   :  { %v3052_v4 = vmul.f32 %v3823_v40, %v5157_v37  ;;  %v3161_v37 = vld [vmem:[%s5701_s12 + $0x18] sm:$0xff]  ;;  %v2294_v40 = vsel %vm2018_vm13, %v5152_v61, -inf }
 0xf15   :  { %v2056_v21 = vpop.permute.xlu0 %2055  ;;  %3617 = vmatmul.mubr.msk.f32.vlgmr.msra.gmra.mxu0 %vm703_vm2, %v2054_v38 }
 0xf16   :  { %v3059_v62 = vmul.f32 %v3415_v42, %v3052_v4  ;;  %3641 = vmatpush3.xpose.msk.msra.mxu0 %vm703_vm2, %v2338_v26  ;;  %3619 = vmatprep.mubr.msk.f32.mxu0 %vm3947_vm1, %v3946_v56 }
 0xf17   :  { %3642 = vmatprep.subr.mxu0 %v3946_v56 }
 0xf18   :  { %v3066_v46 = vadd.f32 %v3416_v22, %v3059_v62 }
 0xf19   :  { %v2058_v47 = vpop.permute.xlu0 %2057  ;;  %3620 = vmatmul.mubr.msk.f32.gmra.mxu0 %vm703_vm2, %v2056_v21 }
 0xf1a   :  { %3643 = vmatpush3.xpose.msk.msra.mxu0 %vm703_vm2, %v2336_v34  ;;  %3724 = vmatmul.mubr.msk.f32.vlgmr.msra.gmra.mxu1 %vm74_vm0, %v3066_v46 }
 0xf1b   :  { %3622 = vmatprep.mubr.msk.f32.mxu0 %vm3947_vm1, %v3946_v56  ;;  %3644 = vmatprep.subr.mxu0 %v3946_v56 }
 0xf1d   :  { %v2328_v23 = vpop.permute.xlu0 %2327  ;;  %3623 = vmatmul.mubr.msk.f32.gmra.mxu0 %vm703_vm2, %v2058_v47 }
 0xf1e   :  { %3645 = vmatpush3.xpose.msk.msra.mxu0 %vm703_vm2, %v2334_v8  ;;  %3646 = vmatprep.mubr.msk.f32.mxu0 %vm3947_vm1, %v3946_v56 }
 0xf1f   :  { %3670 = vmatprep.subr.mxu0 %v3946_v56 }
 0xf21   :  { %v2330_v24 = vpop.permute.xlu0 %2329  ;;  %3647 = vmatmul.mubr.msk.f32.vlgmr.msra.gmra.mxu0 %vm703_vm2, %v2328_v23 }
 0xf22   :  { %3671 = vmatpush3.xpose.msk.msra.mxu0 %vm703_vm2, %v2612_v59  ;;  %3649 = vmatprep.mubr.msk.f32.mxu0 %vm3947_vm1, %v3946_v56 }
 0xf23   :  { %3672 = vmatprep.subr.mxu0 %v3946_v56 }
 0xf25   :  { %v2332_v48 = vpop.permute.xlu0 %2331  ;;  %3650 = vmatmul.mubr.msk.f32.gmra.mxu0 %vm703_vm2, %v2330_v24 }
 0xf26   :  { %3673 = vmatpush3.xpose.msk.msra.mxu0 %vm703_vm2, %v2610_v0  ;;  %3652 = vmatprep.mubr.msk.f32.mxu0 %vm3947_vm1, %v3946_v56 }
 0xf27   :  { %3674 = vmatprep.subr.mxu0 %v3946_v56 }
 0xf29   :  { %v2602_v52 = vpop.permute.xlu0 %2601  ;;  %3653 = vmatmul.mubr.msk.f32.gmra.mxu0 %vm703_vm2, %v2332_v48 }
 0xf2a   :  { %3675 = vmatpush3.xpose.msk.msra.mxu0 %vm703_vm2, %v2608_v50  ;;  %3676 = vmatprep.mubr.msk.f32.mxu0 %vm3947_vm1, %v3946_v56 }
 0xf2b   :  { %3700 = vmatprep.subr.mxu0 %v3946_v56 }
 0xf2d   :  { %v2604_v53 = vpop.permute.xlu0 %2603  ;;  %3677 = vmatmul.mubr.msk.f32.vlgmr.msra.gmra.mxu0 %vm703_vm2, %v2602_v52 }
 0xf2e   :  { %3701 = vmatpush3.xpose.msk.msra.mxu0 %vm703_vm2, %v2886_v51  ;;  %3679 = vmatprep.mubr.msk.f32.mxu0 %vm3947_vm1, %v3946_v56 }
 0xf2f   :  { %3702 = vmatprep.subr.mxu0 %v3946_v56 }
 0xf31   :  { %3680 = vmatmul.mubr.msk.f32.gmra.mxu0 %vm703_vm2, %v2604_v53  ;;  %v2606_v36 = vpop.permute.xlu0 %2605 }
 0xf32   :  { %3703 = vmatpush3.xpose.msk.msra.mxu0 %vm703_vm2, %v2884_v32  ;;  %3682 = vmatprep.mubr.msk.f32.mxu0 %vm3947_vm1, %v3946_v56 }
 0xf33   :  { %3704 = vmatprep.subr.mxu0 %v3946_v56 }
 0xf35   :  { %v5295_v35 = vpop.f32.mrf.mxu1  ;;  %3683 = vmatmul.mubr.msk.f32.gmra.mxu0 %vm703_vm2, %v2606_v36  ;;  %v2876_v9 = vpop.permute.xlu0 %2875 }
 0xf36   :  { %3705 = vmatpush3.xpose.msk.msra.mxu0 %vm703_vm2, %v2882_v12  ;;  %3706 = vmatprep.mubr.msk.f32.mxu0 %vm3947_vm1, %v3946_v56  ;;  %v2297_v59 = vsel %vm2018_vm13, %v5295_v35, -inf }
 0xf37   :  { %v3636_v17 = vpop.f32.mrf.mxu1  ;;  %3726 = vmatprep.subr.mxu0 %v3946_v56 }
 0xf39   :  { %v5302_v45 = vpop.f32.mrf.mxu1  ;;  %3707 = vmatmul.mubr.msk.f32.vlgmr.msra.gmra.mxu0 %vm703_vm2, %v2876_v9  ;;  %v2880_v14 = vpop.permute.xlu0 %2879 }
 0xf3a   :  { %3709 = vmatprep.mubr.msk.f32.mxu0 %vm3947_vm1, %v3946_v56  ;;  %3727 = vmatpush3.msra.mxu0 %v3165_v60  ;;  %v2300_v62 = vsel %vm2025_vm14, %v5302_v45, -inf }
 0xf3b   :  { %v3639_v57 = vpop.f32.mrf.mxu1  ;;  %3728 = vmatprep.subr.mxu0 %v3946_v56 }
 0xf3c   :  { %3729 = vmatpush3.msra.mxu0 %v3164_v10 }
 0xf3d   :  { %v5307_v39 = vpop.f32.mrf.mxu1  ;;  %3710 = vmatmul.mubr.msk.f32.gmra.mxu0 %vm703_vm2, %v2878_v58  ;;  %3730 = vmatprep.subr.mxu0 %v3946_v56 }
 0xf3e   :  { %3712 = vmatprep.mubr.msk.f32.mxu0 %vm3947_vm1, %v3946_v56  ;;  %3731 = vmatpush3.msra.mxu0 %v3163_v44  ;;  %v2568_v48 = vsel %vm2018_vm13, %v5307_v39, -inf }
 0xf3f   :  { %v3663_v13 = vpop.f32.mrf.mxu1  ;;  %3732 = vmatprep.subr.mxu0 %v3946_v56 }
 0xf40   :  { %3733 = vmatpush3.msra.mxu0 %v3162_v63 }
 0xf41   :  { %v5312_v15 = vpop.f32.mrf.mxu1  ;;  %3713 = vmatmul.mubr.msk.f32.gmra.mxu0 %vm703_vm2, %v2880_v14  ;;  %3734 = vmatprep.subr.mxu0 %v3946_v56 }
 0xf42   :  { %3742 = vmatprep.mubr.msk.f32.mxu0 %vm3947_vm1, %v3946_v56  ;;  %3735 = vmatpush3.msra.mxu0 %v3161_v37  ;;  %v2571_v12 = vsel %vm2018_vm13, %v5312_v15, -inf }
 0xf43   :  { %v3666_v20 = vpop.f32.mrf.mxu1  ;;  %3736 = vmatprep.subr.mxu0 %v3946_v56 }
 0xf44   :  { %3737 = vmatpush3.msra.mxu0 %v3160_v11 }
 0xf45   :  { %v5317_v1 = vpop.f32.mrf.mxu1  ;;  %3738 = vmatprep.subr.mxu0 %v3946_v56 }
 0xf46   :  { %3739 = vmatpush3.msra.mxu0 %v3159_v2  ;;  %v2574_v36 = vsel %vm2025_vm14, %v5317_v1, -inf }
 0xf47   :  { %v3669_v28 = vpop.f32.mrf.mxu1  ;;  %3740 = vmatprep.subr.mxu0 %v3946_v56  ;;  %v3417_v56 = vld [vmem:[%s5700_s11] ss:$0 sm:$0xff] }
 0xf48   :  { %3741 = vmatpush3.msra.mxu0 %v3158_v3 }
 0xfc6   :  { %v5350_v5 = vpop.f32.mrf.mxu1 }
 0xfc7   :  { %v2842_v28 = vsel %vm2018_vm13, %v5350_v5, -inf }
 0xfc8   :  { %v3693_v7 = vpop.f32.mrf.mxu1 }
 0xfca   :  { %v5352_v25 = vpop.f32.mrf.mxu1 }
 0xfcb   :  { %v2845_v37 = vsel %vm2018_vm13, %v5352_v25, -inf }
 0xfcc   :  { %v3696_v19 = vpop.f32.mrf.mxu1 }
 0xfce   :  { %v5354_v41 = vpop.f32.mrf.mxu1 }
 0xfcf   :  { %v2848_v63 = vsel %vm2025_vm14, %v5354_v41, -inf }
 0xfd0   :  { %v3699_v16 = vpop.f32.mrf.mxu1 }
 0xfd5   :  { %v5356_v54 = vpop.f32.mrf.mxu0 }
 0xfd6   :  { %v2157_v26 = vsel %vm2018_vm13, %v5356_v54, -inf }
 0xfd7   :  { %2158 = vmax.xlane.f32.xlu1 %v2157_v26  ;;  %v3618_v27 = vpop.f32.mrf.mxu0 }
 0xfd9   :  { %v5363_v30 = vpop.f32.mrf.mxu0 }
 0xfda   :  { %v3147_v31 = vpop.f32.mrf.mxu1  ;;  %v2160_v33 = vsel %vm2018_vm13, %v5363_v30, -inf }
 0xfdb   :  { %v5367_v55 = vadd.f32 %v3417_v56, %v3147_v31  ;;  %2161 = vmax.xlane.f32.xlu0 %v2160_v33  ;;  %v3621_v34 = vpop.f32.mrf.mxu0  ;;  %v5429_v33 = vpop.xlane.xlu0 %2023 }
 0xfdc   :  { %v3725_v6 = vpop.f32.mrf.mxu1  ;;  %v2021_v34 = vpop.xlane.xlu1 %2020 }
 0xfdd   :  { %v3151_v8 = vmul.f32 -1.702, %v5367_v55  ;;  %v5370_v38 = vpop.f32.mrf.mxu0 }
 0xfde   :  { %v2163_v42 = vsel %vm2025_vm14, %v5370_v38, -inf }
 0xfdf   :  { %v3152_v4 = vmul.f32 1.442695, %v3151_v8  ;;  %2295 = vmax.xlane.f32.xlu0 %v2294_v40  ;;  %2164 = vmax.xlane.f32.xlu1 %v2163_v42  ;;  %v3624_v21 = vpop.f32.mrf.mxu0  ;;  %v2028_v6 = vpop.xlane.xlu0 %2027 }
 0xfe1   :  { %3824 = vpow2.f32 %v3152_v4  ;;  %v5376_v22 = vpop.f32.mrf.mxu0 }
 0xfe2   :  { %v2431_v0 = vsel %vm2018_vm13, %v5376_v22, -inf }
 0xfe3   :  { %2301 = vmax.xlane.f32.xlu0 %v2300_v62  ;;  %2298 = vmax.xlane.f32.xlu1 %v2297_v59  ;;  %v3648_v46 = vpop.f32.mrf.mxu0 }
 0xfe5   :  { %v5382_v47 = vpop.f32.mrf.mxu0 }
 0xfe6   :  { %v2434_v23 = vsel %vm2018_vm13, %v5382_v47, -inf }
 0xfe7   :  { %2432 = vmax.xlane.f32.xlu1 %v2431_v0  ;;  %2435 = vmax.xlane.f32.xlu0 %v2434_v23  ;;  %v3651_v24 = vpop.f32.mrf.mxu0 }
 0xfe9   :  { %v5388_v50 = vpop.f32.mrf.mxu0 }
 0xfea   :  { %v2437_v51 = vsel %vm2025_vm14, %v5388_v50, -inf }
 0xfeb   :  { %2569 = vmax.xlane.f32.xlu0 %v2568_v48  ;;  %2438 = vmax.xlane.f32.xlu1 %v2437_v51  ;;  %v3654_v52 = vpop.f32.mrf.mxu0 }
 0xfed   :  { %v5394_v53 = vpop.f32.mrf.mxu0 }
 0xfee   :  { %v3825_v32 = vpop.eup %3824  ;;  %v2705_v58 = vsel %vm2018_vm13, %v5394_v53, -inf }
 0xfef   :  { %v3154_v17 = vadd.f32 1.0, %v3825_v32  ;;  %2575 = vmax.xlane.f32.xlu0 %v2574_v36  ;;  %2572 = vmax.xlane.f32.xlu1 %v2571_v12  ;;  %v3678_v9 = vpop.f32.mrf.mxu0 }
 0xff1   :  { %3826 = vrcp.f32 %v3154_v17  ;;  %v5400_v57 = vpop.f32.mrf.mxu0 }
 0xff2   :  { %v2708_v13 = vsel %vm2018_vm13, %v5400_v57, -inf }
 0xff3   :  { %2706 = vmax.xlane.f32.xlu1 %v2705_v58  ;;  %2709 = vmax.xlane.f32.xlu0 %v2708_v13  ;;  %v3681_v14 = vpop.f32.mrf.mxu0 }
 0xff5   :  { %v5406_v20 = vpop.f32.mrf.mxu0 }
 0xff6   :  { %v2711_v60 = vsel %vm2025_vm14, %v5406_v20, -inf }
 0xff7   :  { %2843 = vmax.xlane.f32.xlu0 %v2842_v28  ;;  %2712 = vmax.xlane.f32.xlu1 %v2711_v60  ;;  %v3684_v10 = vpop.f32.mrf.mxu0 }
 0xff9   :  { %v5412_v44 = vpop.f32.mrf.mxu0 }
 0xffa   :  { %v2979_v7 = vsel %vm2018_vm13, %v5412_v44, -inf }
 0xffb   :  { %2849 = vmax.xlane.f32.xlu0 %v2848_v63  ;;  %2846 = vmax.xlane.f32.xlu1 %v2845_v37  ;;  %v3708_v11 = vpop.f32.mrf.mxu0 }
 0xffd   :  { %v5418_v2 = vpop.f32.mrf.mxu0 }
 0xffe   :  { %v3827_v3 = vpop.eup %3826  ;;  %v2982_v19 = vsel %vm2018_vm13, %v5418_v2, -inf }
 0xfff   :  { %v3157_v16 = vmul.f32 %v3827_v3, %v5367_v55  ;;  %2980 = vmax.xlane.f32.xlu1 %v2979_v7  ;;  %2983 = vmax.xlane.f32.xlu0 %v2982_v19  ;;  %v3711_v26 = vpop.f32.mrf.mxu0 }
0x1001   :  { %v5425_v27 = vpop.f32.mrf.mxu0  ;;  %3743 = vmatmul.mubr.msk.f32.vlgmr.msra.gmra.mxu0 %vm3166_vm15, %v3157_v16 }
0x1002   :  { %v2985_v56 = vsel %vm2025_vm14, %v5425_v27, -inf }
0x1003   :  { %2986 = vmax.xlane.f32.xlu1 %v2985_v56  ;;  %v3714_v31 = vpop.f32.mrf.mxu0 }
0x1060   :  { %v2159_v8 = vpop.xlane.xlu1 %2158 }
0x1061   :  { %v2166_v40 = vsub.f32 %v5356_v54, %v2159_v8 }
0x1063   :  { %v2169_v42 = vmul.f32 1.442695, %v2166_v40 }
0x1064   :  { %v2162_v55 = vpop.xlane.xlu0 %2161 }
0x1065   :  { %3828 = vpow2.f32 %v2169_v42  ;;  %v2167_v4 = vsub.f32 %v5363_v30, %v2162_v55 }
0x1067   :  { %v2171_v21 = vmul.f32 1.442695, %v2167_v4 }
0x1068   :  { %v2296_v62 = vpop.xlane.xlu0 %2295  ;;  %v2165_v59 = vpop.xlane.xlu1 %2164 }
0x1069   :  { %3830 = vpow2.f32 %v2171_v21  ;;  %v2168_v46 = vsub.f32 %v5370_v38, %v2165_v59 }
0x106b   :  { %v2173_v0 = vmul.f32 1.442695, %v2168_v46 }
0x106c   :  { %v2302_v23 = vpop.xlane.xlu0 %2301  ;;  %v5434_v24 = vpop.xlane.xlu1 %2298 }
0x106d   :  { %3832 = vpow2.f32 %v2173_v0  ;;  %v2305_v42 = vsub.f32 %v5302_v45, %v2302_v23 }
0x1070   :  { %v2436_v48 = vpop.xlane.xlu0 %2435  ;;  %v2433_v51 = vpop.xlane.xlu1 %2432 }
0x1071   :  { %v2441_v54 = vsub.f32 %v5382_v47, %v2436_v48  ;;  %v2440_v52 = vsub.f32 %v5376_v22, %v2433_v51  ;;  %v2029_v47 = vsub.f32 %v5144_v49, %v2021_v34  ;;  %v2031_v49 = vsub.f32 %v5150_v29, %v2028_v6 }
0x1072   :  { %v5438_v32 = vpop.eup %3828  ;;  %v2304_v48 = vsub.f32 %v5295_v35, %v5434_v24 }
0x1073   :  { %v2445_v30 = vmul.f32 1.442695, %v2441_v54  ;;  %v2443_v36 = vmul.f32 1.442695, %v2440_v52  ;;  %v2175_v12 = vsel %vm2018_vm13, %v5438_v32, 0.0 }
0x1074   :  { %v2570_v17 = vpop.xlane.xlu0 %2569  ;;  %2176 = vadd.xlane.f32.xlu1 %v2175_v12  ;;  %v2439_v38 = vpop.xlane.xlu1 %2438  ;;  %v2032_v10 = vmul.f32 1.442695, %v2029_v47  ;;  %v2036_v34 = vmul.f32 1.442695, %v2031_v49  ;;  %v2308_v54 = vmul.f32 1.442695, %v2304_v48 }
0x1075   :  { %3834 = vpow2.f32 %v2445_v30  ;;  %v2442_v9 = vsub.f32 %v5388_v50, %v2439_v38  ;;  %v2577_v59 = vsub.f32 %v5307_v39, %v2570_v17 }
0x1076   :  { %v5443_v58 = vpop.eup %3830  ;;  %3836 = vpow2.f32 %v2443_v36 }
0x1077   :  { %v2447_v13 = vmul.f32 1.442695, %v2442_v9  ;;  %v2178_v22 = vsel %vm2018_vm13, %v5443_v58, 0.0  ;;  %v2580_v51 = vmul.f32 1.442695, %v2577_v59 }
0x1078   :  { %v5448_v14 = vpop.xlane.xlu0 %2575  ;;  %2179 = vadd.xlane.f32.xlu0 %v2178_v22  ;;  %v5450_v28 = vpop.xlane.xlu1 %2572 }
0x1079   :  { %3838 = vpow2.f32 %v2447_v13  ;;  %v2578_v35 = vsub.f32 %v5312_v15, %v5450_v28 }
0x107a   :  { %v5452_v60 = vpop.eup %3832  ;;  %3840 = vpow2.f32 %v2032_v10 }
0x107b   :  { %v2181_v50 = vsel %vm2025_vm14, %v5452_v60, 0.0  ;;  %v2582_v38 = vmul.f32 1.442695, %v2578_v35 }
0x107c   :  { %v2710_v63 = vpop.xlane.xlu0 %2709  ;;  %v2707_v37 = vpop.xlane.xlu1 %2706  ;;  %2182 = vadd.xlane.f32.xlu1 %v2181_v50 }
0x107d   :  { %v2715_v11 = vsub.f32 %v5400_v57, %v2710_v63  ;;  %v2714_v3 = vsub.f32 %v5394_v53, %v2707_v37  ;;  %v2303_v57 = vsub.f32 %v5152_v61, %v2296_v62  ;;  %v2030_v61 = vsub.f32 %v5148_v43, %v5429_v33 }
0x107e   :  { %v2310_v62 = vmul.f32 1.442695, %v2305_v42 }
0x107f   :  { %v2719_v7 = vmul.f32 1.442695, %v2715_v11  ;;  %v2717_v19 = vmul.f32 1.442695, %v2714_v3  ;;  %v2306_v40 = vmul.f32 1.442695, %v2303_v57 }
0x1080   :  { %v2713_v16 = vpop.xlane.xlu1 %2712  ;;  %v2034_v0 = vmul.f32 1.442695, %v2030_v61  ;;  %v2844_v45 = vpop.xlane.xlu0 %2843 }
0x1081   :  { %3842 = vpow2.f32 %v2719_v7  ;;  %v2716_v26 = vsub.f32 %v5406_v20, %v2713_v16 }
0x1082   :  { %v5460_v56 = vpop.eup %3834  ;;  %3844 = vpow2.f32 %v2717_v19 }
0x1083   :  { %v5462_v31 = vpop.eup %3836  ;;  %v2721_v8 = vmul.f32 1.442695, %v2716_v26  ;;  %v2452_v53 = vsel %vm2018_vm13, %v5460_v56, 0.0 }
0x1084   :  { %2453 = vadd.xlane.f32.xlu0 %v2452_v53  ;;  %v2449_v29 = vsel %vm2018_vm13, %v5462_v31, 0.0  ;;  %v2847_v6 = vpop.xlane.xlu1 %2846  ;;  %v2850_v52 = vpop.xlane.xlu0 %2849 }
0x1085   :  { %2450 = vadd.xlane.f32.xlu1 %v2449_v29  ;;  %3846 = vpow2.f32 %v2721_v8  ;;  %v2852_v15 = vsub.f32 %v5352_v25, %v2847_v6  ;;  %v2853_v47 = vsub.f32 %v5354_v41, %v2850_v52 }
0x1086   :  { %v5469_v20 = vpop.eup %3838  ;;  %3848 = vpow2.f32 %v2036_v34 }
0x1087   :  { %v2455_v55 = vsel %vm2025_vm14, %v5469_v20, 0.0  ;;  %3850 = vpow2.f32 %v2306_v40  ;;  %v5480_v23 = vpop.eup %3840  ;;  %v2856_v28 = vmul.f32 1.442695, %v2852_v15  ;;  %v2858_v50 = vmul.f32 1.442695, %v2853_v47 }
0x1088   :  { %v2981_v4 = vpop.xlane.xlu1 %2980  ;;  %v2038_v12 = vsel %vm2018_vm13, %v5480_v23, 0.0  ;;  %v2984_v10 = vpop.xlane.xlu0 %2983 }
0x1089   :  { %2456 = vadd.xlane.f32.xlu1 %v2455_v55  ;;  %v2988_v21 = vsub.f32 %v5412_v44, %v2981_v4  ;;  %v2579_v44 = vsub.f32 %v5317_v1, %v5448_v14  ;;  %v2851_v1 = vsub.f32 %v5350_v5, %v2844_v45  ;;  %v2989_v37 = vsub.f32 %v5418_v2, %v2984_v10  ;;  %v3420_v45 = vld [vmem:[%s5702_s13] ss:$0 sm:$0xff] }
0x108b   :  { %v2991_v46 = vmul.f32 1.442695, %v2988_v21  ;;  %v2584_v36 = vmul.f32 1.442695, %v2579_v44  ;;  %v2854_v22 = vmul.f32 1.442695, %v2851_v1 }
0x108c   :  { %v2987_v13 = vpop.xlane.xlu1 %2986 }
0x108d   :  { %3852 = vpow2.f32 %v2991_v46  ;;  %v2990_v25 = vsub.f32 %v5425_v27, %v2987_v13  ;;  %v2993_v27 = vmul.f32 1.442695, %v2989_v37 }
0x108e   :  { %v5482_v43 = vpop.eup %3842  ;;  %3854 = vpow2.f32 %v2310_v62 }
0x108f   :  { %v5484_v33 = vpop.eup %3844  ;;  %v2726_v39 = vsel %vm2018_vm13, %v5482_v43, 0.0  ;;  %3856 = vpow2.f32 %v2034_v0  ;;  %v2995_v3 = vmul.f32 1.442695, %v2990_v25 }
0x1090   :  { %2727 = vadd.xlane.f32.xlu0 %v2726_v39  ;;  %v2723_v24 = vsel %vm2018_vm13, %v5484_v33, 0.0  ;;  %3858 = vpow2.f32 %v2580_v51 }
0x1091   :  { %2724 = vadd.xlane.f32.xlu1 %v2723_v24  ;;  %3860 = vpow2.f32 %v2308_v54 }
0x1092   :  { %v5494_v30 = vpop.eup %3846  ;;  %3862 = vpow2.f32 %v2584_v36 }
0x1093   :  { %v5499_v17 = vpop.eup %3848  ;;  %v2729_v9 = vsel %vm2025_vm14, %v5494_v30, 0.0  ;;  %3864 = vpow2.f32 %v2582_v38 }
0x1094   :  { %2039 = vadd.xlane.f32.xlu0 %v2038_v12  ;;  %v2044_v5 = vsel %vm2025_vm14, %v5499_v17, 0.0  ;;  %v5507_v14 = vpop.eup %3850  ;;  %3866 = vpow2.f32 %v2854_v22 }
0x1095   :  { %2730 = vadd.xlane.f32.xlu1 %v2729_v9  ;;  %v2312_v41 = vsel %vm2018_vm13, %v5507_v14, 0.0  ;;  %3868 = vpow2.f32 %v2856_v28 }
0x1096   :  { %3870 = vpow2.f32 %v2858_v50 }
0x1097   :  { %3872 = vpow2.f32 %v2995_v3 }
0x1098   :  { %2045 = vadd.xlane.f32.xlu0 %v2044_v5  ;;  %3874 = vpow2.f32 %v2993_v27 }
0x109a   :  { %v5510_v63 = vpop.eup %3852 }
0x109b   :  { %v5515_v11 = vpop.eup %3854  ;;  %v2997_v49 = vsel %vm2018_vm13, %v5510_v63, 0.0 }
0x109c   :  { %2313 = vadd.xlane.f32.xlu0 %v2312_v41  ;;  %v5519_v7 = vpop.eup %3856  ;;  %2998 = vadd.xlane.f32.xlu1 %v2997_v49  ;;  %v2318_v19 = vsel %vm2025_vm14, %v5515_v11, 0.0 }
0x109d   :  { %v5523_v2 = vpop.eup %3858  ;;  %v2041_v16 = vsel %vm2018_vm13, %v5519_v7, 0.0 }
0x109e   :  { %v5527_v26 = vpop.eup %3860  ;;  %v2586_v34 = vsel %vm2018_vm13, %v5523_v2, 0.0 }
0x109f   :  { %v5531_v57 = vpop.eup %3862  ;;  %v2315_v8 = vsel %vm2018_vm13, %v5527_v26, 0.0 }
0x10a0   :  { %2319 = vadd.xlane.f32.xlu0 %v2318_v19  ;;  %2042 = vadd.xlane.f32.xlu1 %v2041_v16  ;;  %v5535_v53 = vpop.eup %3864  ;;  %v2592_v29 = vsel %vm2025_vm14, %v5531_v57, 0.0 }
0x10a1   :  { %v5539_v6 = vpop.eup %3866  ;;  %v2589_v40 = vsel %vm2018_vm13, %v5535_v53, 0.0 }
0x10a2   :  { %v5543_v42 = vpop.eup %3868  ;;  %v2860_v61 = vsel %vm2018_vm13, %v5539_v6, 0.0 }
0x10a3   :  { %v5547_v55 = vpop.eup %3870  ;;  %v2863_v4 = vsel %vm2018_vm13, %v5543_v42, 0.0 }
0x10a4   :  { %2587 = vadd.xlane.f32.xlu0 %v2586_v34  ;;  %2316 = vadd.xlane.f32.xlu1 %v2315_v8  ;;  %v5551_v21 = vpop.eup %3872  ;;  %v2866_v62 = vsel %vm2025_vm14, %v5547_v55, 0.0 }
0x10a5   :  { %v5555_v59 = vpop.eup %3874  ;;  %v3003_v46 = vsel %vm2025_vm14, %v5551_v21, 0.0 }
0x10a6   :  { %v3000_v0 = vsel %vm2018_vm13, %v5555_v59, 0.0 }
0x10a8   :  { %2593 = vadd.xlane.f32.xlu0 %v2592_v29  ;;  %2590 = vadd.xlane.f32.xlu1 %v2589_v40 }
0x10ac   :  { %2861 = vadd.xlane.f32.xlu0 %v2860_v61  ;;  %2864 = vadd.xlane.f32.xlu1 %v2863_v4 }
0x10b0   :  { %2867 = vadd.xlane.f32.xlu0 %v2866_v62  ;;  %3004 = vadd.xlane.f32.xlu1 %v3003_v46 }
0x10b4   :  { %3001 = vadd.xlane.f32.xlu0 %v3000_v0 }
0x10c1   :  { %v3236_v48 = vpop.f32.mrf.mxu0 }
0x10c2   :  { %v3240_v51 = vadd.f32 %v3236_v48, %v5140_v18 }
0x10c3   :  { %v3744_v44 = vpop.f32.mrf.mxu0 }
0x10c4   :  { %v3248_v39 = vadd.f32 %v3420_v45, %v3240_v51 }
0x10c6   :  { %3249 = vst.msk [vmem:[#allocation2] sm:$0xff] %vm74_vm0, %v3248_v39 }
0x10c7   :  { %3935 = shalt.err (!%p3932_p4)
}
0x10c8   :  { %3259 = dma.vmem_to_hbm [thread:$0]  %s3257_s25, 128, %s5703_s14, [#allocation3]  }
0x10fd   :  { %v2177_v54 = vpop.xlane.xlu1 %2176 }
0x10fe   :  { %3876 = vrcp.f32 %v2177_v54 }
0x1101   :  { %v2180_v18 = vpop.xlane.xlu0 %2179 }
0x1102   :  { %3878 = vrcp.f32 %v2180_v18 }
0x1105   :  { %v2183_v35 = vpop.xlane.xlu1 %2182 }
0x1106   :  { %3880 = vrcp.f32 %v2183_v35 }
0x110b   :  { %v3877_v24 = vpop.eup %3876 }
0x110c   :  { %v2185_v52 = vmul.f32 %v3877_v24, %v5438_v32 }
0x110d   :  { %v2454_v36 = vpop.xlane.xlu0 %2453 }
0x110e   :  { %3015 = vst.msk [vmem:[%s5704_s15 + $0x18] sm:$0xff] %vm2018_vm13, %v2185_v52  ;;  %3882 = vrcp.f32 %v2454_v36  ;;  %v2451_v1 = vpop.xlane.xlu1 %2450 }
0x110f   :  { %v3879_v12 = vpop.eup %3878  ;;  %3884 = vrcp.f32 %v2451_v1 }
0x1110   :  { %v2187_v38 = vmul.f32 %v3879_v12, %v5443_v58 }
0x1112   :  { %3016 = vst.msk [vmem:[%s5704_s15 + $0x20] sm:$0xff] %vm2018_vm13, %v2187_v38  ;;  %v2457_v15 = vpop.xlane.xlu1 %2456 }
0x1113   :  { %3886 = vrcp.f32 %v2457_v15  ;;  %v3881_v32 = vpop.eup %3880 }
0x1114   :  { %v2189_v9 = vmul.f32 %v3881_v32, %v5452_v60 }
0x1116   :  { %3017 = vst.msk [vmem:[%s5704_s15 + $0x28] sm:$0x1] %vm2025_vm14, %v2189_v9 }
0x1119   :  { %v2728_v13 = vpop.xlane.xlu0 %2727 }
0x111a   :  { %3888 = vrcp.f32 %v2728_v13  ;;  %v2725_v22 = vpop.xlane.xlu1 %2724 }
0x111b   :  { %v3883_v47 = vpop.eup %3882  ;;  %3890 = vrcp.f32 %v2725_v22 }
0x111c   :  { %v3885_v58 = vpop.eup %3884  ;;  %v2461_v5 = vmul.f32 %v3883_v47, %v5460_v56 }
0x111d   :  { %v2459_v28 = vmul.f32 %v3885_v58, %v5462_v31  ;;  %v2040_v10 = vpop.xlane.xlu0 %2039 }
0x111e   :  { %3022 = vst.msk [vmem:[%s5704_s15 + $0x50] sm:$0xff] %vm2018_vm13, %v2461_v5  ;;  %3892 = vrcp.f32 %v2040_v10  ;;  %v2731_v60 = vpop.xlane.xlu1 %2730 }
0x111f   :  { %3021 = vst.msk [vmem:[%s5704_s15 + $0x48] sm:$0xff] %vm2018_vm13, %v2459_v28  ;;  %3894 = vrcp.f32 %v2731_v60 }
0x1120   :  { %v3887_v25 = vpop.eup %3886 }
0x1121   :  { %v2463_v50 = vmul.f32 %v3887_v25, %v5469_v20  ;;  %v2046_v56 = vpop.xlane.xlu0 %2045 }
0x1122   :  { %3896 = vrcp.f32 %v2046_v56 }
0x1123   :  { %3023 = vst.msk [vmem:[%s5704_s15 + $0x58] sm:$0x1] %vm2025_vm14, %v2463_v50 }
0x1125   :  { %v2314_v31 = vpop.xlane.xlu0 %2313  ;;  %v2999_v37 = vpop.xlane.xlu1 %2998 }
0x1126   :  { %3898 = vrcp.f32 %v2314_v31 }
0x1127   :  { %v3889_v41 = vpop.eup %3888  ;;  %3900 = vrcp.f32 %v2999_v37 }
0x1128   :  { %v3891_v3 = vpop.eup %3890  ;;  %v2735_v49 = vmul.f32 %v3889_v41, %v5482_v43 }
0x1129   :  { %v2733_v27 = vmul.f32 %v3891_v3, %v5484_v33  ;;  %v2320_v19 = vpop.xlane.xlu0 %2319  ;;  %v2043_v20 = vpop.xlane.xlu1 %2042 }
0x112a   :  { %3028 = vst.msk [vmem:[%s5704_s15 + $0x80] sm:$0xff] %vm2018_vm13, %v2735_v49  ;;  %3902 = vrcp.f32 %v2320_v19 }
0x112b   :  { %v3893_v16 = vpop.eup %3892  ;;  %3027 = vst.msk [vmem:[%s5704_s15 + $0x78] sm:$0xff] %vm2018_vm13, %v2733_v27  ;;  %3904 = vrcp.f32 %v2043_v20 }
0x112c   :  { %v3895_v34 = vpop.eup %3894  ;;  %v2048_v43 = vmul.f32 %v3893_v16, %v5480_v23 }
0x112d   :  { %v2737_v33 = vmul.f32 %v3895_v34, %v5494_v30  ;;  %v2588_v8 = vpop.xlane.xlu0 %2587  ;;  %v2317_v29 = vpop.xlane.xlu1 %2316 }
0x112e   :  { %3012 = vst.msk [vmem:[%s5704_s15] sm:$0xff] %vm2018_vm13, %v2048_v43  ;;  %3906 = vrcp.f32 %v2588_v8 }
0x112f   :  { %v3897_v40 = vpop.eup %3896  ;;  %3029 = vst.msk [vmem:[%s5704_s15 + $0x88] sm:$0x1] %vm2025_vm14, %v2737_v33  ;;  %3908 = vrcp.f32 %v2317_v29 }
0x1130   :  { %v2052_v61 = vmul.f32 %v3897_v40, %v5499_v17 }
0x1131   :  { %v2594_v23 = vpop.xlane.xlu0 %2593  ;;  %v2591_v30 = vpop.xlane.xlu1 %2590 }
0x1132   :  { %3014 = vst.msk [vmem:[%s5704_s15 + $0x10] sm:$0x1] %vm2025_vm14, %v2052_v61  ;;  %3910 = vrcp.f32 %v2594_v23 }
0x1133   :  { %v3899_v4 = vpop.eup %3898  ;;  %3912 = vrcp.f32 %v2591_v30 }
0x1134   :  { %v3901_v62 = vpop.eup %3900  ;;  %v2322_v46 = vmul.f32 %v3899_v4, %v5507_v14 }
0x1135   :  { %v3007_v0 = vmul.f32 %v3901_v62, %v5510_v63  ;;  %v2862_v48 = vpop.xlane.xlu0 %2861  ;;  %v2865_v17 = vpop.xlane.xlu1 %2864 }
0x1136   :  { %3018 = vst.msk [vmem:[%s5704_s15 + $0x30] sm:$0xff] %vm2018_vm13, %v2322_v46  ;;  %3914 = vrcp.f32 %v2862_v48 }
0x1137   :  { %v3903_v45 = vpop.eup %3902  ;;  %3033 = vst.msk [vmem:[%s5704_s15 + $0xa8] sm:$0xff] %vm2018_vm13, %v3007_v0  ;;  %3916 = vrcp.f32 %v2865_v17 }
0x1138   :  { %v3905_v51 = vpop.eup %3904  ;;  %v2326_v14 = vmul.f32 %v3903_v45, %v5515_v11 }
0x1139   :  { %v2050_v63 = vmul.f32 %v3905_v51, %v5519_v7  ;;  %v2868_v44 = vpop.xlane.xlu0 %2867  ;;  %v3005_v39 = vpop.xlane.xlu1 %3004 }
0x113a   :  { %3020 = vst.msk [vmem:[%s5704_s15 + $0x40] sm:$0x1] %vm2025_vm14, %v2326_v14  ;;  %3918 = vrcp.f32 %v2868_v44 }
0x113b   :  { %v3907_v54 = vpop.eup %3906  ;;  %3013 = vst.msk [vmem:[%s5704_s15 + $0x8] sm:$0xff] %vm2018_vm13, %v2050_v63  ;;  %3920 = vrcp.f32 %v3005_v39 }
0x113c   :  { %v3909_v18 = vpop.eup %3908  ;;  %v2596_v11 = vmul.f32 %v3907_v54, %v5523_v2 }
0x113d   :  { %v2324_v7 = vmul.f32 %v3909_v18, %v5527_v26  ;;  %v3002_v35 = vpop.xlane.xlu0 %3001 }
0x113e   :  { %3024 = vst.msk [vmem:[%s5704_s15 + $0x60] sm:$0xff] %vm2018_vm13, %v2596_v11  ;;  %3922 = vrcp.f32 %v3002_v35 }
0x113f   :  { %v3911_v24 = vpop.eup %3910  ;;  %3019 = vst.msk [vmem:[%s5704_s15 + $0x38] sm:$0xff] %vm2018_vm13, %v2324_v7 }
0x1140   :  { %v3913_v52 = vpop.eup %3912  ;;  %v2600_v36 = vmul.f32 %v3911_v24, %v5531_v57 }
0x1141   :  { %v2598_v2 = vmul.f32 %v3913_v52, %v5535_v53 }
0x1142   :  { %3026 = vst.msk [vmem:[%s5704_s15 + $0x70] sm:$0x1] %vm2025_vm14, %v2600_v36 }
0x1143   :  { %v3915_v26 = vpop.eup %3914  ;;  %3025 = vst.msk [vmem:[%s5704_s15 + $0x68] sm:$0xff] %vm2018_vm13, %v2598_v2 }
0x1144   :  { %v3917_v1 = vpop.eup %3916  ;;  %v2870_v12 = vmul.f32 %v3915_v26, %v5539_v6 }
0x1145   :  { %v2872_v38 = vmul.f32 %v3917_v1, %v5543_v42 }
0x1146   :  { %3030 = vst.msk [vmem:[%s5704_s15 + $0x90] sm:$0xff] %vm2018_vm13, %v2870_v12 }
0x1147   :  { %v3919_v57 = vpop.eup %3918  ;;  %3031 = vst.msk [vmem:[%s5704_s15 + $0x98] sm:$0xff] %vm2018_vm13, %v2872_v38 }
0x1148   :  { %v3921_v53 = vpop.eup %3920  ;;  %v2874_v15 = vmul.f32 %v3919_v57, %v5547_v55 }
0x1149   :  { %v3011_v32 = vmul.f32 %v3921_v53, %v5551_v21 }
0x114a   :  { %3032 = vst.msk [vmem:[%s5704_s15 + $0xa0] sm:$0x1] %vm2025_vm14, %v2874_v15 }
0x114b   :  { %v3923_v6 = vpop.eup %3922  ;;  %3035 = vst.msk [vmem:[%s5704_s15 + $0xb8] sm:$0x1] %vm2025_vm14, %v3011_v32 }
0x114c   :  { %v3009_v42 = vmul.f32 %v3923_v6, %v5555_v59 }
0x114e   :  { %3034 = vst.msk [vmem:[%s5704_s15 + $0xb0] sm:$0xff] %vm2018_vm13, %v3009_v42 }
0x114f   :  { %3944 = dma.done.wait [#allocation3], 128  }
0x1150   :  { %3945 = vsyncadd [#allocation3], 4294967168 }
0x1151   :  { %3267 = vsyncpa [#allocation3], 1 }

</bundles_post_ra>
